<compile_context>
chip_gen: v7x
topology: tpu7x:2x2x1
jax: 0.10.0
libtpu: 0.0.40
codegen_flags: <defaults>
</compile_context>

<pallas_src>
import functools

import jax
import jax.numpy as jnp
from jax.experimental import pallas as pl
from jax.experimental.pallas import tpu as pltpu


def _pick_tile(n, pref):
    """Largest multiple-of-8 divisor of n that is <= pref (falls back to n)."""
    best = n
    for cand in range(8, min(pref, n) + 1, 8):
        if n % cand == 0:
            best = cand
    return best


def _cp(dims, hint_bytes):
    """CompilerParams with an explicit VMEM limit derived from the block sizes."""
    limit = int(min(max(2 * hint_bytes + (8 << 20), 32 << 20), 100 << 20))
    return pltpu.CompilerParams(dimension_semantics=dims, vmem_limit_bytes=limit)


# ----------------------------------------------------------------------------
# Kernel 1: fused pairwise distance + top-k neighbor selection (knn.forward)
#           Output is (k, tm) per tile -> lane-dense (B, k, N) in HBM.
# ----------------------------------------------------------------------------
def _knn_topk_kernel(x_ref, sq_ref, idx_ref, *, k, tm, idx_bits):
    n = x_ref.shape[0]
    xall = x_ref[...]                                   # (N, C) bf16, resident per batch
    if tm == n:
        rows = xall
    else:
        start = pl.multiple_of(pl.program_id(1) * tm, tm)
        rows = x_ref[pl.ds(start, tm), :]               # (tm, C) query rows
    # inner[j, i] = <x_j, x_i>  (candidates j on sublanes, queries i on lanes).
    inner = jax.lax.dot_general(
        xall, rows, (((1,), (1,)), ((), ())),
        preferred_element_type=jnp.float32)             # (N, tm)
    # -dist up to a per-query constant (x_square[i] dropped: rank-invariant).
    neg = 2.0 * inner - sq_ref[...]                     # (N, tm) f32

    # Pack (value, candidate index) into one sortable int32 key: the high
    # (32 - idx_bits) bits carry the IEEE-754 order-preserving value bits, the
    # low idx_bits bits carry (n-1-j) so exact ties resolve to the lowest j.
    # Each top-k step is then a single max-reduce over the candidate axis.
    # TODO(synk): torch.topk tie order is unspecified; near-tie picks may also
    # differ from an f32 reference because of the bf16 inner product and the
    # idx_bits low-mantissa truncation (harmless for the graph).
    row = jax.lax.broadcasted_iota(jnp.int32, neg.shape, 0)
    bits = pltpu.bitcast(neg, jnp.int32)
    key = jnp.where(bits < 0, bits ^ jnp.int32(0x7FFFFFFF), bits)
    low_mask = (1 << idx_bits) - 1
    key = (key & jnp.int32(~low_mask)) | (jnp.int32(n - 1) - row)

    picked = []
    for it in range(k):
        m = jnp.max(key, axis=0, keepdims=True)                     # (1, tm)
        sel = jnp.int32(n - 1) - (m & jnp.int32(low_mask))          # (1, tm)
        picked.append(sel)
        if it + 1 < k:
            key = jnp.where(row == sel, jnp.int32(-2147483648), key)
    idx_ref[...] = jnp.concatenate(picked, axis=0)                  # (k, tm)


def knn_topk_pallas(x_norm_bf16, sq_col, *, k, tm):
    B, N, C = x_norm_bf16.shape
    nt = N // tm
    idx_bits = max((N - 1).bit_length(), 1)
    kern = functools.partial(_knn_topk_kernel, k=k, tm=tm, idx_bits=idx_bits)
    # TODO(synk): for very large N on v7x, stream the candidate axis in chunks
    # keeping running per-query maxima instead of a full (N, tm) key array.
    hint = N * C * 2 + N * 4 + k * tm * 4 + 4 * N * tm * 4
    return pl.pallas_call(
        kern,
        out_shape=jax.ShapeDtypeStruct((B, k, N), jnp.int32),
        grid=(B, nt),
        in_specs=[pl.BlockSpec((None, N, C), lambda b, t: (b, 0, 0)),
                  pl.BlockSpec((None, N, 1), lambda b, t: (b, 0, 0))],
        out_specs=pl.BlockSpec((None, k, tm), lambda b, t: (b, 0, t)),
        compiler_params=_cp(("parallel", "parallel"), hint),
    )(x_norm_bf16, sq_col)


# ----------------------------------------------------------------------------
# Kernel 2: graph attention (softmax over k + weighted neighbor sum) fused
#           with the BasicConv 1x1 conv (folded / split weights, no 2C concat
#           in HBM) and per-tile BatchNorm partial statistics.
# ----------------------------------------------------------------------------
def _graph_attn_conv_kernel(x_ref, xn_ref, lg_ref, w_ref, b_ref, y_ref, st_ref,
                            *, fold):
    k, tm, c = xn_ref.shape
    l = lg_ref[...]                                     # (k, tm, 1) f32 raw logits
    l = jnp.where(l >= 0, l, 0.1 * l)                   # LeakyReLU(0.1)
    m = jnp.max(l, axis=0, keepdims=True)               # softmax over k (vreg-wise)
    p = jnp.exp(l - m)
    attn = p * pl.reciprocal(jnp.sum(p, axis=0, keepdims=True), approx=True)

    acc = jnp.zeros((tm, c), jnp.float32)               # weighted neighbor sum (f32 FMA)
    for j in range(k):
        acc = acc + xn_ref[j].astype(jnp.float32) * attn[j]

    xc = x_ref[...]                                     # (tm, c) bf16 center rows
    if fold:                                            # one full-width MXU push (2C <= 256)
        cat = jnp.concatenate([xc, acc.astype(jnp.bfloat16)], axis=1)
        y = jnp.dot(cat, w_ref[...], preferred_element_type=jnp.float32)
    else:                                               # split form for 2C > 256
        y = (jnp.dot(xc, w_ref[pl.ds(0, c), :], preferred_element_type=jnp.float32)
             + jnp.dot(acc.astype(jnp.bfloat16), w_ref[pl.ds(c, c), :],
                       preferred_element_type=jnp.float32))
    y = y + b_ref[...]
    y_ref[...] = y.astype(y_ref.dtype)                  # bf16 pre-BN activations
    # TODO(synk): Welford / mean-shifted partial sums would be more robust than
    # raw (sum, sum-of-squares) when |mean| >> std.
    st_ref[...] = jnp.concatenate(
        [jnp.sum(y, axis=0, keepdims=True),
         jnp.sum(y * y, axis=0, keepdims=True)], axis=0)            # (2, C)


def graph_attn_conv_pallas(x_bf16, xj_bf16, logits, w_fc_bf16, b_fc, *, tm):
    B, N, C = x_bf16.shape
    k = xj_bf16.shape[1]
    nt = N // tm
    fold = (2 * C) <= 256
    kern = functools.partial(_graph_attn_conv_kernel, fold=fold)
    hint = (tm * C * 2 + k * tm * C * 2 + k * tm * 4 + 2 * C * C * 2
            + C * 4 + tm * C * 2 + 2 * C * 4 + 2 * tm * C * 4)
    return pl.pallas_call(
        kern,
        out_shape=(jax.ShapeDtypeStruct((B, N, C), jnp.bfloat16),
                   jax.ShapeDtypeStruct((B, nt, 2, C), jnp.float32)),
        grid=(B, nt),
        in_specs=[
            pl.BlockSpec((None, tm, C), lambda b, t: (b, t, 0)),
            pl.BlockSpec((None, k, tm, C), lambda b, t: (b, 0, t, 0)),
            pl.BlockSpec((None, k, tm, 1), lambda b, t: (b, 0, t, 0)),
            pl.BlockSpec((2 * C, C), lambda b, t: (0, 0)),
            pl.BlockSpec((1, C), lambda b, t: (0, 0)),
        ],
        out_specs=(pl.BlockSpec((None, tm, C), lambda b, t: (b, t, 0)),
                   pl.BlockSpec((None, None, 2, C), lambda b, t: (b, t, 0, 0))),
        compiler_params=_cp(("parallel", "parallel"), hint),
    )(x_bf16, xj_bf16, logits, w_fc_bf16, b_fc)


# ----------------------------------------------------------------------------
# Kernel 3: BN affine + ReLU + residual add (pass 2 of the two-pass BN).
#           Emits z in bf16 -- its only consumer is the downsample conv.
# ----------------------------------------------------------------------------
def _bn_relu_res_kernel(y_ref, x_ref, sc_ref, sh_ref, o_ref):
    y = y_ref[...].astype(jnp.float32)
    z = jnp.maximum(y * sc_ref[...] + sh_ref[...], 0.0) + x_ref[...]
    o_ref[...] = z.astype(o_ref.dtype)


def bn_relu_res_pallas(y_pre, x_bnc, scale, shift, *, tm):
    B, N, C = y_pre.shape
    nt = N // tm
    hint = tm * C * (2 + 4 + 2) + 2 * C * 4
    return pl.pallas_call(
        _bn_relu_res_kernel,
        out_shape=jax.ShapeDtypeStruct((B, N, C), jnp.bfloat16),
        grid=(B, nt),
        in_specs=[pl.BlockSpec((None, tm, C), lambda b, t: (b, t, 0)),
                  pl.BlockSpec((None, tm, C), lambda b, t: (b, t, 0)),
                  pl.BlockSpec((1, C), lambda b, t: (0, 0)),
                  pl.BlockSpec((1, C), lambda b, t: (0, 0))],
        out_specs=pl.BlockSpec((None, tm, C), lambda b, t: (b, t, 0)),
        compiler_params=_cp(("parallel", "parallel"), hint),
    )(y_pre, x_bnc, scale, shift)


# ----------------------------------------------------------------------------
# Kernel 4: fused 3x3 stride-2 pad-1 downsample conv (9 in-kernel MXU taps on
#           a parity-split padded bf16 input, no im2col patches array in HBM)
#           + per-image BatchNorm partial statistics.
# ----------------------------------------------------------------------------
def _down_conv_kernel(zp_ref, w_ref, b_ref, y_ref, st_ref, *, oh, ow):
    c_in = w_ref.shape[0] // 9
    zv = zp_ref[...]                                    # (4, OH+1, OW+1, Cin) bf16
    acc = None
    for kh in range(3):
        pr, r0 = kh & 1, kh >> 1                        # row parity / offset in parity plane
        for kw in range(3):
            pc, c0 = kw & 1, kw >> 1
            tap = zv[2 * pr + pc, r0:r0 + oh, c0:c0 + ow, :]   # (oh, ow, Cin)
            tap = tap.reshape(oh * ow, c_in)
            w_t = w_ref[pl.ds((kh * 3 + kw) * c_in, c_in), :]  # (Cin, Cout) bf16
            part = jnp.dot(tap, w_t, preferred_element_type=jnp.float32)
            acc = part if acc is None else acc + part
    y = acc + b_ref[...]
    y_ref[...] = y
    st_ref[...] = jnp.concatenate(
        [jnp.sum(y, axis=0, keepdims=True),
         jnp.sum(y * y, axis=0, keepdims=True)], axis=0)        # (2, Cout)


def down_conv_pallas(zpar, w_dn_bf16, b_dn, *, oh, ow):
    # zpar: (B, 4, OH+1, OW+1, Cin) bf16, parity order [ee, eo, oe, oo].
    B = zpar.shape[0]
    C_in = zpar.shape[-1]
    C_out = w_dn_bf16.shape[1]
    kern = functools.partial(_down_conv_kernel, oh=oh, ow=ow)
    band = zpar.shape[1] * zpar.shape[2] * zpar.shape[3] * zpar.shape[4] * 2
    hint = band + 9 * C_in * C_out * 2 + 3 * oh * ow * C_out * 4
    return pl.pallas_call(
        kern,
        out_shape=(jax.ShapeDtypeStruct((B, oh * ow, C_out), jnp.float32),
                   jax.ShapeDtypeStruct((B, 2, C_out), jnp.float32)),
        grid=(B,),
        in_specs=[pl.BlockSpec((None,) + zpar.shape[1:], lambda b: (b, 0, 0, 0, 0)),
                  pl.BlockSpec((9 * C_in, C_out), lambda b: (0, 0)),
                  pl.BlockSpec((1, C_out), lambda b: (0, 0))],
        out_specs=(pl.BlockSpec((None, oh * ow, C_out), lambda b: (b, 0, 0)),
                   pl.BlockSpec((None, 2, C_out), lambda b: (b, 0, 0))),
        compiler_params=_cp(("parallel",), hint),
    )(zpar, w_dn_bf16, b_dn)


# ----------------------------------------------------------------------------
# Kernel 5: BN affine + ReLU (Downsample finalize)
# ----------------------------------------------------------------------------
def _bn_relu_kernel(y_ref, sc_ref, sh_ref, o_ref):
    o_ref[...] = jnp.maximum(y_ref[...] * sc_ref[...] + sh_ref[...], 0.0)


def bn_relu_pallas(y, scale, shift, *, tm):
    M, C = y.shape
    mt = M // tm
    hint = 2 * tm * C * 4 + 2 * C * 4
    return pl.pallas_call(
        _bn_relu_kernel,
        out_shape=jax.ShapeDtypeStruct((M, C), jnp.float32),
        grid=(mt,),
        in_specs=[pl.BlockSpec((tm, C), lambda m: (m, 0)),
                  pl.BlockSpec((1, C), lambda m: (0, 0)),
                  pl.BlockSpec((1, C), lambda m: (0, 0))],
        out_specs=pl.BlockSpec((tm, C), lambda m: (m, 0)),
        compiler_params=_cp(("parallel",), hint),
    )(y, scale, shift)


# ----------------------------------------------------------------------------
# Glue: full Down_block forward
# ----------------------------------------------------------------------------
def _bn_scale_shift(total, count, gamma, beta, eps=1e-5):
    mean = total[0:1] / count
    var = total[1:2] / count - mean * mean          # biased, training-mode BN
    scale = gamma * jax.lax.rsqrt(var + eps)
    shift = beta - mean * scale
    return scale, shift


def down_block_forward(params, x_nchw, *, k):
    B, C, H, W = x_nchw.shape
    assert H % 2 == 0 and W % 2 == 0, "stride-2 parity split assumes even H, W"
    N = H * W
    x_bnc = jnp.transpose(x_nchw.reshape(B, C, N), (0, 2, 1))              # (B, N, C) f32
    x_bf16 = x_bnc.astype(jnp.bfloat16)                                    # shared bf16 copy

    # --- knn graph: normalize over the points axis (dim=1 of (B,N,C), exactly
    #     as torch) + fused pairwise-distance / packed-key top-k kernel ---
    col_norm = jnp.sqrt(jnp.sum(x_bnc * x_bnc, axis=1, keepdims=True))     # (B, 1, C)
    xnrm = x_bnc / jnp.maximum(col_norm, 1e-12)
    sq = jnp.sum(xnrm * xnrm, axis=-1, keepdims=True)                      # (B, N, 1)
    tm_knn = _pick_tile(N, 256)
    nn_idx = knn_topk_pallas(xnrm.astype(jnp.bfloat16), sq, k=k, tm=tm_knn)  # (B, k, N)

    # --- neighbor gather (batched_index_select) in bf16 ---
    # TODO(synk): move the gather fully in-kernel (resident x + scalar-prefetched
    # indices) to drop the (B, k, N, C) intermediate from HBM entirely.
    x_j = jax.vmap(lambda xb, ib: xb[ib])(x_bf16, nn_idx)                  # (B, k, N, C) bf16

    # --- embedding Linear folded into the attention Linear (exact algebra) ---
    wa1 = params['w_att'][:C]                                              # (C, 1)
    wa2 = params['w_att'][C:]                                              # (C, 1)
    v = params['w_emb'] @ jnp.concatenate([wa1, wa2], axis=1)              # (C, 2)
    c_all = params['b_emb'] @ (wa1 + wa2) + params['b_att']                # (1, 1)
    s = jnp.einsum('bnc,cd->bnd', x_bnc, v)                                # (B, N, 2)
    s2_j = jax.vmap(lambda sb, ib: sb[ib])(s[..., 1], nn_idx)              # (B, k, N)
    logits = (s[..., 0][:, None, :] + s2_j + c_all)[..., None]             # (B, k, N, 1)

    # --- attention softmax + aggregation + 1x1 conv (+ BN partial stats) ---
    tm = _pick_tile(N, 256)                  # v7x-safe tile; fine on v6e/v5e too
    y_pre, st = graph_attn_conv_pallas(
        x_bf16, x_j, logits, params['w_fc'].astype(jnp.bfloat16),
        params['b_fc'], tm=tm)
    scale, shift = _bn_scale_shift(jnp.sum(st, axis=(0, 1)), jnp.float32(B * N),
                                   params['g_fc'], params['bt_fc'])
    tm_ew = _pick_tile(N, 1024)
    z = bn_relu_res_pallas(y_pre, x_bnc, scale, shift, tm=tm_ew)           # (B, N, C) bf16

    # --- Downsample: fused 3x3 stride-2 pad-1 conv + BN + ReLU ---
    # Parity-split padded z (cheap bf16 XLA slices, ~1.06x of z) so every conv
    # tap inside the kernel is a contiguous static slice -- no im2col patches.
    # TODO(synk): fuse kernel 3's BN+ReLU+residual into this kernel's load path
    # to also remove the standalone z round-trip.
    OH, OW = H // 2, W // 2
    zp = jnp.pad(z.reshape(B, H, W, C), ((0, 0), (1, 1), (1, 1), (0, 0)))
    zpar = jnp.stack([zp[:, 0::2, 0::2, :], zp[:, 0::2, 1::2, :],
                      zp[:, 1::2, 0::2, :], zp[:, 1::2, 1::2, :]], axis=1)
    y_dn, st_dn = down_conv_pallas(zpar, params['w_dn'].astype(jnp.bfloat16),
                                   params['b_dn'], oh=OH, ow=OW)
    mdn = B * OH * OW
    scale, shift = _bn_scale_shift(jnp.sum(st_dn, axis=0), jnp.float32(mdn),
                                   params['g_dn'], params['bt_dn'])
    tmd = _pick_tile(mdn, 1024)
    out = bn_relu_pallas(y_dn.reshape(mdn, C), scale, shift, tm=tmd)       # (mdn, C)
    out = out.reshape(B, OH, OW, C).transpose(0, 3, 1, 2)                  # NCHW
    return out


def init_params(key, C):
    ks = jax.random.split(key, 6)
    s = 0.1
    u = lambda kk, shape: jax.random.uniform(kk, shape, jnp.float32, -s, s)
    return {
        # graph_attention: embedding Linear(C, C), attention Linear(2C, 1)
        'w_emb': u(ks[0], (C, C)),
        'b_emb': u(ks[1], (1, C)),
        'w_att': u(ks[2], (2 * C, 1)),
        'b_att': u(ks[3], (1, 1)),
        # BasicConv 1x1 conv (2C -> C) + BatchNorm2d(C) (fresh: gamma=1, beta=0)
        'w_fc': u(ks[4], (2 * C, C)),
        'b_fc': u(ks[5], (1, C)),
        'g_fc': jnp.ones((1, C), jnp.float32),
        'bt_fc': jnp.zeros((1, C), jnp.float32),
        # Downsample 3x3 conv (C -> C), weight rows ordered (kh, kw, cin)
        'w_dn': u(jax.random.fold_in(key, 7), (9 * C, C)),
        'b_dn': u(jax.random.fold_in(key, 8), (1, C)),
        'g_dn': jnp.ones((1, C), jnp.float32),
        'bt_dn': jnp.zeros((1, C), jnp.float32),
    }


if __name__ == "__main__":
    # NOTE: with production C >= 128 the channels-on-lanes layout is lane-dense;
    # at this demo C=8 every vreg is only 8/128 lanes wide (acceptable for a test).
    B, C, H, W, K = 2, 8, 8, 8, 4   # residual add requires in_channels == out_channels
    key = jax.random.PRNGKey(0)
    kx, kp = jax.random.split(key)
    x = jax.random.normal(kx, (B, C, H, W), jnp.float32)
    params = init_params(kp, C)

    fwd = jax.jit(functools.partial(down_block_forward, k=K))
    out = fwd(params, x)
    jax.block_until_ready(out)
    assert out.shape == (B, C, H // 2, W // 2), out.shape
    assert jnp.all(jnp.isfinite(out))
    print("KERNEL_OK")
</pallas_src>

<mosaic_0001>
module attributes {stable_mosaic.version = 11 : i64} {
  func.func @_knn_topk_kernel(%arg0: i32, %arg1: i32, %arg2: memref<1x64x8xbf16, #tpu.memory_space<vmem>>, %arg3: memref<1x64x1xf32, #tpu.memory_space<vmem>>, %arg4: memref<1x4x64xi32, #tpu.memory_space<vmem>>) attributes {dimension_semantics = [#tpu.dimension_semantics<parallel>, #tpu.dimension_semantics<parallel>], iteration_bounds = array<i64: 2, 1>, scalar_prefetch = 0 : i64, scratch_operands = 0 : i64, tpu.core_type = #tpu.core_type<tc>, window_params = [{transform_indices = @transform_0, window_bounds = array<i64: 1, 64, 8>}, {transform_indices = @transform_1, window_bounds = array<i64: 1, 64, 1>}, {transform_indices = @transform_2, window_bounds = array<i64: 1, 4, 64>}]} {
    %c0 = arith.constant 0 : index
    %c0_0 = arith.constant 0 : index
    %c0_1 = arith.constant 0 : index
    %0 = vector.load %arg2[%c0, %c0_0, %c0_1] : memref<1x64x8xbf16, #tpu.memory_space<vmem>>, vector<1x64x8xbf16>
    %1 = vector.shape_cast %0 : vector<1x64x8xbf16> to vector<64x8xbf16>
    %cst = arith.constant dense<0.000000e+00> : vector<64x64xf32>
    %2 = tpu.matmul %1, %1, %cst {dimension_numbers = #tpu.dot_dimension_numbers<[1], [1], [0], [0], [0, 0, 1, 0], [], []>} : vector<64x8xbf16>, vector<64x8xbf16>, vector<64x64xf32> -> vector<64x64xf32>
    %cst_2 = arith.constant 2.000000e+00 : f32
    %3 = vector.broadcast %cst_2 : f32 to vector<64x64xf32>
    %4 = arith.mulf %3, %2 : vector<64x64xf32>
    %c0_3 = arith.constant 0 : index
    %c0_4 = arith.constant 0 : index
    %c0_5 = arith.constant 0 : index
    %5 = vector.load %arg3[%c0_3, %c0_4, %c0_5] : memref<1x64x1xf32, #tpu.memory_space<vmem>>, vector<1x64x1xf32>
    %6 = vector.shape_cast %5 : vector<1x64x1xf32> to vector<64x1xf32>
    %7 = vector.broadcast %6 : vector<64x1xf32> to vector<64x64xf32>
    %8 = arith.subf %4, %7 : vector<64x64xf32>
    %9 = tpu.iota {dimensions = array<i32: 0>} : vector<64x64xi32>
    %10 = tpu.bitcast %8 : vector<64x64xf32> -> vector<64x64xi32>
    %c0_i32 = arith.constant 0 : i32
    %11 = vector.broadcast %c0_i32 : i32 to vector<64x64xi32>
    %12 = arith.cmpi slt, %10, %11 : vector<64x64xi32>
    %c2147483647_i32 = arith.constant 2147483647 : i32
    %13 = vector.broadcast %c2147483647_i32 : i32 to vector<64x64xi32>
    %14 = arith.xori %10, %13 : vector<64x64xi32>
    %15 = arith.select %12, %14, %10 : vector<64x64xi1>, vector<64x64xi32>
    %c-64_i32 = arith.constant -64 : i32
    %16 = vector.broadcast %c-64_i32 : i32 to vector<64x64xi32>
    %17 = arith.andi %15, %16 : vector<64x64xi32>
    %c63_i32 = arith.constant 63 : i32
    %18 = vector.broadcast %c63_i32 : i32 to vector<64x64xi32>
    %19 = arith.subi %18, %9 : vector<64x64xi32>
    %20 = arith.ori %17, %19 : vector<64x64xi32>
    %cst_6 = arith.constant dense<-2147483648> : vector<64xi32>
    %21 = vector.multi_reduction <maxsi>, %20, %cst_6 [0] : vector<64x64xi32> to vector<64xi32>
    %22 = vector.shape_cast %21 : vector<64xi32> to vector<1x64xi32>
    %c63_i32_7 = arith.constant 63 : i32
    %23 = vector.broadcast %c63_i32_7 : i32 to vector<1x64xi32>
    %24 = arith.andi %22, %23 : vector<1x64xi32>
    %c63_i32_8 = arith.constant 63 : i32
    %25 = vector.broadcast %c63_i32_8 : i32 to vector<1x64xi32>
    %26 = arith.subi %25, %24 : vector<1x64xi32>
    %27 = vector.broadcast %26 : vector<1x64xi32> to vector<64x64xi32>
    %28 = arith.cmpi eq, %9, %27 : vector<64x64xi32>
    %c-2147483648_i32 = arith.constant -2147483648 : i32
    %29 = vector.broadcast %c-2147483648_i32 : i32 to vector<64x64xi32>
    %30 = arith.select %28, %29, %20 : vector<64x64xi1>, vector<64x64xi32>
    %cst_9 = arith.constant dense<-2147483648> : vector<64xi32>
    %31 = vector.multi_reduction <maxsi>, %30, %cst_9 [0] : vector<64x64xi32> to vector<64xi32>
    %32 = vector.shape_cast %31 : vector<64xi32> to vector<1x64xi32>
    %c63_i32_10 = arith.constant 63 : i32
    %33 = vector.broadcast %c63_i32_10 : i32 to vector<1x64xi32>
    %34 = arith.andi %32, %33 : vector<1x64xi32>
    %c63_i32_11 = arith.constant 63 : i32
    %35 = vector.broadcast %c63_i32_11 : i32 to vector<1x64xi32>
    %36 = arith.subi %35, %34 : vector<1x64xi32>
    %37 = vector.broadcast %36 : vector<1x64xi32> to vector<64x64xi32>
    %38 = arith.cmpi eq, %9, %37 : vector<64x64xi32>
    %c-2147483648_i32_12 = arith.constant -2147483648 : i32
    %39 = vector.broadcast %c-2147483648_i32_12 : i32 to vector<64x64xi32>
    %40 = arith.select %38, %39, %30 : vector<64x64xi1>, vector<64x64xi32>
    %cst_13 = arith.constant dense<-2147483648> : vector<64xi32>
    %41 = vector.multi_reduction <maxsi>, %40, %cst_13 [0] : vector<64x64xi32> to vector<64xi32>
    %42 = vector.shape_cast %41 : vector<64xi32> to vector<1x64xi32>
    %c63_i32_14 = arith.constant 63 : i32
    %43 = vector.broadcast %c63_i32_14 : i32 to vector<1x64xi32>
    %44 = arith.andi %42, %43 : vector<1x64xi32>
    %c63_i32_15 = arith.constant 63 : i32
    %45 = vector.broadcast %c63_i32_15 : i32 to vector<1x64xi32>
    %46 = arith.subi %45, %44 : vector<1x64xi32>
    %47 = vector.broadcast %46 : vector<1x64xi32> to vector<64x64xi32>
    %48 = arith.cmpi eq, %9, %47 : vector<64x64xi32>
    %c-2147483648_i32_16 = arith.constant -2147483648 : i32
    %49 = vector.broadcast %c-2147483648_i32_16 : i32 to vector<64x64xi32>
    %50 = arith.select %48, %49, %40 : vector<64x64xi1>, vector<64x64xi32>
    %cst_17 = arith.constant dense<-2147483648> : vector<64xi32>
    %51 = vector.multi_reduction <maxsi>, %50, %cst_17 [0] : vector<64x64xi32> to vector<64xi32>
    %52 = vector.shape_cast %51 : vector<64xi32> to vector<1x64xi32>
    %c63_i32_18 = arith.constant 63 : i32
    %53 = vector.broadcast %c63_i32_18 : i32 to vector<1x64xi32>
    %54 = arith.andi %52, %53 : vector<1x64xi32>
    %c63_i32_19 = arith.constant 63 : i32
    %55 = vector.broadcast %c63_i32_19 : i32 to vector<1x64xi32>
    %56 = arith.subi %55, %54 : vector<1x64xi32>
    %57 = tpu.concatenate %26, %36, %46, %56 in 0 : vector<1x64xi32>, vector<1x64xi32>, vector<1x64xi32>, vector<1x64xi32> -> vector<4x64xi32>
    %c0_20 = arith.constant 0 : index
    %c0_21 = arith.constant 0 : index
    %c0_22 = arith.constant 0 : index
    %58 = vector.load %arg4[%c0_20, %c0_21, %c0_22] : memref<1x4x64xi32, #tpu.memory_space<vmem>>, vector<1x4x64xi32>
    %59 = vector.shape_cast %58 : vector<1x4x64xi32> to vector<4x64xi32>
    %60 = vector.shape_cast %57 : vector<4x64xi32> to vector<1x4x64xi32>
    tpu.vector_store %arg4[%c0_20, %c0_21, %c0_22], %60 {strides = array<i32>} : memref<1x4x64xi32, #tpu.memory_space<vmem>>, vector<1x4x64xi32>,
    return
  }
  func.func @transform_0(%arg0: i32, %arg1: i32) -> (i32, i32, i32) {
    %c0_i32 = arith.constant 0 : i32
    %c0_i32_0 = arith.constant 0 : i32
    %c0_i32_1 = arith.constant 0 : i32
    return %arg0, %c0_i32, %c0_i32_0 : i32, i32, i32
  }
  func.func @transform_1(%arg0: i32, %arg1: i32) -> (i32, i32, i32) {
    %c0_i32 = arith.constant 0 : i32
    %c0_i32_0 = arith.constant 0 : i32
    %c0_i32_1 = arith.constant 0 : i32
    return %arg0, %c0_i32, %c0_i32_0 : i32, i32, i32
  }
  func.func @transform_2(%arg0: i32, %arg1: i32) -> (i32, i32, i32) {
    %c0_i32 = arith.constant 0 : i32
    %c0_i32_0 = arith.constant 0 : i32
    return %arg0, %c0_i32, %arg1 : i32, i32, i32
  }
}

module attributes {stable_mosaic.version = 11 : i64} {
  func.func @_graph_attn_conv_kernel(%arg0: i32, %arg1: i32, %arg2: memref<1x64x8xbf16, #tpu.memory_space<vmem>>, %arg3: memref<1x4x64x8xbf16, #tpu.memory_space<vmem>>, %arg4: memref<1x4x64x1xf32, #tpu.memory_space<vmem>>, %arg5: memref<16x8xbf16, #tpu.memory_space<vmem>>, %arg6: memref<1x8xf32, #tpu.memory_space<vmem>>, %arg7: memref<1x64x8xbf16, #tpu.memory_space<vmem>>, %arg8: memref<1x1x2x8xf32, #tpu.memory_space<vmem>>) attributes {dimension_semantics = [#tpu.dimension_semantics<parallel>, #tpu.dimension_semantics<parallel>], iteration_bounds = array<i64: 2, 1>, scalar_prefetch = 0 : i64, scratch_operands = 0 : i64, tpu.core_type = #tpu.core_type<tc>, window_params = [{transform_indices = @transform_0, window_bounds = array<i64: 1, 64, 8>}, {transform_indices = @transform_1, window_bounds = array<i64: 1, 4, 64, 8>}, {transform_indices = @transform_2, window_bounds = array<i64: 1, 4, 64, 1>}, {pipeline_mode = #tpu.pipeline_mode<synchronous>, transform_indices = @transform_3, window_bounds = array<i64: 16, 8>}, {pipeline_mode = #tpu.pipeline_mode<synchronous>, transform_indices = @transform_4, window_bounds = array<i64: 1, 8>}, {transform_indices = @transform_5, window_bounds = array<i64: 1, 64, 8>}, {transform_indices = @transform_6, window_bounds = array<i64: 1, 1, 2, 8>}]} {
    %c0 = arith.constant 0 : index
    %c0_0 = arith.constant 0 : index
    %c0_1 = arith.constant 0 : index
    %c0_2 = arith.constant 0 : index
    %0 = vector.load %arg4[%c0, %c0_0, %c0_1, %c0_2] : memref<1x4x64x1xf32, #tpu.memory_space<vmem>>, vector<1x4x64x1xf32>
    %1 = vector.shape_cast %0 : vector<1x4x64x1xf32> to vector<4x64x1xf32>
    %cst = arith.constant 0.000000e+00 : f32
    %2 = vector.broadcast %cst : f32 to vector<4x64x1xf32>
    %3 = arith.cmpf oge, %1, %2 : vector<4x64x1xf32>
    %cst_3 = arith.constant 1.000000e-01 : f32
    %4 = vector.broadcast %cst_3 : f32 to vector<4x64x1xf32>
    %5 = arith.mulf %4, %1 : vector<4x64x1xf32>
    %6 = arith.select %3, %1, %5 : vector<4x64x1xi1>, vector<4x64x1xf32>
    %cst_4 = arith.constant dense<0xFF800000> : vector<64x1xf32>
    %7 = vector.multi_reduction <maximumf>, %6, %cst_4 [0] : vector<4x64x1xf32> to vector<64x1xf32>
    %8 = vector.shape_cast %7 : vector<64x1xf32> to vector<1x64x1xf32>
    %9 = vector.broadcast %8 : vector<1x64x1xf32> to vector<4x64x1xf32>
    %10 = arith.subf %6, %9 : vector<4x64x1xf32>
    %11 = math.exp %10 : vector<4x64x1xf32>
    %cst_5 = arith.constant dense<0.000000e+00> : vector<64x1xf32>
    %12 = vector.multi_reduction <add>, %11, %cst_5 [0] : vector<4x64x1xf32> to vector<64x1xf32>
    %13 = vector.shape_cast %12 : vector<64x1xf32> to vector<1x64x1xf32>
    %14 = tpu.reciprocal %13 {approx = true} : vector<1x64x1xf32> -> vector<1x64x1xf32>
    %15 = vector.broadcast %14 : vector<1x64x1xf32> to vector<4x64x1xf32>
    %16 = arith.mulf %11, %15 : vector<4x64x1xf32>
    %cst_6 = arith.constant 0.000000e+00 : f32
    %17 = vector.broadcast %cst_6 : f32 to vector<64x8xf32>
    %c0_7 = arith.constant 0 : index
    %c0_8 = arith.constant 0 : index
    %c0_9 = arith.constant 0 : index
    %c0_10 = arith.constant 0 : index
    %18 = vector.load %arg3[%c0_7, %c0_8, %c0_9, %c0_10] : memref<1x4x64x8xbf16, #tpu.memory_space<vmem>>, vector<1x1x64x8xbf16>
    %19 = vector.shape_cast %18 : vector<1x1x64x8xbf16> to vector<64x8xbf16>
    %20 = arith.extf %19 : vector<64x8xbf16> to vector<64x8xf32>
    %21 = vector.extract_strided_slice %16 {offsets = [0, 0, 0], sizes = [1, 64, 1], strides = [1, 1, 1]} : vector<4x64x1xf32> to vector<1x64x1xf32>
    %22 = vector.shape_cast %21 : vector<1x64x1xf32> to vector<64x1xf32>
    %23 = vector.broadcast %22 : vector<64x1xf32> to vector<64x8xf32>
    %24 = arith.mulf %20, %23 : vector<64x8xf32>
    %25 = arith.addf %17, %24 : vector<64x8xf32>
    %c0_11 = arith.constant 0 : index
    %c1 = arith.constant 1 : index
    %c0_12 = arith.constant 0 : index
    %c0_13 = arith.constant 0 : index
    %26 = vector.load %arg3[%c0_11, %c1, %c0_12, %c0_13] : memref<1x4x64x8xbf16, #tpu.memory_space<vmem>>, vector<1x1x64x8xbf16>
    %27 = vector.shape_cast %26 : vector<1x1x64x8xbf16> to vector<64x8xbf16>
    %28 = arith.extf %27 : vector<64x8xbf16> to vector<64x8xf32>
    %29 = vector.extract_strided_slice %16 {offsets = [1, 0, 0], sizes = [1, 64, 1], strides = [1, 1, 1]} : vector<4x64x1xf32> to vector<1x64x1xf32>
    %30 = vector.shape_cast %29 : vector<1x64x1xf32> to vector<64x1xf32>
    %31 = vector.broadcast %30 : vector<64x1xf32> to vector<64x8xf32>
    %32 = arith.mulf %28, %31 : vector<64x8xf32>
    %33 = arith.addf %25, %32 : vector<64x8xf32>
    %c0_14 = arith.constant 0 : index
    %c2 = arith.constant 2 : index
    %c0_15 = arith.constant 0 : index
    %c0_16 = arith.constant 0 : index
    %34 = vector.load %arg3[%c0_14, %c2, %c0_15, %c0_16] : memref<1x4x64x8xbf16, #tpu.memory_space<vmem>>, vector<1x1x64x8xbf16>
    %35 = vector.shape_cast %34 : vector<1x1x64x8xbf16> to vector<64x8xbf16>
    %36 = arith.extf %35 : vector<64x8xbf16> to vector<64x8xf32>
    %37 = vector.extract_strided_slice %16 {offsets = [2, 0, 0], sizes = [1, 64, 1], strides = [1, 1, 1]} : vector<4x64x1xf32> to vector<1x64x1xf32>
    %38 = vector.shape_cast %37 : vector<1x64x1xf32> to vector<64x1xf32>
    %39 = vector.broadcast %38 : vector<64x1xf32> to vector<64x8xf32>
    %40 = arith.mulf %36, %39 : vector<64x8xf32>
    %41 = arith.addf %33, %40 : vector<64x8xf32>
    %c0_17 = arith.constant 0 : index
    %c3 = arith.constant 3 : index
    %c0_18 = arith.constant 0 : index
    %c0_19 = arith.constant 0 : index
    %42 = vector.load %arg3[%c0_17, %c3, %c0_18, %c0_19] : memref<1x4x64x8xbf16, #tpu.memory_space<vmem>>, vector<1x1x64x8xbf16>
    %43 = vector.shape_cast %42 : vector<1x1x64x8xbf16> to vector<64x8xbf16>
    %44 = arith.extf %43 : vector<64x8xbf16> to vector<64x8xf32>
    %45 = vector.extract_strided_slice %16 {offsets = [3, 0, 0], sizes = [1, 64, 1], strides = [1, 1, 1]} : vector<4x64x1xf32> to vector<1x64x1xf32>
    %46 = vector.shape_cast %45 : vector<1x64x1xf32> to vector<64x1xf32>
    %47 = vector.broadcast %46 : vector<64x1xf32> to vector<64x8xf32>
    %48 = arith.mulf %44, %47 : vector<64x8xf32>
    %49 = arith.addf %41, %48 : vector<64x8xf32>
    %c0_20 = arith.constant 0 : index
    %c0_21 = arith.constant 0 : index
    %c0_22 = arith.constant 0 : index
    %50 = vector.load %arg2[%c0_20, %c0_21, %c0_22] : memref<1x64x8xbf16, #tpu.memory_space<vmem>>, vector<1x64x8xbf16>
    %51 = vector.shape_cast %50 : vector<1x64x8xbf16> to vector<64x8xbf16>
    %52 = arith.truncf %49 : vector<64x8xf32> to vector<64x8xbf16>
    %53 = tpu.concatenate %51, %52 in 1 : vector<64x8xbf16>, vector<64x8xbf16> -> vector<64x16xbf16>
    %c0_23 = arith.constant 0 : index
    %c0_24 = arith.constant 0 : index
    %54 = vector.load %arg5[%c0_23, %c0_24] : memref<16x8xbf16, #tpu.memory_space<vmem>>, vector<16x8xbf16>
    %cst_25 = arith.constant dense<0.000000e+00> : vector<64x8xf32>
    %55 = tpu.matmul %53, %54, %cst_25 {dimension_numbers = #tpu.dot_dimension_numbers<[1], [0], [0], [1], [0, 0, 1, 1], [], []>} : vector<64x16xbf16>, vector<16x8xbf16>, vector<64x8xf32> -> vector<64x8xf32>
    %c0_26 = arith.constant 0 : index
    %c0_27 = arith.constant 0 : index
    %56 = vector.load %arg6[%c0_26, %c0_27] : memref<1x8xf32, #tpu.memory_space<vmem>>, vector<1x8xf32>
    %57 = vector.broadcast %56 : vector<1x8xf32> to vector<64x8xf32>
    %58 = arith.addf %55, %57 : vector<64x8xf32>
    %59 = arith.truncf %58 : vector<64x8xf32> to vector<64x8xbf16>
    %c0_28 = arith.constant 0 : index
    %c0_29 = arith.constant 0 : index
    %c0_30 = arith.constant 0 : index
    %60 = vector.load %arg7[%c0_28, %c0_29, %c0_30] : memref<1x64x8xbf16, #tpu.memory_space<vmem>>, vector<1x64x8xbf16>
    %61 = vector.shape_cast %60 : vector<1x64x8xbf16> to vector<64x8xbf16>
    %62 = vector.shape_cast %59 : vector<64x8xbf16> to vector<1x64x8xbf16>
    tpu.vector_store %arg7[%c0_28, %c0_29, %c0_30], %62 {strides = array<i32>} : memref<1x64x8xbf16, #tpu.memory_space<vmem>>, vector<1x64x8xbf16>,
    %cst_31 = arith.constant dense<0.000000e+00> : vector<8xf32>
    %63 = vector.multi_reduction <add>, %58, %cst_31 [0] : vector<64x8xf32> to vector<8xf32>
    %64 = vector.shape_cast %63 : vector<8xf32> to vector<1x8xf32>
    %65 = arith.mulf %58, %58 : vector<64x8xf32>
    %cst_32 = arith.constant dense<0.000000e+00> : vector<8xf32>
    %66 = vector.multi_reduction <add>, %65, %cst_32 [0] : vector<64x8xf32> to vector<8xf32>
    %67 = vector.shape_cast %66 : vector<8xf32> to vector<1x8xf32>
    %68 = tpu.concatenate %64, %67 in 0 : vector<1x8xf32>, vector<1x8xf32> -> vector<2x8xf32>
    %c0_33 = arith.constant 0 : index
    %c0_34 = arith.constant 0 : index
    %c0_35 = arith.constant 0 : index
    %c0_36 = arith.constant 0 : index
    %69 = vector.load %arg8[%c0_33, %c0_34, %c0_35, %c0_36] : memref<1x1x2x8xf32, #tpu.memory_space<vmem>>, vector<1x1x2x8xf32>
    %70 = vector.shape_cast %69 : vector<1x1x2x8xf32> to vector<2x8xf32>
    %71 = vector.shape_cast %68 : vector<2x8xf32> to vector<1x1x2x8xf32>
    tpu.vector_store %arg8[%c0_33, %c0_34, %c0_35, %c0_36], %71 {strides = array<i32>} : memref<1x1x2x8xf32, #tpu.memory_space<vmem>>, vector<1x1x2x8xf32>,
    return
  }
  func.func @transform_0(%arg0: i32, %arg1: i32) -> (i32, i32, i32) {
    %c0_i32 = arith.constant 0 : i32
    %c0_i32_0 = arith.constant 0 : i32
    return %arg0, %arg1, %c0_i32 : i32, i32, i32
  }
  func.func @transform_1(%arg0: i32, %arg1: i32) -> (i32, i32, i32, i32) {
    %c0_i32 = arith.constant 0 : i32
    %c0_i32_0 = arith.constant 0 : i32
    %c0_i32_1 = arith.constant 0 : i32
    return %arg0, %c0_i32, %arg1, %c0_i32_0 : i32, i32, i32, i32
  }
  func.func @transform_2(%arg0: i32, %arg1: i32) -> (i32, i32, i32, i32) {
    %c0_i32 = arith.constant 0 : i32
    %c0_i32_0 = arith.constant 0 : i32
    %c0_i32_1 = arith.constant 0 : i32
    return %arg0, %c0_i32, %arg1, %c0_i32_0 : i32, i32, i32, i32
  }
  func.func @transform_3(%arg0: i32, %arg1: i32) -> (i32, i32) {
    %c0_i32 = arith.constant 0 : i32
    %c0_i32_0 = arith.constant 0 : i32
    %c0_i32_1 = arith.constant 0 : i32
    return %c0_i32, %c0_i32_0 : i32, i32
  }
  func.func @transform_4(%arg0: i32, %arg1: i32) -> (i32, i32) {
    %c0_i32 = arith.constant 0 : i32
    %c0_i32_0 = arith.constant 0 : i32
    %c0_i32_1 = arith.constant 0 : i32
    return %c0_i32, %c0_i32_0 : i32, i32
  }
  func.func @transform_5(%arg0: i32, %arg1: i32) -> (i32, i32, i32) {
    %c0_i32 = arith.constant 0 : i32
    %c0_i32_0 = arith.constant 0 : i32
    return %arg0, %arg1, %c0_i32 : i32, i32, i32
  }
  func.func @transform_6(%arg0: i32, %arg1: i32) -> (i32, i32, i32, i32) {
    %c0_i32 = arith.constant 0 : i32
    %c0_i32_0 = arith.constant 0 : i32
    %c0_i32_1 = arith.constant 0 : i32
    return %arg0, %arg1, %c0_i32, %c0_i32_0 : i32, i32, i32, i32
  }
}

module attributes {stable_mosaic.version = 11 : i64} {
  func.func @_bn_relu_res_kernel(%arg0: i32, %arg1: i32, %arg2: memref<1x64x8xbf16, #tpu.memory_space<vmem>>, %arg3: memref<1x64x8xf32, #tpu.memory_space<vmem>>, %arg4: memref<1x8xf32, #tpu.memory_space<vmem>>, %arg5: memref<1x8xf32, #tpu.memory_space<vmem>>, %arg6: memref<1x64x8xbf16, #tpu.memory_space<vmem>>) attributes {dimension_semantics = [#tpu.dimension_semantics<parallel>, #tpu.dimension_semantics<parallel>], iteration_bounds = array<i64: 2, 1>, scalar_prefetch = 0 : i64, scratch_operands = 0 : i64, tpu.core_type = #tpu.core_type<tc>, window_params = [{transform_indices = @transform_0, window_bounds = array<i64: 1, 64, 8>}, {transform_indices = @transform_1, window_bounds = array<i64: 1, 64, 8>}, {pipeline_mode = #tpu.pipeline_mode<synchronous>, transform_indices = @transform_2, window_bounds = array<i64: 1, 8>}, {pipeline_mode = #tpu.pipeline_mode<synchronous>, transform_indices = @transform_3, window_bounds = array<i64: 1, 8>}, {transform_indices = @transform_4, window_bounds = array<i64: 1, 64, 8>}]} {
    %c0 = arith.constant 0 : index
    %c0_0 = arith.constant 0 : index
    %c0_1 = arith.constant 0 : index
    %0 = vector.load %arg2[%c0, %c0_0, %c0_1] : memref<1x64x8xbf16, #tpu.memory_space<vmem>>, vector<1x64x8xbf16>
    %1 = vector.shape_cast %0 : vector<1x64x8xbf16> to vector<64x8xbf16>
    %2 = arith.extf %1 : vector<64x8xbf16> to vector<64x8xf32>
    %c0_2 = arith.constant 0 : index
    %c0_3 = arith.constant 0 : index
    %3 = vector.load %arg4[%c0_2, %c0_3] : memref<1x8xf32, #tpu.memory_space<vmem>>, vector<1x8xf32>
    %4 = vector.broadcast %3 : vector<1x8xf32> to vector<64x8xf32>
    %5 = arith.mulf %2, %4 : vector<64x8xf32>
    %c0_4 = arith.constant 0 : index
    %c0_5 = arith.constant 0 : index
    %6 = vector.load %arg5[%c0_4, %c0_5] : memref<1x8xf32, #tpu.memory_space<vmem>>, vector<1x8xf32>
    %7 = vector.broadcast %6 : vector<1x8xf32> to vector<64x8xf32>
    %8 = arith.addf %5, %7 : vector<64x8xf32>
    %cst = arith.constant 0.000000e+00 : f32
    %9 = vector.broadcast %cst : f32 to vector<64x8xf32>
    %10 = arith.maximumf %8, %9 : vector<64x8xf32>
    %c0_6 = arith.constant 0 : index
    %c0_7 = arith.constant 0 : index
    %c0_8 = arith.constant 0 : index
    %11 = vector.load %arg3[%c0_6, %c0_7, %c0_8] : memref<1x64x8xf32, #tpu.memory_space<vmem>>, vector<1x64x8xf32>
    %12 = vector.shape_cast %11 : vector<1x64x8xf32> to vector<64x8xf32>
    %13 = arith.addf %10, %12 : vector<64x8xf32>
    %14 = arith.truncf %13 : vector<64x8xf32> to vector<64x8xbf16>
    %c0_9 = arith.constant 0 : index
    %c0_10 = arith.constant 0 : index
    %c0_11 = arith.constant 0 : index
    %15 = vector.load %arg6[%c0_9, %c0_10, %c0_11] : memref<1x64x8xbf16, #tpu.memory_space<vmem>>, vector<1x64x8xbf16>
    %16 = vector.shape_cast %15 : vector<1x64x8xbf16> to vector<64x8xbf16>
    %17 = vector.shape_cast %14 : vector<64x8xbf16> to vector<1x64x8xbf16>
    tpu.vector_store %arg6[%c0_9, %c0_10, %c0_11], %17 {strides = array<i32>} : memref<1x64x8xbf16, #tpu.memory_space<vmem>>, vector<1x64x8xbf16>,
    return
  }
  func.func @transform_0(%arg0: i32, %arg1: i32) -> (i32, i32, i32) {
    %c0_i32 = arith.constant 0 : i32
    %c0_i32_0 = arith.constant 0 : i32
    return %arg0, %arg1, %c0_i32 : i32, i32, i32
  }
  func.func @transform_1(%arg0: i32, %arg1: i32) -> (i32, i32, i32) {
    %c0_i32 = arith.constant 0 : i32
    %c0_i32_0 = arith.constant 0 : i32
    return %arg0, %arg1, %c0_i32 : i32, i32, i32
  }
  func.func @transform_2(%arg0: i32, %arg1: i32) -> (i32, i32) {
    %c0_i32 = arith.constant 0 : i32
    %c0_i32_0 = arith.constant 0 : i32
    %c0_i32_1 = arith.constant 0 : i32
    return %c0_i32, %c0_i32_0 : i32, i32
  }
  func.func @transform_3(%arg0: i32, %arg1: i32) -> (i32, i32) {
    %c0_i32 = arith.constant 0 : i32
    %c0_i32_0 = arith.constant 0 : i32
    %c0_i32_1 = arith.constant 0 : i32
    return %c0_i32, %c0_i32_0 : i32, i32
  }
  func.func @transform_4(%arg0: i32, %arg1: i32) -> (i32, i32, i32) {
    %c0_i32 = arith.constant 0 : i32
    %c0_i32_0 = arith.constant 0 : i32
    return %arg0, %arg1, %c0_i32 : i32, i32, i32
  }
}

module attributes {stable_mosaic.version = 11 : i64} {
  func.func @_bn_relu_kernel(%arg0: i32, %arg1: memref<32x8xf32, #tpu.memory_space<vmem>>, %arg2: memref<1x8xf32, #tpu.memory_space<vmem>>, %arg3: memref<1x8xf32, #tpu.memory_space<vmem>>, %arg4: memref<32x8xf32, #tpu.memory_space<vmem>>) attributes {dimension_semantics = [#tpu.dimension_semantics<parallel>], iteration_bounds = array<i64: 1>, scalar_prefetch = 0 : i64, scratch_operands = 0 : i64, tpu.core_type = #tpu.core_type<tc>, window_params = [{transform_indices = @transform_0, window_bounds = array<i64: 32, 8>}, {pipeline_mode = #tpu.pipeline_mode<synchronous>, transform_indices = @transform_1, window_bounds = array<i64: 1, 8>}, {pipeline_mode = #tpu.pipeline_mode<synchronous>, transform_indices = @transform_2, window_bounds = array<i64: 1, 8>}, {transform_indices = @transform_3, window_bounds = array<i64: 32, 8>}]} {
    %c0 = arith.constant 0 : index
    %c0_0 = arith.constant 0 : index
    %0 = vector.load %arg1[%c0, %c0_0] : memref<32x8xf32, #tpu.memory_space<vmem>>, vector<32x8xf32>
    %c0_1 = arith.constant 0 : index
    %c0_2 = arith.constant 0 : index
    %1 = vector.load %arg2[%c0_1, %c0_2] : memref<1x8xf32, #tpu.memory_space<vmem>>, vector<1x8xf32>
    %2 = vector.broadcast %1 : vector<1x8xf32> to vector<32x8xf32>
    %3 = arith.mulf %0, %2 : vector<32x8xf32>
    %c0_3 = arith.constant 0 : index
    %c0_4 = arith.constant 0 : index
    %4 = vector.load %arg3[%c0_3, %c0_4] : memref<1x8xf32, #tpu.memory_space<vmem>>, vector<1x8xf32>
    %5 = vector.broadcast %4 : vector<1x8xf32> to vector<32x8xf32>
    %6 = arith.addf %3, %5 : vector<32x8xf32>
    %cst = arith.constant 0.000000e+00 : f32
    %7 = vector.broadcast %cst : f32 to vector<32x8xf32>
    %8 = arith.maximumf %6, %7 : vector<32x8xf32>
    %c0_5 = arith.constant 0 : index
    %c0_6 = arith.constant 0 : index
    %9 = vector.load %arg4[%c0_5, %c0_6] : memref<32x8xf32, #tpu.memory_space<vmem>>, vector<32x8xf32>
    tpu.vector_store %arg4[%c0_5, %c0_6], %8 {strides = array<i32>} : memref<32x8xf32, #tpu.memory_space<vmem>>, vector<32x8xf32>,
    return
  }
  func.func @transform_0(%arg0: i32) -> (i32, i32) {
    %c0_i32 = arith.constant 0 : i32
    %c0_i32_0 = arith.constant 0 : i32
    return %arg0, %c0_i32 : i32, i32
  }
  func.func @transform_1(%arg0: i32) -> (i32, i32) {
    %c0_i32 = arith.constant 0 : i32
    %c0_i32_0 = arith.constant 0 : i32
    %c0_i32_1 = arith.constant 0 : i32
    return %c0_i32, %c0_i32_0 : i32, i32
  }
  func.func @transform_2(%arg0: i32) -> (i32, i32) {
    %c0_i32 = arith.constant 0 : i32
    %c0_i32_0 = arith.constant 0 : i32
    %c0_i32_1 = arith.constant 0 : i32
    return %c0_i32, %c0_i32_0 : i32, i32
  }
  func.func @transform_3(%arg0: i32) -> (i32, i32) {
    %c0_i32 = arith.constant 0 : i32
    %c0_i32_0 = arith.constant 0 : i32
    return %arg0, %c0_i32 : i32, i32
  }
}

module attributes {stable_mosaic.version = 11 : i64} {
  func.func @_down_conv_kernel(%arg0: i32, %arg1: memref<1x4x5x5x8xbf16, #tpu.memory_space<vmem>>, %arg2: memref<72x8xbf16, #tpu.memory_space<vmem>>, %arg3: memref<1x8xf32, #tpu.memory_space<vmem>>, %arg4: memref<1x16x8xf32, #tpu.memory_space<vmem>>, %arg5: memref<1x2x8xf32, #tpu.memory_space<vmem>>) attributes {dimension_semantics = [#tpu.dimension_semantics<parallel>], iteration_bounds = array<i64: 2>, scalar_prefetch = 0 : i64, scratch_operands = 0 : i64, tpu.core_type = #tpu.core_type<tc>, window_params = [{transform_indices = @transform_0, window_bounds = array<i64: 1, 4, 5, 5, 8>}, {pipeline_mode = #tpu.pipeline_mode<synchronous>, transform_indices = @transform_1, window_bounds = array<i64: 72, 8>}, {pipeline_mode = #tpu.pipeline_mode<synchronous>, transform_indices = @transform_2, window_bounds = array<i64: 1, 8>}, {transform_indices = @transform_3, window_bounds = array<i64: 1, 16, 8>}, {transform_indices = @transform_4, window_bounds = array<i64: 1, 2, 8>}]} {
    %c0 = arith.constant 0 : index
    %c0_0 = arith.constant 0 : index
    %c0_1 = arith.constant 0 : index
    %c0_2 = arith.constant 0 : index
    %c0_3 = arith.constant 0 : index
    %0 = vector.load %arg1[%c0, %c0_0, %c0_1, %c0_2, %c0_3] : memref<1x4x5x5x8xbf16, #tpu.memory_space<vmem>>, vector<1x4x5x5x8xbf16>
    %1 = vector.shape_cast %0 : vector<1x4x5x5x8xbf16> to vector<4x5x5x8xbf16>
    %2 = vector.extract_strided_slice %1 {offsets = [0, 0, 0, 0], sizes = [1, 4, 4, 8], strides = [1, 1, 1, 1]} : vector<4x5x5x8xbf16> to vector<1x4x4x8xbf16>
    %3 = vector.shape_cast %2 : vector<1x4x4x8xbf16> to vector<4x4x8xbf16>
    %4 = vector.shape_cast %3 : vector<4x4x8xbf16> to vector<16x8xbf16>
    %c0_4 = arith.constant 0 : index
    %c0_5 = arith.constant 0 : index
    %5 = vector.load %arg2[%c0_4, %c0_5] : memref<72x8xbf16, #tpu.memory_space<vmem>>, vector<8x8xbf16>
    %cst = arith.constant dense<0.000000e+00> : vector<16x8xf32>
    %6 = tpu.matmul %4, %5, %cst {dimension_numbers = #tpu.dot_dimension_numbers<[1], [0], [0], [1], [0, 0, 1, 1], [], []>} : vector<16x8xbf16>, vector<8x8xbf16>, vector<16x8xf32> -> vector<16x8xf32>
    %7 = vector.extract_strided_slice %1 {offsets = [1, 0, 0, 0], sizes = [1, 4, 4, 8], strides = [1, 1, 1, 1]} : vector<4x5x5x8xbf16> to vector<1x4x4x8xbf16>
    %8 = vector.shape_cast %7 : vector<1x4x4x8xbf16> to vector<4x4x8xbf16>
    %9 = vector.shape_cast %8 : vector<4x4x8xbf16> to vector<16x8xbf16>
    %c8 = arith.constant 8 : index
    %c0_6 = arith.constant 0 : index
    %10 = vector.load %arg2[%c8, %c0_6] : memref<72x8xbf16, #tpu.memory_space<vmem>>, vector<8x8xbf16>
    %cst_7 = arith.constant dense<0.000000e+00> : vector<16x8xf32>
    %11 = tpu.matmul %9, %10, %cst_7 {dimension_numbers = #tpu.dot_dimension_numbers<[1], [0], [0], [1], [0, 0, 1, 1], [], []>} : vector<16x8xbf16>, vector<8x8xbf16>, vector<16x8xf32> -> vector<16x8xf32>
    %12 = arith.addf %6, %11 : vector<16x8xf32>
    %13 = vector.extract_strided_slice %1 {offsets = [0, 0, 1, 0], sizes = [1, 4, 4, 8], strides = [1, 1, 1, 1]} : vector<4x5x5x8xbf16> to vector<1x4x4x8xbf16>
    %14 = vector.shape_cast %13 : vector<1x4x4x8xbf16> to vector<4x4x8xbf16>
    %15 = vector.shape_cast %14 : vector<4x4x8xbf16> to vector<16x8xbf16>
    %c16 = arith.constant 16 : index
    %c0_8 = arith.constant 0 : index
    %16 = vector.load %arg2[%c16, %c0_8] : memref<72x8xbf16, #tpu.memory_space<vmem>>, vector<8x8xbf16>
    %cst_9 = arith.constant dense<0.000000e+00> : vector<16x8xf32>
    %17 = tpu.matmul %15, %16, %cst_9 {dimension_numbers = #tpu.dot_dimension_numbers<[1], [0], [0], [1], [0, 0, 1, 1], [], []>} : vector<16x8xbf16>, vector<8x8xbf16>, vector<16x8xf32> -> vector<16x8xf32>
    %18 = arith.addf %12, %17 : vector<16x8xf32>
    %19 = vector.extract_strided_slice %1 {offsets = [2, 0, 0, 0], sizes = [1, 4, 4, 8], strides = [1, 1, 1, 1]} : vector<4x5x5x8xbf16> to vector<1x4x4x8xbf16>
    %20 = vector.shape_cast %19 : vector<1x4x4x8xbf16> to vector<4x4x8xbf16>
    %21 = vector.shape_cast %20 : vector<4x4x8xbf16> to vector<16x8xbf16>
    %c24 = arith.constant 24 : index
    %c0_10 = arith.constant 0 : index
    %22 = vector.load %arg2[%c24, %c0_10] : memref<72x8xbf16, #tpu.memory_space<vmem>>, vector<8x8xbf16>
    %cst_11 = arith.constant dense<0.000000e+00> : vector<16x8xf32>
    %23 = tpu.matmul %21, %22, %cst_11 {dimension_numbers = #tpu.dot_dimension_numbers<[1], [0], [0], [1], [0, 0, 1, 1], [], []>} : vector<16x8xbf16>, vector<8x8xbf16>, vector<16x8xf32> -> vector<16x8xf32>
    %24 = arith.addf %18, %23 : vector<16x8xf32>
    %25 = vector.extract_strided_slice %1 {offsets = [3, 0, 0, 0], sizes = [1, 4, 4, 8], strides = [1, 1, 1, 1]} : vector<4x5x5x8xbf16> to vector<1x4x4x8xbf16>
    %26 = vector.shape_cast %25 : vector<1x4x4x8xbf16> to vector<4x4x8xbf16>
    %27 = vector.shape_cast %26 : vector<4x4x8xbf16> to vector<16x8xbf16>
    %c32 = arith.constant 32 : index
    %c0_12 = arith.constant 0 : index
    %28 = vector.load %arg2[%c32, %c0_12] : memref<72x8xbf16, #tpu.memory_space<vmem>>, vector<8x8xbf16>
    %cst_13 = arith.constant dense<0.000000e+00> : vector<16x8xf32>
    %29 = tpu.matmul %27, %28, %cst_13 {dimension_numbers = #tpu.dot_dimension_numbers<[1], [0], [0], [1], [0, 0, 1, 1], [], []>} : vector<16x8xbf16>, vector<8x8xbf16>, vector<16x8xf32> -> vector<16x8xf32>
    %30 = arith.addf %24, %29 : vector<16x8xf32>
    %31 = vector.extract_strided_slice %1 {offsets = [2, 0, 1, 0], sizes = [1, 4, 4, 8], strides = [1, 1, 1, 1]} : vector<4x5x5x8xbf16> to vector<1x4x4x8xbf16>
    %32 = vector.shape_cast %31 : vector<1x4x4x8xbf16> to vector<4x4x8xbf16>
    %33 = vector.shape_cast %32 : vector<4x4x8xbf16> to vector<16x8xbf16>
    %c40 = arith.constant 40 : index
    %c0_14 = arith.constant 0 : index
    %34 = vector.load %arg2[%c40, %c0_14] : memref<72x8xbf16, #tpu.memory_space<vmem>>, vector<8x8xbf16>
    %cst_15 = arith.constant dense<0.000000e+00> : vector<16x8xf32>
    %35 = tpu.matmul %33, %34, %cst_15 {dimension_numbers = #tpu.dot_dimension_numbers<[1], [0], [0], [1], [0, 0, 1, 1], [], []>} : vector<16x8xbf16>, vector<8x8xbf16>, vector<16x8xf32> -> vector<16x8xf32>
    %36 = arith.addf %30, %35 : vector<16x8xf32>
    %37 = vector.extract_strided_slice %1 {offsets = [0, 1, 0, 0], sizes = [1, 4, 4, 8], strides = [1, 1, 1, 1]} : vector<4x5x5x8xbf16> to vector<1x4x4x8xbf16>
    %38 = vector.shape_cast %37 : vector<1x4x4x8xbf16> to vector<4x4x8xbf16>
    %39 = vector.shape_cast %38 : vector<4x4x8xbf16> to vector<16x8xbf16>
    %c48 = arith.constant 48 : index
    %c0_16 = arith.constant 0 : index
    %40 = vector.load %arg2[%c48, %c0_16] : memref<72x8xbf16, #tpu.memory_space<vmem>>, vector<8x8xbf16>
    %cst_17 = arith.constant dense<0.000000e+00> : vector<16x8xf32>
    %41 = tpu.matmul %39, %40, %cst_17 {dimension_numbers = #tpu.dot_dimension_numbers<[1], [0], [0], [1], [0, 0, 1, 1], [], []>} : vector<16x8xbf16>, vector<8x8xbf16>, vector<16x8xf32> -> vector<16x8xf32>
    %42 = arith.addf %36, %41 : vector<16x8xf32>
    %43 = vector.extract_strided_slice %1 {offsets = [1, 1, 0, 0], sizes = [1, 4, 4, 8], strides = [1, 1, 1, 1]} : vector<4x5x5x8xbf16> to vector<1x4x4x8xbf16>
    %44 = vector.shape_cast %43 : vector<1x4x4x8xbf16> to vector<4x4x8xbf16>
    %45 = vector.shape_cast %44 : vector<4x4x8xbf16> to vector<16x8xbf16>
    %c56 = arith.constant 56 : index
    %c0_18 = arith.constant 0 : index
    %46 = vector.load %arg2[%c56, %c0_18] : memref<72x8xbf16, #tpu.memory_space<vmem>>, vector<8x8xbf16>
    %cst_19 = arith.constant dense<0.000000e+00> : vector<16x8xf32>
    %47 = tpu.matmul %45, %46, %cst_19 {dimension_numbers = #tpu.dot_dimension_numbers<[1], [0], [0], [1], [0, 0, 1, 1], [], []>} : vector<16x8xbf16>, vector<8x8xbf16>, vector<16x8xf32> -> vector<16x8xf32>
    %48 = arith.addf %42, %47 : vector<16x8xf32>
    %49 = vector.extract_strided_slice %1 {offsets = [0, 1, 1, 0], sizes = [1, 4, 4, 8], strides = [1, 1, 1, 1]} : vector<4x5x5x8xbf16> to vector<1x4x4x8xbf16>
    %50 = vector.shape_cast %49 : vector<1x4x4x8xbf16> to vector<4x4x8xbf16>
    %51 = vector.shape_cast %50 : vector<4x4x8xbf16> to vector<16x8xbf16>
    %c64 = arith.constant 64 : index
    %c0_20 = arith.constant 0 : index
    %52 = vector.load %arg2[%c64, %c0_20] : memref<72x8xbf16, #tpu.memory_space<vmem>>, vector<8x8xbf16>
    %cst_21 = arith.constant dense<0.000000e+00> : vector<16x8xf32>
    %53 = tpu.matmul %51, %52, %cst_21 {dimension_numbers = #tpu.dot_dimension_numbers<[1], [0], [0], [1], [0, 0, 1, 1], [], []>} : vector<16x8xbf16>, vector<8x8xbf16>, vector<16x8xf32> -> vector<16x8xf32>
    %54 = arith.addf %48, %53 : vector<16x8xf32>
    %c0_22 = arith.constant 0 : index
    %c0_23 = arith.constant 0 : index
    %55 = vector.load %arg3[%c0_22, %c0_23] : memref<1x8xf32, #tpu.memory_space<vmem>>, vector<1x8xf32>
    %56 = vector.broadcast %55 : vector<1x8xf32> to vector<16x8xf32>
    %57 = arith.addf %54, %56 : vector<16x8xf32>
    %c0_24 = arith.constant 0 : index
    %c0_25 = arith.constant 0 : index
    %c0_26 = arith.constant 0 : index
    %58 = vector.load %arg4[%c0_24, %c0_25, %c0_26] : memref<1x16x8xf32, #tpu.memory_space<vmem>>, vector<1x16x8xf32>
    %59 = vector.shape_cast %58 : vector<1x16x8xf32> to vector<16x8xf32>
    %60 = vector.shape_cast %57 : vector<16x8xf32> to vector<1x16x8xf32>
    tpu.vector_store %arg4[%c0_24, %c0_25, %c0_26], %60 {strides = array<i32>} : memref<1x16x8xf32, #tpu.memory_space<vmem>>, vector<1x16x8xf32>,
    %cst_27 = arith.constant dense<0.000000e+00> : vector<8xf32>
    %61 = vector.multi_reduction <add>, %57, %cst_27 [0] : vector<16x8xf32> to vector<8xf32>
    %62 = vector.shape_cast %61 : vector<8xf32> to vector<1x8xf32>
    %63 = arith.mulf %57, %57 : vector<16x8xf32>
    %cst_28 = arith.constant dense<0.000000e+00> : vector<8xf32>
    %64 = vector.multi_reduction <add>, %63, %cst_28 [0] : vector<16x8xf32> to vector<8xf32>
    %65 = vector.shape_cast %64 : vector<8xf32> to vector<1x8xf32>
    %66 = tpu.concatenate %62, %65 in 0 : vector<1x8xf32>, vector<1x8xf32> -> vector<2x8xf32>
    %c0_29 = arith.constant 0 : index
    %c0_30 = arith.constant 0 : index
    %c0_31 = arith.constant 0 : index
    %67 = vector.load %arg5[%c0_29, %c0_30, %c0_31] : memref<1x2x8xf32, #tpu.memory_space<vmem>>, vector<1x2x8xf32>
    %68 = vector.shape_cast %67 : vector<1x2x8xf32> to vector<2x8xf32>
    %69 = vector.shape_cast %66 : vector<2x8xf32> to vector<1x2x8xf32>
    tpu.vector_store %arg5[%c0_29, %c0_30, %c0_31], %69 {strides = array<i32>} : memref<1x2x8xf32, #tpu.memory_space<vmem>>, vector<1x2x8xf32>,
    return
  }
  func.func @transform_0(%arg0: i32) -> (i32, i32, i32, i32, i32) {
    %c0_i32 = arith.constant 0 : i32
    %c0_i32_0 = arith.constant 0 : i32
    %c0_i32_1 = arith.constant 0 : i32
    %c0_i32_2 = arith.constant 0 : i32
    %c0_i32_3 = arith.constant 0 : i32
    return %arg0, %c0_i32, %c0_i32_0, %c0_i32_1, %c0_i32_2 : i32, i32, i32, i32, i32
  }
  func.func @transform_1(%arg0: i32) -> (i32, i32) {
    %c0_i32 = arith.constant 0 : i32
    %c0_i32_0 = arith.constant 0 : i32
    %c0_i32_1 = arith.constant 0 : i32
    return %c0_i32, %c0_i32_0 : i32, i32
  }
  func.func @transform_2(%arg0: i32) -> (i32, i32) {
    %c0_i32 = arith.constant 0 : i32
    %c0_i32_0 = arith.constant 0 : i32
    %c0_i32_1 = arith.constant 0 : i32
    return %c0_i32, %c0_i32_0 : i32, i32
  }
  func.func @transform_3(%arg0: i32) -> (i32, i32, i32) {
    %c0_i32 = arith.constant 0 : i32
    %c0_i32_0 = arith.constant 0 : i32
    %c0_i32_1 = arith.constant 0 : i32
    return %arg0, %c0_i32, %c0_i32_0 : i32, i32, i32
  }
  func.func @transform_4(%arg0: i32) -> (i32, i32, i32) {
    %c0_i32 = arith.constant 0 : i32
    %c0_i32_0 = arith.constant 0 : i32
    %c0_i32_1 = arith.constant 0 : i32
    return %arg0, %c0_i32, %c0_i32_0 : i32, i32, i32
  }
}

</mosaic_0001>

<bundles_post_ra>
// kernel: down_block_forward.5
= control target key start
LH: loop header
LB: loop body
LE: loop exit
PB: predicated region body
PF: predicated region fallthrough
CT: control target
= control target key end

     0   :  { %s823_s9 = smov 0   ;;  %s825_s10 = smov 0   ;;  %s1008_s0 = inlined_call_operand.vmem [shape: bf16[2,64,8], index: 0, kind: input, shape index: {}]   ;;  %s1009_s1 = inlined_call_operand.vmem [shape: f32[2,64,1], index: 1, kind: input, shape index: {}]   ;;  %s1010_s2 = inlined_call_operand.vmem [shape: s32[2,4,64], index: 2, kind: output, shape index: {}]  }
   0x1   :  { %s827_s11 = smov 0  }
   0x2 LB: > { %s24_s12 = sadd.s32 1, %s801_s10  ;;  %p694_p0 = scmp.ge.s32.totalorder %s805_s11, 1  ;;  %s805_s11 = sphi %s827_s11, %s12_s11   ;;  %s801_s10 = sphi %s825_s10, %s1012_s10   ;;  %s797_s9 = sphi %s823_s9, %s1011_s9  }
   0x3   : > { %p26_p1 = scmp.ge.s32.totalorder %s24_s12, 2  ;;  %p136_p2 = scmp.lt.s32.totalorder %s805_s11, 3 }
   0x5   : > { %s1014_s12 = smov (%p26_p1, %s24_s12), 0  ;;  %p137_p3 = pnand %p694_p0, %p136_p2 }
   0x6   : > { %p165_p4 = scmp.lt.s32.totalorder (!%p137_p3), %s797_s9, 1  ;;  %v807_v0 = vmov (!%p137_p3), 0   ;;  %vm211_vm0 = vcmask (!%p137_p3), 64512   ;;  %v353_v20 = vlaneseq (!%p137_p3)  ;;  %vm418_vm1 = vcmask (!%p137_p3), 523264  }
   0x7   : > { %140 = sbr.rel (%p137_p3) target bundleno = 394 (0x18a), region = 28  ;;  %778 = vset.pattern.permute.xlu1 (!%p137_p3), %v807_v0  ;;  %777 = vset.pattern.permute.xlu0 (!%p137_p3), %v807_v0 }
   0x8   : > { %v875_v21 = vshrl.u32 (!%p137_p3), %v353_v20, 7 }
   0xa   : > { %v878_v24 = vadd.s32 (!%p137_p3), 16, %v875_v21  ;;  %v881_v25 = vadd.s32 (!%p137_p3), 48, %v875_v21  ;;  %v884_v26 = vadd.s32 (!%p137_p3), 32, %v875_v21  ;;  %v887_v27 = vadd.s32 (!%p137_p3), 24, %v875_v21 }
   0xb   : > { %v890_v28 = vadd.s32 (!%p137_p3), 56, %v875_v21  ;;  %v402_v35 = vsub.s32 (!%p137_p3), 63, %v875_v21  ;;  %v901_v47 = vadd.s32 (!%p137_p3), 8, %v875_v21  ;;  %v904_v48 = vadd.s32 (!%p137_p3), 40, %v875_v21 }
   0xc   : > { %v404_v32 = vsub.s32 (!%p137_p3), 63, %v878_v24  ;;  %v408_v34 = vsub.s32 (!%p137_p3), 63, %v881_v25  ;;  %v406_v36 = vsub.s32 (!%p137_p3), 63, %v884_v26  ;;  %v405_v41 = vsub.s32 (!%p137_p3), 63, %v887_v27 }
   0xd   : > { %v409_v42 = vsub.s32 (!%p137_p3), 63, %v890_v28 }
   0xe   : > { %s1016_s9 = smov (!%p165_p4, %s797_s9), 1 }
   0xf   : > { %s710_s13 = sshll.u32 %s1016_s9, 5  ;;  %s711_s17 = sshll.u32 %s1016_s9, 6 }
  0x10   : > { %s847_s16 = scalar_lea.vmem %s1008_s0, %s710_s13  ;;  %s174_s20 = scalar_lea.vmem %s1009_s1, %s711_s17 }
  0x11   : > { %v779_v1 = vld [vmem:[%s847_s16] sm:$0xff]   ;;  %v780_v2 = vld [vmem:[%s847_s16 + $0x8] sm:$0xff]   ;;  %v781_v4 = vld [vmem:[%s847_s16 + $0x10] sm:$0xff]   ;;  %s699_s21 = sshll.u32 %s1016_s9, 2 }
  0x12   : > { %744 = vmatprep.subr.msk.bf16.mxu0 %vm211_vm0, %v779_v1  ;;  %745 = vmatprep.subr.msk.bf16.mxu1 %vm211_vm0, %v779_v1  ;;  %v213_v3 = vsel %vm211_vm0, %v779_v1, 0  ;;  %v299_v5 = vld [vmem:[%s174_s20 + $0x10] sm:$0xff]  ;;  %v297_v6 = vld [vmem:[%s174_s20] sm:$0xff]  ;;  %v300_v7 = vld [vmem:[%s174_s20 + $0x18] sm:$0xff]  ;;  %v216_v9 = vsel %vm211_vm0, %v780_v2, 0  ;;  %v219_v14 = vsel %vm211_vm0, %v781_v4, 0  ;;  %s181_s24 = scalar_lea.vmem %s1010_s2, %s699_s21 }
  0x13   : > { %721 = vmatpush3.bf16.xpose.msra.mxu0 %v213_v3  ;;  %740 = vmatpush3.bf16.xpose.msra.mxu1 %v213_v3  ;;  %v298_v8 = vld [vmem:[%s174_s20 + $0x8] sm:$0xff]  ;;  %v301_v11 = vld [vmem:[%s174_s20 + $0x20] sm:$0xff]  ;;  %v304_v12 = vld [vmem:[%s174_s20 + $0x38] sm:$0xff] }
  0x14   : > { %746 = vmatprep.subr.msk.bf16.mxu0 %vm211_vm0, %v780_v2  ;;  %747 = vmatprep.subr.msk.bf16.mxu1 %vm211_vm0, %v780_v2  ;;  %v302_v10 = vld [vmem:[%s174_s20 + $0x28] sm:$0xff]  ;;  %v303_v13 = vld [vmem:[%s174_s20 + $0x30] sm:$0xff]  ;;  %v782_v15 = vld [vmem:[%s847_s16 + $0x18] sm:$0xff]  }
  0x15   : > { %728 = vmatprep.mubr.msk.bf16.mxu0 %vm211_vm0, %v779_v1  ;;  %732 = vmatprep.mubr.msk.bf16.mxu1 %vm211_vm0, %v781_v4  ;;  %v222_v16 = vsel %vm211_vm0, %v782_v15, 0 }
  0x16   : > { %317 = vperm.xlu1 %778, %v299_v5   ;;  %307 = vperm.xlu0 %777, %v297_v6  }
  0x1a   : > { %322 = vperm.xlu1 %778, %v300_v7   ;;  %312 = vperm.xlu0 %777, %v298_v8  }
  0x1b   : > { %723 = vmatpush3.bf16.xpose.msra.mxu0 %v216_v9  ;;  %741 = vmatpush3.bf16.xpose.msra.mxu1 %v216_v9 }
  0x1c   : > { %748 = vmatprep.subr.msk.bf16.mxu0 %vm211_vm0, %v781_v4  ;;  %749 = vmatprep.subr.msk.bf16.mxu1 %vm211_vm0, %v781_v4 }
  0x1e   : > { %332 = vperm.xlu1 %778, %v302_v10   ;;  %327 = vperm.xlu0 %777, %v301_v11  }
  0x22   : > { %342 = vperm.xlu1 %778, %v304_v12   ;;  %337 = vperm.xlu0 %777, %v303_v13  }
  0x23   : > { %725 = vmatpush3.bf16.xpose.msra.mxu0 %v219_v14  ;;  %742 = vmatpush3.bf16.xpose.msra.mxu1 %v219_v14 }
  0x24   : > { %750 = vmatprep.subr.msk.bf16.mxu0 %vm211_vm0, %v782_v15  ;;  %751 = vmatprep.subr.msk.bf16.mxu1 %vm211_vm0, %v782_v15 }
  0x2b   : > { %727 = vmatpush3.bf16.xpose.msra.mxu0 %v222_v16  ;;  %743 = vmatpush3.bf16.xpose.msra.mxu1 %v222_v16 }
  0x32   : > { %729 = vmatmul.mubr.msk.bf16.vlgmr.msra.gmra.mrb[0].mxu0 %vm211_vm0, %v780_v2  ;;  %733 = vmatmul.mubr.msk.bf16.vlgmr.msra.gmra.mrb[0].mxu1 %vm211_vm0, %v782_v15 }
  0x95   : > { %v308_v17 = vpop.permute.xlu0 %307  ;;  %v318_v18 = vpop.permute.xlu1 %317 }
  0x99   : > { %v873_v19 = vpop.permute.xlu0 %312  ;;  %v323_v22 = vpop.permute.xlu1 %322 }
  0x9d   : > { %v328_v23 = vpop.permute.xlu0 %327  ;;  %v892_v29 = vpop.permute.xlu1 %332 }
  0xa1   : > { %v338_v30 = vpop.permute.xlu0 %337  ;;  %v343_v61 = vpop.permute.xlu1 %342 }
 0x105   : > { %v730_v31 = vpop.f32.mrb[0].mxu0  ;;  %v734_v33 = vpop.f32.mrb[0].mxu1 }
 0x106   : > { %v291_v37 = vmul.f32 2.0, %v730_v31  ;;  %v295_v38 = vmul.f32 2.0, %v734_v33  ;;  %v258_v39 = vpop.f32.mrb[1].mxu0  ;;  %v274_v40 = vpop.f32.mrb[1].mxu1 }
 0x107   : > { %v289_v43 = vmul.f32 2.0, %v258_v39  ;;  %v293_v44 = vmul.f32 2.0, %v274_v40  ;;  %v731_v45 = vpop.f32.mrb[2].mxu0  ;;  %v735_v46 = vpop.f32.mrb[2].mxu1  ;;  %v403_v39 = vsub.s32 63, %v901_v47 }
 0x108   : > { %v347_v49 = vsub.f32 %v291_v37, %v318_v18  ;;  %v351_v50 = vsub.f32 %v295_v38, %v338_v30  ;;  %v292_v51 = vmul.f32 2.0, %v731_v45  ;;  %v296_v52 = vmul.f32 2.0, %v735_v46  ;;  %v261_v53 = vpop.f32.mrb[3].mxu0  ;;  %v277_v54 = vpop.f32.mrb[3].mxu1 }
 0x109   : > { %v345_v55 = vsub.f32 %v289_v43, %v308_v17  ;;  %v349_v56 = vsub.f32 %v293_v44, %v328_v23  ;;  %v290_v57 = vmul.f32 2.0, %v261_v53  ;;  %v294_v58 = vmul.f32 2.0, %v277_v54 }
 0x10a   : > { %vm372_vm2 = vcmp.lt.s32.totalorder %v347_v49, 0  ;;  %v380_v59 = vxor.u32 2147483647, %v347_v49  ;;  %vm376_vm3 = vcmp.lt.s32.totalorder %v351_v50, 0  ;;  %v384_v60 = vxor.u32 2147483647, %v351_v50 }
 0x10b   : > { %vm370_vm4 = vcmp.lt.s32.totalorder %v345_v55, 0  ;;  %v378_v62 = vxor.u32 2147483647, %v345_v55  ;;  %vm374_vm5 = vcmp.lt.s32.totalorder %v349_v56, 0  ;;  %v382_v63 = vxor.u32 2147483647, %v349_v56 }
 0x10c   : > { %v388_v0 = vsel %vm372_vm2, %v380_v59, %v347_v49  ;;  %v392_v1 = vsel %vm376_vm3, %v384_v60, %v351_v50  ;;  %v348_v2 = vsub.f32 %v292_v51, %v323_v22  ;;  %v352_v3 = vsub.f32 %v296_v52, %v343_v61 }
 0x10d   : > { %v396_v4 = vand.u32 4294967232, %v388_v0  ;;  %v400_v5 = vand.u32 4294967232, %v392_v1  ;;  %v386_v6 = vsel %vm370_vm4, %v378_v62, %v345_v55  ;;  %v390_v7 = vsel %vm374_vm5, %v382_v63, %v349_v56 }
 0x10e   : > { %v394_v8 = vand.u32 4294967232, %v386_v6  ;;  %v398_v9 = vand.u32 4294967232, %v390_v7  ;;  %vm373_vm6 = vcmp.lt.s32.totalorder %v348_v2, 0  ;;  %v381_v10 = vxor.u32 2147483647, %v348_v2 }
 0x10f   : > { %v906_v11 = vor.u32 %v404_v32, %v396_v4  ;;  %v908_v12 = vor.u32 %v408_v34, %v400_v5  ;;  %vm377_vm7 = vcmp.lt.s32.totalorder %v352_v3, 0  ;;  %v385_v13 = vxor.u32 2147483647, %v352_v3 }
 0x110   : > { %v910_v14 = vor.u32 %v402_v35, %v394_v8  ;;  %v912_v15 = vor.u32 %v406_v36, %v398_v9  ;;  %v389_v16 = vsel %vm373_vm6, %v381_v10, %v348_v2  ;;  %v346_v17 = vsub.f32 %v290_v57, %v873_v19 }
 0x111   : > { %v421_v18 = vsel %vm418_vm1, %v906_v11, 2147483648  ;;  %v429_v20 = vsel %vm418_vm1, %v908_v12, 2147483648  ;;  %v397_v22 = vand.u32 4294967232, %v389_v16  ;;  %v393_v23 = vsel %vm377_vm7, %v385_v13, %v352_v3 }
 0x112   : > { %vm430_vm8 = vcmp.gt.s32.totalorder %v421_v18, %v429_v20  ;;  %v419_v30 = vsel %vm418_vm1, %v910_v14, 2147483648  ;;  %v423_v31 = vsel %vm418_vm1, %v912_v15, 2147483648  ;;  %v401_v32 = vand.u32 4294967232, %v393_v23 }
 0x113   : > { %v431_v33 = vsel %vm430_vm8, %v421_v18, %v429_v20  ;;  %vm424_vm9 = vcmp.gt.s32.totalorder %v419_v30, %v423_v31  ;;  %v413_v34 = vor.u32 %v405_v41, %v397_v22  ;;  %vm371_vm10 = vcmp.lt.s32.totalorder %v346_v17, 0 }
 0x114   : > { %v425_v19 = vsel %vm424_vm9, %v419_v30, %v423_v31  ;;  %v417_v35 = vor.u32 %v409_v42, %v401_v32  ;;  %v379_v36 = vxor.u32 2147483647, %v346_v17  ;;  %v350_v37 = vsub.f32 %v294_v58, %v892_v29 }
 0x115   : > { %v422_v38 = vsel %vm418_vm1, %v413_v34, 2147483648  ;;  %v407_v46 = vsub.s32 63, %v904_v48 }
 0x116   : > { %v432_v40 = vsel %vm418_vm1, %v417_v35, 2147483648  ;;  %v387_v43 = vsel %vm371_vm10, %v379_v36, %v346_v17  ;;  %vm375_vm11 = vcmp.lt.s32.totalorder %v350_v37, 0  ;;  %v383_v44 = vxor.u32 2147483647, %v350_v37 }
 0x117   : > { %vm433_vm12 = vcmp.gt.s32.totalorder %v422_v38, %v432_v40  ;;  %v395_v45 = vand.u32 4294967232, %v387_v43 }
 0x118   : > { %v434_v41 = vsel %vm433_vm12, %v422_v38, %v432_v40  ;;  %v391_v49 = vsel %vm375_vm11, %v383_v44, %v350_v37 }
 0x119   : > { %vm437_vm13 = vcmp.gt.s32.totalorder %v431_v33, %v434_v41  ;;  %v411_v42 = vor.u32 %v403_v39, %v395_v45  ;;  %v399_v50 = vand.u32 4294967232, %v391_v49 }
 0x11a   : > { %v438_v51 = vsel %vm437_vm13, %v431_v33, %v434_v41 }
 0x11b   : > { %v420_v29 = vsel %vm418_vm1, %v411_v42, 2147483648  ;;  %v415_v52 = vor.u32 %v407_v46, %v399_v50 }
 0x11d   : > { %v426_v53 = vsel %vm418_vm1, %v415_v52, 2147483648 }
 0x11e   : > { %vm427_vm14 = vcmp.gt.s32.totalorder %v420_v29, %v426_v53 }
 0x11f   : > { %v428_v54 = vsel %vm427_vm14, %v420_v29, %v426_v53 }
 0x120   : > { %vm435_vm15 = vcmp.gt.s32.totalorder %v425_v19, %v428_v54 }
 0x121   : > { %v436_v55 = vsel %vm435_vm15, %v425_v19, %v428_v54 }
 0x122   : > { %vm439_vm0 = vcmp.gt.s32.totalorder %v436_v55, %v438_v51 }
 0x123   : > { %v440_v56 = vsel %vm439_vm0, %v436_v55, %v438_v51 }
 0x124   : > { %v441_v57 = vrot.slane %v440_v56, 4 }
 0x126   : > { %vm442_vm2 = vcmp.gt.s32.totalorder %v440_v56, %v441_v57 }
 0x127   : > { %v443_v58 = vsel %vm442_vm2, %v440_v56, %v441_v57 }
 0x128   : > { %v444_v59 = vrot.slane %v443_v58, 2 }
 0x12a   : > { %vm445_vm3 = vcmp.gt.s32.totalorder %v443_v58, %v444_v59 }
 0x12b   : > { %v446_v60 = vsel %vm445_vm3, %v443_v58, %v444_v59 }
 0x12c   : > { %v447_v61 = vrot.slane %v446_v60, 1 }
 0x12e   : > { %vm448_vm4 = vcmp.gt.s32.totalorder %v446_v60, %v447_v61 }
 0x12f   : > { %v449_v62 = vsel %vm448_vm4, %v446_v60, %v447_v61 }
 0x130   : > { %v450_v63 = vand.u32 63, %v449_v62 }
 0x132   : > { %v930_v0 = vsub.s32 63, %v450_v63 }
 0x134   : > { %vm452_vm5 = vcmp.eq.s32.totalorder %v875_v21, %v930_v0  ;;  %vm453_vm6 = vcmp.eq.s32.totalorder %v901_v47, %v930_v0  ;;  %vm454_vm7 = vcmp.eq.s32.totalorder %v878_v24, %v930_v0  ;;  %vm455_vm8 = vcmp.eq.s32.totalorder %v887_v27, %v930_v0 }
 0x135   : > { %vm456_vm9 = vcmp.eq.s32.totalorder %v884_v26, %v930_v0  ;;  %vm457_vm10 = vcmp.eq.s32.totalorder %v904_v48, %v930_v0  ;;  %vm458_vm11 = vcmp.eq.s32.totalorder %v881_v25, %v930_v0  ;;  %vm459_vm12 = vcmp.eq.s32.totalorder %v890_v28, %v930_v0 }
 0x136   : > { %v460_v1 = vsel %vm452_vm5, 2147483648, %v910_v14  ;;  %v461_v2 = vsel %vm453_vm6, 2147483648, %v411_v42  ;;  %v462_v3 = vsel %vm454_vm7, 2147483648, %v906_v11  ;;  %v463_v4 = vsel %vm455_vm8, 2147483648, %v413_v34 }
 0x137   : > { %v464_v5 = vsel %vm456_vm9, 2147483648, %v912_v15  ;;  %v465_v6 = vsel %vm457_vm10, 2147483648, %v415_v52  ;;  %v466_v7 = vsel %vm458_vm11, 2147483648, %v908_v12  ;;  %v467_v8 = vsel %vm459_vm12, 2147483648, %v417_v35 }
 0x138   : > { %v468_v9 = vsel %vm418_vm1, %v460_v1, 2147483648  ;;  %v469_v10 = vsel %vm418_vm1, %v461_v2, 2147483648  ;;  %v470_v13 = vsel %vm418_vm1, %v462_v3, 2147483648  ;;  %v471_v16 = vsel %vm418_vm1, %v463_v4, 2147483648 }
 0x139   : > { %v472_v14 = vsel %vm418_vm1, %v464_v5, 2147483648  ;;  %v475_v17 = vsel %vm418_vm1, %v465_v6, 2147483648  ;;  %v478_v11 = vsel %vm418_vm1, %v466_v7, 2147483648  ;;  %v481_v15 = vsel %vm418_vm1, %v467_v8, 2147483648 }
 0x13a   : > { %vm473_vm13 = vcmp.gt.s32.totalorder %v468_v9, %v472_v14  ;;  %vm476_vm14 = vcmp.gt.s32.totalorder %v469_v10, %v475_v17  ;;  %vm479_vm15 = vcmp.gt.s32.totalorder %v470_v13, %v478_v11  ;;  %vm482_vm0 = vcmp.gt.s32.totalorder %v471_v16, %v481_v15 }
 0x13b   : > { %v474_v12 = vsel %vm473_vm13, %v468_v9, %v472_v14  ;;  %v477_v18 = vsel %vm476_vm14, %v469_v10, %v475_v17  ;;  %v480_v20 = vsel %vm479_vm15, %v470_v13, %v478_v11  ;;  %v483_v22 = vsel %vm482_vm0, %v471_v16, %v481_v15 }
 0x13c   : > { %vm484_vm2 = vcmp.gt.s32.totalorder %v474_v12, %v477_v18  ;;  %vm486_vm3 = vcmp.gt.s32.totalorder %v480_v20, %v483_v22  ;;  %vm599_vm8 = vcmask 1040384  }
 0x13d   : > { %v485_v23 = vsel %vm484_vm2, %v474_v12, %v477_v18  ;;  %v487_v30 = vsel %vm486_vm3, %v480_v20, %v483_v22 }
 0x13e   : > { %vm488_vm4 = vcmp.gt.s32.totalorder %v485_v23, %v487_v30 }
 0x13f   : > { %v489_v31 = vsel %vm488_vm4, %v485_v23, %v487_v30 }
 0x140   : > { %v490_v32 = vrot.slane %v489_v31, 4 }
 0x142   : > { %vm491_vm5 = vcmp.gt.s32.totalorder %v489_v31, %v490_v32 }
 0x143   : > { %v492_v33 = vsel %vm491_vm5, %v489_v31, %v490_v32 }
 0x144   : > { %v493_v34 = vrot.slane %v492_v33, 2 }
 0x146   : > { %vm494_vm6 = vcmp.gt.s32.totalorder %v492_v33, %v493_v34 }
 0x147   : > { %v495_v19 = vsel %vm494_vm6, %v492_v33, %v493_v34 }
 0x148   : > { %v496_v35 = vrot.slane %v495_v19, 1 }
 0x14a   : > { %vm497_vm7 = vcmp.gt.s32.totalorder %v495_v19, %v496_v35 }
 0x14b   : > { %v498_v36 = vsel %vm497_vm7, %v495_v19, %v496_v35 }
 0x14c   : > { %v499_v37 = vand.u32 63, %v498_v36 }
 0x14e   : > { %v500_v38 = vsub.s32 63, %v499_v37 }
 0x150   : > { %vm501_vm9 = vcmp.eq.s32.totalorder %v875_v21, %v500_v38  ;;  %vm502_vm10 = vcmp.eq.s32.totalorder %v901_v47, %v500_v38  ;;  %vm503_vm11 = vcmp.eq.s32.totalorder %v878_v24, %v500_v38  ;;  %vm504_vm12 = vcmp.eq.s32.totalorder %v887_v27, %v500_v38 }
 0x151   : > { %vm505_vm13 = vcmp.eq.s32.totalorder %v884_v26, %v500_v38  ;;  %vm506_vm14 = vcmp.eq.s32.totalorder %v904_v48, %v500_v38  ;;  %vm507_vm15 = vcmp.eq.s32.totalorder %v881_v25, %v500_v38  ;;  %vm508_vm0 = vcmp.eq.s32.totalorder %v890_v28, %v500_v38 }
 0x152   : > { %v509_v39 = vsel %vm501_vm9, 2147483648, %v460_v1  ;;  %v510_v40 = vsel %vm502_vm10, 2147483648, %v461_v2  ;;  %v511_v43 = vsel %vm503_vm11, 2147483648, %v462_v3  ;;  %v512_v44 = vsel %vm504_vm12, 2147483648, %v463_v4 }
 0x153   : > { %v513_v45 = vsel %vm505_vm13, 2147483648, %v464_v5  ;;  %v514_v46 = vsel %vm506_vm14, 2147483648, %v465_v6  ;;  %v515_v41 = vsel %vm507_vm15, 2147483648, %v466_v7  ;;  %v516_v49 = vsel %vm508_vm0, 2147483648, %v467_v8 }
 0x154   : > { %v517_v42 = vsel %vm418_vm1, %v509_v39, 2147483648  ;;  %v518_v50 = vsel %vm418_vm1, %v510_v40, 2147483648  ;;  %v519_v51 = vsel %vm418_vm1, %v511_v43, 2147483648  ;;  %v520_v29 = vsel %vm418_vm1, %v512_v44, 2147483648 }
 0x155   : > { %v521_v52 = vsel %vm418_vm1, %v513_v45, 2147483648  ;;  %v524_v53 = vsel %vm418_vm1, %v514_v46, 2147483648  ;;  %v527_v54 = vsel %vm418_vm1, %v515_v41, 2147483648  ;;  %v530_v55 = vsel %vm418_vm1, %v516_v49, 2147483648 }
 0x156   : > { %vm522_vm2 = vcmp.gt.s32.totalorder %v517_v42, %v521_v52  ;;  %vm525_vm3 = vcmp.gt.s32.totalorder %v518_v50, %v524_v53  ;;  %vm528_vm4 = vcmp.gt.s32.totalorder %v519_v51, %v527_v54  ;;  %vm531_vm5 = vcmp.gt.s32.totalorder %v520_v29, %v530_v55 }
 0x157   : > { %v523_v56 = vsel %vm522_vm2, %v517_v42, %v521_v52  ;;  %v526_v57 = vsel %vm525_vm3, %v518_v50, %v524_v53  ;;  %v529_v58 = vsel %vm528_vm4, %v519_v51, %v527_v54  ;;  %v532_v59 = vsel %vm531_vm5, %v520_v29, %v530_v55 }
 0x158   : > { %vm533_vm6 = vcmp.gt.s32.totalorder %v523_v56, %v526_v57  ;;  %vm535_vm7 = vcmp.gt.s32.totalorder %v529_v58, %v532_v59  ;;  %v600_v60 = vsel %vm599_vm8, %v930_v0, %v500_v38  ;;  %vm601_vm13 = vcmask 1041408  }
 0x159   : > { %v534_v61 = vsel %vm533_vm6, %v523_v56, %v526_v57  ;;  %v536_v62 = vsel %vm535_vm7, %v529_v58, %v532_v59 }
 0x15a   : > { %vm537_vm9 = vcmp.gt.s32.totalorder %v534_v61, %v536_v62 }
 0x15b   : > { %v538_v63 = vsel %vm537_vm9, %v534_v61, %v536_v62 }
 0x15c   : > { %v539_v1 = vrot.slane %v538_v63, 4 }
 0x15e   : > { %vm540_vm10 = vcmp.gt.s32.totalorder %v538_v63, %v539_v1 }
 0x15f   : > { %v541_v2 = vsel %vm540_vm10, %v538_v63, %v539_v1 }
 0x160   : > { %v542_v3 = vrot.slane %v541_v2, 2 }
 0x162   : > { %vm543_vm11 = vcmp.gt.s32.totalorder %v541_v2, %v542_v3 }
 0x163   : > { %v544_v4 = vsel %vm543_vm11, %v541_v2, %v542_v3 }
 0x164   : > { %v545_v5 = vrot.slane %v544_v4, 1 }
 0x166   : > { %vm546_vm12 = vcmp.gt.s32.totalorder %v544_v4, %v545_v5 }
 0x167   : > { %v547_v6 = vsel %vm546_vm12, %v544_v4, %v545_v5 }
 0x168   : > { %v548_v7 = vand.u32 63, %v547_v6 }
 0x16a   : > { %v549_v8 = vsub.s32 63, %v548_v7 }
 0x16c   : > { %vm550_vm14 = vcmp.eq.s32.totalorder %v875_v21, %v549_v8  ;;  %vm551_vm8 = vcmp.eq.s32.totalorder %v901_v47, %v549_v8  ;;  %vm552_vm15 = vcmp.eq.s32.totalorder %v878_v24, %v549_v8  ;;  %vm553_vm0 = vcmp.eq.s32.totalorder %v887_v27, %v549_v8 }
 0x16d   : > { %vm554_vm2 = vcmp.eq.s32.totalorder %v884_v26, %v549_v8  ;;  %vm555_vm3 = vcmp.eq.s32.totalorder %v904_v48, %v549_v8  ;;  %vm556_vm4 = vcmp.eq.s32.totalorder %v881_v25, %v549_v8  ;;  %vm557_vm5 = vcmp.eq.s32.totalorder %v890_v28, %v549_v8 }
 0x16e   : > { %v558_v0 = vsel %vm550_vm14, 2147483648, %v509_v39  ;;  %v559_v9 = vsel %vm551_vm8, 2147483648, %v510_v40  ;;  %v560_v10 = vsel %vm552_vm15, 2147483648, %v511_v43  ;;  %v561_v13 = vsel %vm553_vm0, 2147483648, %v512_v44 }
 0x16f   : > { %v562_v16 = vsel %vm554_vm2, 2147483648, %v513_v45  ;;  %v563_v21 = vsel %vm555_vm3, 2147483648, %v514_v46  ;;  %v564_v14 = vsel %vm556_vm4, 2147483648, %v515_v41  ;;  %v565_v47 = vsel %vm557_vm5, 2147483648, %v516_v49 }
 0x170   : > { %v566_v24 = vsel %vm418_vm1, %v558_v0, 2147483648  ;;  %v567_v27 = vsel %vm418_vm1, %v559_v9, 2147483648  ;;  %v568_v26 = vsel %vm418_vm1, %v560_v10, 2147483648  ;;  %v569_v48 = vsel %vm418_vm1, %v561_v13, 2147483648 }
 0x171   : > { %v570_v25 = vsel %vm418_vm1, %v562_v16, 2147483648  ;;  %v573_v28 = vsel %vm418_vm1, %v563_v21, 2147483648  ;;  %v576_v17 = vsel %vm418_vm1, %v564_v14, 2147483648  ;;  %v579_v11 = vsel %vm418_vm1, %v565_v47, 2147483648 }
 0x172   : > { %vm571_vm6 = vcmp.gt.s32.totalorder %v566_v24, %v570_v25  ;;  %vm574_vm7 = vcmp.gt.s32.totalorder %v567_v27, %v573_v28  ;;  %vm577_vm9 = vcmp.gt.s32.totalorder %v568_v26, %v576_v17  ;;  %vm580_vm10 = vcmp.gt.s32.totalorder %v569_v48, %v579_v11 }
 0x173   : > { %v572_v15 = vsel %vm571_vm6, %v566_v24, %v570_v25  ;;  %v575_v12 = vsel %vm574_vm7, %v567_v27, %v573_v28  ;;  %v578_v18 = vsel %vm577_vm9, %v568_v26, %v576_v17  ;;  %v581_v20 = vsel %vm580_vm10, %v569_v48, %v579_v11 }
 0x174   : > { %vm582_vm11 = vcmp.gt.s32.totalorder %v572_v15, %v575_v12  ;;  %vm584_vm12 = vcmp.gt.s32.totalorder %v578_v18, %v581_v20  ;;  %v602_v22 = vsel %vm601_vm13, %v600_v60, %v549_v8  ;;  %vm603_vm0 = vcmask 1042432  }
 0x175   : > { %v583_v23 = vsel %vm582_vm11, %v572_v15, %v575_v12  ;;  %v585_v30 = vsel %vm584_vm12, %v578_v18, %v581_v20  ;;  %vm605_vm13 = vcmask 519168  }
 0x176   : > { %vm586_vm14 = vcmp.gt.s32.totalorder %v583_v23, %v585_v30 }
 0x177   : > { %v587_v31 = vsel %vm586_vm14, %v583_v23, %v585_v30 }
 0x178   : > { %v588_v32 = vrot.slane %v587_v31, 4 }
 0x17a   : > { %vm589_vm8 = vcmp.gt.s32.totalorder %v587_v31, %v588_v32 }
 0x17b   : > { %v590_v33 = vsel %vm589_vm8, %v587_v31, %v588_v32 }
 0x17c   : > { %v591_v34 = vrot.slane %v590_v33, 2 }
 0x17e   : > { %vm592_vm1 = vcmp.gt.s32.totalorder %v590_v33, %v591_v34 }
 0x17f   : > { %v593_v19 = vsel %vm592_vm1, %v590_v33, %v591_v34 }
 0x180   : > { %v594_v35 = vrot.slane %v593_v19, 1 }
 0x182   : > { %vm595_vm15 = vcmp.gt.s32.totalorder %v593_v19, %v594_v35 }
 0x183   : > { %v596_v36 = vsel %vm595_vm15, %v593_v19, %v594_v35 }
 0x184   : > { %v597_v37 = vand.u32 63, %v596_v36 }
 0x186   : > { %v598_v38 = vsub.s32 63, %v597_v37 }
 0x188   : > { %v604_v39 = vsel %vm603_vm0, %v602_v22, %v598_v38 }
 0x189   : > { %606 = vst.msk [vmem:[%s181_s24] sm:$0xf] %vm605_vm13, %v604_v39 }
 0x18a PF: > { %s12_s11 = sadd.s32 1, %s805_s11   ;;  %s1011_s9 = smov %s801_s10 }
 0x18b   : > { %p9_p5 = scmp.ge.s32.totalorder %s12_s11, 4   ;;  %s1012_s10 = smov %s1014_s12 }
 0x18d   :  { %11 = sbr.rel (!%p9_p5) target bundleno = 2 (0x2), region = 61 }

// kernel: down_block_forward.6
= control target key start
LH: loop header
LB: loop body
LE: loop exit
PB: predicated region body
PF: predicated region fallthrough
CT: control target
= control target key end

     0   :  { %s1796_s21 = smov 0   ;;  %s1798_s22 = smov 0   ;;  %s2183_s0 = inlined_call_operand.vmem [shape: bf16[2,64,8], index: 0, kind: input, shape index: {}]   ;;  %s2184_s1 = inlined_call_operand.vmem [shape: bf16[2,4,64,8], index: 1, kind: input, shape index: {}]   ;;  %s2185_s2 = inlined_call_operand.vmem [shape: f32[2,4,64,1], index: 2, kind: input, shape index: {}]   ;;  %s2186_s3 = inlined_call_operand.vmem [shape: bf16[16,8], index: 3, kind: input, shape index: {}]   ;;  %s2187_s4 = inlined_call_operand.vmem [shape: f32[1,8], index: 4, kind: input, shape index: {}]   ;;  %s2188_s5 = inlined_call_operand.vmem [shape: bf16[2,64,8], index: 5, kind: output, shape index: {0}]   ;;  %s2189_s6 = inlined_call_operand.vmem [shape: f32[2,1,2,8], index: 6, kind: output, shape index: {1}]  }
   0x1   :  { %s1800_s23 = smov 0  }
   0x2 LB: > { %s29_s24 = sadd.s32 1, %s1753_s22  ;;  %p1460_p0 = scmp.ge.s32.totalorder %s1757_s23, 1  ;;  %s1757_s23 = sphi %s1800_s23, %s17_s23   ;;  %s1753_s22 = sphi %s1798_s22, %s2191_s22   ;;  %s1749_s21 = sphi %s1796_s21, %s2190_s21  }
   0x3   : > { %p31_p1 = scmp.ge.s32.totalorder %s29_s24, 2  ;;  %p272_p2 = scmp.lt.s32.totalorder %s1757_s23, 3 }
   0x5   : > { %s2193_s24 = smov (%p31_p1, %s29_s24), 0  ;;  %p273_p3 = pnand %p1460_p0, %p272_p2 }
   0x6   : > { %p336_p4 = scmp.lt.s32.totalorder (!%p273_p3), %s1749_s21, 1  ;;  %v1759_v0 = vmov (!%p273_p3), 0   ;;  %vm511_vm0 = vcmask (!%p273_p3), 7168   ;;  %s1760_s15 = smov (!%p273_p3), 8  }
   0x7   : > { %276 = sbr.rel (%p273_p3) target bundleno = 641 (0x281), region = 40  ;;  %1649 = vset.pattern.permute.xlu1 (!%p273_p3), %v1759_v0  ;;  %1648 = vset.pattern.permute.xlu0 (!%p273_p3), %v1759_v0 }
   0xe   : > { %s2195_s21 = smov (!%p336_p4, %s1749_s21), 1 }
   0xf   : > { %s1516_s25 = sshll.u32 %s2195_s21, 8  ;;  %s1515_s29 = sshll.u32 %s2195_s21, 7 }
  0x10   : > { %s1820_s28 = scalar_lea.vmem %s2185_s2, %s1516_s25  ;;  %s2087_s8 = scalar_lea.vmem %s2184_s1, %s1515_s29 }
  0x11   : > { %v383_v1 = vld [vmem:[%s1820_s28] sm:$0xff]  ;;  %v384_v8 = vld [vmem:[%s1820_s28 + $0x8] sm:$0xff]  ;;  %v386_v20 = vld [vmem:[%s1820_s28 + $0x18] sm:$0xff]  ;;  %s1514_s11 = sshll.u32 %s2195_s21, 5  ;;  %s1469_s25 = sshll.u32 %s2195_s21, 1 }
  0x12   : > { %v391_v2 = vld [vmem:[%s1820_s28 + $0x40] sm:$0xff]  ;;  %vm415_vm1 = vcmp.ge.f32.partialorder %v383_v1, 0.0  ;;  %v447_v5 = vmul.f32 0.1, %v383_v1  ;;  %v392_v11 = vld [vmem:[%s1820_s28 + $0x48] sm:$0xff]  ;;  %vm416_vm5 = vcmp.ge.f32.partialorder %v384_v8, 0.0  ;;  %s2106_s14 = scalar_lea.vmem %s2183_s0, %s1514_s11  ;;  %s2136_s20 = scalar_lea.vmem %s2188_s5, %s1514_s11 }
  0x13   : > { %v399_v3 = vld [vmem:[%s1820_s28 + $0x80] sm:$0xff]  ;;  %vm423_vm2 = vcmp.ge.f32.partialorder %v391_v2, 0.0  ;;  %v455_v6 = vmul.f32 0.1, %v391_v2  ;;  %v400_v12 = vld [vmem:[%s1820_s28 + $0x88] sm:$0xff]  ;;  %vm424_vm6 = vcmp.ge.f32.partialorder %v392_v11, 0.0 }
  0x14   : > { %v407_v4 = vld [vmem:[%s1820_s28 + $0xc0] sm:$0xff]  ;;  %vm431_vm3 = vcmp.ge.f32.partialorder %v399_v3, 0.0  ;;  %v463_v7 = vmul.f32 0.1, %v399_v3  ;;  %v479_v10 = vsel %vm415_vm1, %v383_v1, %v447_v5  ;;  %v408_v13 = vld [vmem:[%s1820_s28 + $0xc8] sm:$0xff]  ;;  %vm432_vm7 = vcmp.ge.f32.partialorder %v400_v12, 0.0 }
  0x15   : > { %vm439_vm4 = vcmp.ge.f32.partialorder %v407_v4, 0.0  ;;  %v471_v9 = vmul.f32 0.1, %v407_v4  ;;  %v487_v14 = vsel %vm423_vm2, %v391_v2, %v455_v6  ;;  %v512_v16 = vsel %vm511_vm0, %v479_v10, -inf  ;;  %v394_v21 = vld [vmem:[%s1820_s28 + $0x58] sm:$0xff]  ;;  %v401_v5 = vld [vmem:[%s1820_s28 + $0x90] sm:$0xff] }
  0x16   : > { %v495_v15 = vsel %vm431_vm3, %v399_v3, %v463_v7  ;;  %v513_v18 = vsel %vm511_vm0, %v487_v14, -inf  ;;  %vm440_vm8 = vcmp.ge.f32.partialorder %v408_v13, 0.0  ;;  %v448_v24 = vmul.f32 0.1, %v384_v8  ;;  %v402_v30 = vld [vmem:[%s1820_s28 + $0x98] sm:$0xff]  ;;  %v385_v3 = vld [vmem:[%s1820_s28 + $0x10] sm:$0xff] }
  0x17   : > { %v503_v17 = vsel %vm439_vm4, %v407_v4, %v471_v9  ;;  %v515_v19 = vsel %vm511_vm0, %v495_v15, -inf  ;;  %v514_v22 = vmax.f32 %v512_v16, %v513_v18  ;;  %v456_v25 = vmul.f32 0.1, %v392_v11  ;;  %v410_v31 = vld [vmem:[%s1820_s28 + $0xd8] sm:$0xff]  ;;  %v393_v4 = vld [vmem:[%s1820_s28 + $0x50] sm:$0xff]  ;;  %v1858_v16 = vld [vmem:[%s1820_s28 + $0x28] sm:$0xff] }
  0x18   : > { %v517_v23 = vsel %vm511_vm0, %v503_v17, -inf  ;;  %v464_v26 = vmul.f32 0.1, %v400_v12  ;;  %v472_v27 = vmul.f32 0.1, %v408_v13  ;;  %v480_v29 = vsel %vm416_vm5, %v384_v8, %v448_v24 }
  0x19   : > { %v516_v28 = vmax.f32 %v514_v22, %v515_v19  ;;  %vm418_vm9 = vcmp.ge.f32.partialorder %v386_v20, 0.0  ;;  %vm426_vm10 = vcmp.ge.f32.partialorder %v394_v21, 0.0  ;;  %v488_v32 = vsel %vm424_vm6, %v392_v11, %v456_v25 }
  0x1a   : > { %v496_v33 = vsel %vm432_vm7, %v400_v12, %v464_v26  ;;  %v504_v34 = vsel %vm440_vm8, %v408_v13, %v472_v27  ;;  %v519_v35 = vsel %vm511_vm0, %v480_v29, -inf  ;;  %v520_v37 = vsel %vm511_vm0, %v488_v32, -inf  ;;  %v409_v12 = vld [vmem:[%s1820_s28 + $0xd0] sm:$0xff] }
  0x1b   : > { %v518_v36 = vmax.f32 %v516_v28, %v517_v23  ;;  %v522_v38 = vsel %vm511_vm0, %v496_v33, -inf  ;;  %v524_v39 = vsel %vm511_vm0, %v504_v34, -inf  ;;  %v521_v40 = vmax.f32 %v519_v35, %v520_v37 }
  0x1c   : > { %vm434_vm11 = vcmp.ge.f32.partialorder %v402_v30, 0.0  ;;  %vm442_vm12 = vcmp.ge.f32.partialorder %v410_v31, 0.0  ;;  %v450_v41 = vmul.f32 0.1, %v386_v20  ;;  %v458_v47 = vmul.f32 0.1, %v394_v21 }
  0x1d   : > { %v568_v42 = vsub.f32 %v479_v10, %v518_v36  ;;  %v576_v43 = vsub.f32 %v487_v14, %v518_v36  ;;  %v584_v44 = vsub.f32 %v495_v15, %v518_v36  ;;  %v592_v45 = vsub.f32 %v503_v17, %v518_v36  ;;  %v396_v36 = vld [vmem:[%s1820_s28 + $0x68] sm:$0xff] }
  0x1e   : > { %v523_v46 = vmax.f32 %v521_v40, %v522_v38  ;;  %v466_v48 = vmul.f32 0.1, %v402_v30  ;;  %v474_v49 = vmul.f32 0.1, %v410_v31  ;;  %v482_v53 = vsel %vm418_vm9, %v386_v20, %v450_v41  ;;  %v404_v41 = vld [vmem:[%s1820_s28 + $0xa8] sm:$0xff] }
  0x1f   : > { %v600_v50 = vmul.f32 1.442695, %v568_v42  ;;  %v616_v51 = vmul.f32 1.442695, %v576_v43  ;;  %v632_v52 = vmul.f32 1.442695, %v584_v44  ;;  %v490_v56 = vsel %vm426_vm10, %v394_v21, %v458_v47 }
  0x20   : > { %v648_v54 = vmul.f32 1.442695, %v592_v45  ;;  %v525_v55 = vmax.f32 %v523_v46, %v524_v39  ;;  %v498_v57 = vsel %vm434_vm11, %v402_v30, %v466_v48  ;;  %v506_v58 = vsel %vm442_vm12, %v410_v31, %v474_v49  ;;  %v412_v42 = vld [vmem:[%s1820_s28 + $0xe8] sm:$0xff] }
  0x21   : > { %1655 = vpow2.f32 %v600_v50  ;;  %v533_v59 = vsel %vm511_vm0, %v482_v53, -inf  ;;  %v534_v60 = vsel %vm511_vm0, %v490_v56, -inf  ;;  %v536_v2 = vsel %vm511_vm0, %v498_v57, -inf }
  0x22   : > { %1657 = vpow2.f32 %v616_v51  ;;  %v569_v61 = vsub.f32 %v480_v29, %v525_v55  ;;  %v577_v62 = vsub.f32 %v488_v32, %v525_v55  ;;  %v585_v63 = vsub.f32 %v496_v33, %v525_v55 }
  0x23   : > { %1659 = vpow2.f32 %v632_v52  ;;  %v593_v0 = vsub.f32 %v504_v34, %v525_v55  ;;  %v535_v1 = vmax.f32 %v533_v59, %v534_v60  ;;  %v538_v11 = vsel %vm511_vm0, %v506_v58, -inf }
  0x24   : > { %1661 = vpow2.f32 %v648_v54  ;;  %v602_v6 = vmul.f32 1.442695, %v569_v61  ;;  %v618_v7 = vmul.f32 1.442695, %v577_v62  ;;  %v634_v8 = vmul.f32 1.442695, %v585_v63 }
  0x25   : > { %v650_v9 = vmul.f32 1.442695, %v593_v0  ;;  %v537_v10 = vmax.f32 %v535_v1, %v536_v2  ;;  %vm417_vm13 = vcmp.ge.f32.partialorder %v385_v3, 0.0  ;;  %vm425_vm14 = vcmp.ge.f32.partialorder %v393_v4, 0.0 }
  0x26   : > { %1663 = vpow2.f32 %v602_v6  ;;  %vm433_vm15 = vcmp.ge.f32.partialorder %v401_v5, 0.0  ;;  %v449_v14 = vmul.f32 0.1, %v385_v3  ;;  %v457_v15 = vmul.f32 0.1, %v393_v4 }
  0x27   : > { %1665 = vpow2.f32 %v618_v7  ;;  %v539_v13 = vmax.f32 %v537_v10, %v538_v11  ;;  %vm441_vm1 = vcmp.ge.f32.partialorder %v409_v12, 0.0  ;;  %v465_v17 = vmul.f32 0.1, %v401_v5 }
  0x28   : > { %1667 = vpow2.f32 %v634_v8  ;;  %v473_v18 = vmul.f32 0.1, %v409_v12  ;;  %v481_v23 = vsel %vm417_vm13, %v385_v3, %v449_v14  ;;  %v489_v24 = vsel %vm425_vm14, %v393_v4, %v457_v15 }
  0x29   : > { %1669 = vpow2.f32 %v650_v9  ;;  %v571_v19 = vsub.f32 %v482_v53, %v539_v13  ;;  %v579_v20 = vsub.f32 %v490_v56, %v539_v13  ;;  %v587_v21 = vsub.f32 %v498_v57, %v539_v13 }
  0x2a   : > { %v595_v22 = vsub.f32 %v506_v58, %v539_v13  ;;  %v497_v25 = vsel %vm433_vm15, %v401_v5, %v465_v17  ;;  %vm420_vm2 = vcmp.ge.f32.partialorder %v1858_v16, 0.0  ;;  %v505_v30 = vsel %vm441_vm1, %v409_v12, %v473_v18 }
  0x2b   : > { %v1864_v26 = vpop.eup %1655  ;;  %v606_v27 = vmul.f32 1.442695, %v571_v19  ;;  %v622_v28 = vmul.f32 1.442695, %v579_v20  ;;  %v638_v29 = vmul.f32 1.442695, %v587_v21 }
  0x2c   : > { %v1867_v31 = vpop.eup %1657  ;;  %v664_v32 = vsel %vm511_vm0, %v1864_v26, 0.0  ;;  %v654_v33 = vmul.f32 1.442695, %v595_v22  ;;  %v526_v34 = vsel %vm511_vm0, %v481_v23, -inf  ;;  %v527_v35 = vsel %vm511_vm0, %v489_v24, -inf }
  0x2d   : > { %v1874_v37 = vpop.eup %1659  ;;  %v665_v38 = vsel %vm511_vm0, %v1867_v31, 0.0  ;;  %1671 = vpow2.f32 %v606_v27  ;;  %v528_v39 = vmax.f32 %v526_v34, %v527_v35  ;;  %v529_v40 = vsel %vm511_vm0, %v497_v25, -inf  ;;  %v411_v35 = vld [vmem:[%s1820_s28 + $0xe0] sm:$0xff] }
  0x2e   : > { %v1881_v43 = vpop.eup %1661  ;;  %v666_v44 = vadd.f32 %v665_v38, %v664_v32  ;;  %v667_v45 = vsel %vm511_vm0, %v1874_v37, 0.0  ;;  %1673 = vpow2.f32 %v622_v28  ;;  %v531_v46 = vsel %vm511_vm0, %v505_v30, -inf  ;;  %v403_v32 = vld [vmem:[%s1820_s28 + $0xa0] sm:$0xff] }
  0x2f   : > { %v669_v47 = vsel %vm511_vm0, %v1881_v43, 0.0  ;;  %1675 = vpow2.f32 %v638_v29  ;;  %v530_v48 = vmax.f32 %v528_v39, %v529_v40  ;;  %vm428_vm3 = vcmp.ge.f32.partialorder %v396_v36, 0.0 }
  0x30   : > { %v1888_v49 = vpop.eup %1663  ;;  %v668_v50 = vadd.f32 %v667_v45, %v666_v44  ;;  %1677 = vpow2.f32 %v654_v33  ;;  %vm436_vm4 = vcmp.ge.f32.partialorder %v404_v41, 0.0  ;;  %vm444_vm5 = vcmp.ge.f32.partialorder %v412_v42, 0.0 }
  0x31   : > { %v1890_v51 = vpop.eup %1665  ;;  %v671_v52 = vsel %vm511_vm0, %v1888_v49, 0.0  ;;  %v532_v53 = vmax.f32 %v530_v48, %v531_v46  ;;  %v452_v54 = vmul.f32 0.1, %v1858_v16  ;;  %v460_v55 = vmul.f32 0.1, %v396_v36 }
  0x32   : > { %v1895_v56 = vpop.eup %1667  ;;  %v670_v57 = vadd.f32 %v669_v47, %v668_v50  ;;  %v672_v58 = vsel %vm511_vm0, %v1890_v51, 0.0  ;;  %v468_v59 = vmul.f32 0.1, %v404_v41  ;;  %v476_v60 = vmul.f32 0.1, %v412_v42 }
  0x33   : > { %v1899_v61 = vpop.eup %1669  ;;  %v673_v62 = vadd.f32 %v672_v58, %v671_v52  ;;  %v674_v63 = vsel %vm511_vm0, %v1895_v56, 0.0  ;;  %v570_v0 = vsub.f32 %v481_v23, %v532_v53  ;;  %v578_v1 = vsub.f32 %v489_v24, %v532_v53  ;;  %v387_v24 = vld [vmem:[%s1820_s28 + $0x20] sm:$0xff] }
  0x34   : > { %1679 = vrcp.f32 %v670_v57  ;;  %v676_v2 = vsel %vm511_vm0, %v1899_v61, 0.0  ;;  %v586_v3 = vsub.f32 %v497_v25, %v532_v53  ;;  %v594_v4 = vsub.f32 %v505_v30, %v532_v53  ;;  %v395_v30 = vld [vmem:[%s1820_s28 + $0x60] sm:$0xff] }
  0x35   : > { %v675_v5 = vadd.f32 %v674_v63, %v673_v62  ;;  %v604_v6 = vmul.f32 1.442695, %v570_v0  ;;  %v620_v7 = vmul.f32 1.442695, %v578_v1  ;;  %v484_v8 = vsel %vm420_vm2, %v1858_v16, %v452_v54 }
  0x36   : > { %v636_v9 = vmul.f32 1.442695, %v586_v3  ;;  %v652_v10 = vmul.f32 1.442695, %v594_v4  ;;  %v492_v11 = vsel %vm428_vm3, %v396_v36, %v460_v55  ;;  %v500_v12 = vsel %vm436_vm4, %v404_v41, %v468_v59 }
  0x37   : > { %v1910_v13 = vpop.eup %1671  ;;  %v677_v14 = vadd.f32 %v676_v2, %v675_v5  ;;  %1681 = vpow2.f32 %v604_v6  ;;  %v508_v15 = vsel %vm444_vm5, %v412_v42, %v476_v60  ;;  %v547_v17 = vsel %vm511_vm0, %v484_v8, -inf }
  0x38   : > { %v1914_v18 = vpop.eup %1673  ;;  %v685_v16 = vsel %vm511_vm0, %v1910_v13, 0.0  ;;  %1683 = vpow2.f32 %v620_v7  ;;  %v548_v19 = vsel %vm511_vm0, %v492_v11, -inf  ;;  %v550_v20 = vsel %vm511_vm0, %v500_v12, -inf }
  0x39   : > { %v1920_v21 = vpop.eup %1675  ;;  %1685 = vrcp.f32 %v677_v14  ;;  %v686_v22 = vsel %vm511_vm0, %v1914_v18, 0.0  ;;  %v549_v23 = vmax.f32 %v547_v17, %v548_v19  ;;  %v552_v29 = vsel %vm511_vm0, %v508_v15, -inf  ;;  %v398_v14 = vld [vmem:[%s1820_s28 + $0x78] sm:$0xff] }
  0x3a   : > { %v1925_v25 = vpop.eup %1677  ;;  %v687_v27 = vadd.f32 %v686_v22, %v685_v16  ;;  %v688_v28 = vsel %vm511_vm0, %v1920_v21, 0.0  ;;  %1687 = vpow2.f32 %v636_v9  ;;  %vm419_vm6 = vcmp.ge.f32.partialorder %v387_v24, 0.0  ;;  %v390_v9 = vld [vmem:[%s1820_s28 + $0x38] sm:$0xff] }
  0x3b   : > { %v690_v33 = vsel %vm511_vm0, %v1925_v25, 0.0  ;;  %1689 = vpow2.f32 %v652_v10  ;;  %v551_v34 = vmax.f32 %v549_v23, %v550_v20  ;;  %v451_v38 = vmul.f32 0.1, %v387_v24  ;;  %v406_v17 = vld [vmem:[%s1820_s28 + $0xb8] sm:$0xff] }
  0x3c   : > { %v689_v36 = vadd.f32 %v688_v28, %v687_v27  ;;  %v459_v40 = vmul.f32 0.1, %v395_v30  ;;  %v467_v41 = vmul.f32 0.1, %v403_v32  ;;  %vm427_vm7 = vcmp.ge.f32.partialorder %v395_v30, 0.0  ;;  %v414_v16 = vld [vmem:[%s1820_s28 + $0xf8] sm:$0xff] }
  0x3d   : > { %v553_v39 = vmax.f32 %v551_v34, %v552_v29  ;;  %vm435_vm8 = vcmp.ge.f32.partialorder %v403_v32, 0.0  ;;  %vm443_vm9 = vcmp.ge.f32.partialorder %v411_v35, 0.0  ;;  %v475_v47 = vmul.f32 0.1, %v411_v35 }
  0x3e   : > { %v1935_v42 = vpop.eup %1679  ;;  %v691_v44 = vadd.f32 %v690_v33, %v689_v36  ;;  %v1941_v48 = vsel %vm419_vm6, %v387_v24, %v451_v38  ;;  %v1945_v57 = vsel %vm427_vm7, %v395_v30, %v459_v40  ;;  %v1947_v58 = vsel %vm435_vm8, %v403_v32, %v467_v41  ;;  %v1978_v24 = vld [vmem:[%s1820_s28 + $0x30] sm:$0xff] }
  0x3f   : > { %v736_v45 = vmul.f32 %v1935_v42, %v1867_v31  ;;  %v728_v46 = vmul.f32 %v1935_v42, %v1864_v26  ;;  %v573_v50 = vsub.f32 %v484_v8, %v553_v39  ;;  %v581_v52 = vsub.f32 %v492_v11, %v553_v39 }
  0x40   : > { %1691 = vrcp.f32 %v691_v44  ;;  %v589_v53 = vsub.f32 %v500_v12, %v553_v39  ;;  %v597_v55 = vsub.f32 %v508_v15, %v553_v39  ;;  %v540_v62 = vsel %vm511_vm0, %v1941_v48, -inf  ;;  %v397_v44 = vld [vmem:[%s1820_s28 + $0x70] sm:$0xff] }
  0x41   : > { %v1943_v54 = vpop.eup %1681  ;;  %851 = vperm.xlu1 %1649, %v736_v45   ;;  %778 = vperm.xlu0 %1648, %v728_v46   ;;  %v610_v59 = vmul.f32 1.442695, %v573_v50  ;;  %v626_v60 = vmul.f32 1.442695, %v581_v52  ;;  %v507_v2 = vsel %vm443_vm9, %v411_v35, %v475_v47  ;;  %v541_v3 = vsel %vm511_vm0, %v1945_v57, -inf  ;;  %v405_v47 = vld [vmem:[%s1820_s28 + $0xb0] sm:$0xff] }
  0x42   : > { %v1949_v31 = vpop.eup %1683  ;;  %v678_v26 = vsel %vm511_vm0, %v1943_v54, 0.0  ;;  %v642_v1 = vmul.f32 1.442695, %v589_v53  ;;  %v658_v8 = vmul.f32 1.442695, %v597_v55  ;;  %v542_v12 = vmax.f32 %v540_v62, %v541_v3 }
  0x43   : > { %v1686_v63 = vpop.eup %1685  ;;  %v679_v0 = vsel %vm511_vm0, %v1949_v31, 0.0  ;;  %1693 = vpow2.f32 %v610_v59  ;;  %v545_v20 = vsel %vm511_vm0, %v507_v2, -inf  ;;  %vm422_vm10 = vcmp.ge.f32.partialorder %v390_v9, 0.0 }
  0x44   : > { %v1960_v4 = vpop.eup %1687  ;;  %v737_v5 = vmul.f32 %v1686_v63, %v1890_v51  ;;  %v729_v6 = vmul.f32 %v1686_v63, %v1888_v49  ;;  %v680_v7 = vadd.f32 %v679_v0, %v678_v26  ;;  %1695 = vpow2.f32 %v626_v60  ;;  %v413_v0 = vld [vmem:[%s1820_s28 + $0xf0] sm:$0xff]  ;;  %s381_s28 = scalar_lea.vmem %s2189_s6, %s1469_s25 }
  0x45   : > { %v1965_v10 = vpop.eup %1689  ;;  %v681_v11 = vsel %vm511_vm0, %v1960_v4, 0.0  ;;  %v543_v49 = vsel %vm511_vm0, %v1947_v58, -inf  ;;  %1697 = vpow2.f32 %v642_v1  ;;  %vm430_vm11 = vcmp.ge.f32.partialorder %v398_v14, 0.0 }
  0x46   : > { %856 = vperm.xlu1 %1649, %v737_v5   ;;  %783 = vperm.xlu0 %1648, %v729_v6   ;;  %v682_v15 = vadd.f32 %v681_v11, %v680_v7  ;;  %v683_v51 = vsel %vm511_vm0, %v1965_v10, 0.0  ;;  %v544_v19 = vmax.f32 %v542_v12, %v543_v49  ;;  %1699 = vpow2.f32 %v658_v8 }
  0x47   : > { %v454_v23 = vmul.f32 0.1, %v390_v9  ;;  %v462_v28 = vmul.f32 0.1, %v398_v14  ;;  %v470_v29 = vmul.f32 0.1, %v406_v17  ;;  %v745_v36 = vmul.f32 %v1686_v63, %v1895_v56 }
  0x48   : > { %v684_v22 = vadd.f32 %v683_v51, %v682_v15  ;;  %v546_v27 = vmax.f32 %v544_v19, %v545_v20  ;;  %v478_v30 = vmul.f32 0.1, %v414_v16  ;;  %vm438_vm12 = vcmp.ge.f32.partialorder %v406_v17, 0.0 }
  0x49   : > { %vm446_vm13 = vcmp.ge.f32.partialorder %v414_v16, 0.0  ;;  %v1982_v33 = vsel %vm422_vm10, %v390_v9, %v454_v23  ;;  %vm421_vm14 = vcmp.ge.f32.partialorder %v1978_v24, 0.0  ;;  %v494_v45 = vsel %vm430_vm11, %v398_v14, %v462_v28 }
  0x4a   : > { %v1980_v32 = vpop.eup %1691  ;;  %1701 = vrcp.f32 %v684_v22  ;;  %v572_v38 = vsub.f32 %v1941_v48, %v546_v27  ;;  %v580_v39 = vsub.f32 %v1945_v57, %v546_v27  ;;  %v588_v40 = vsub.f32 %v1947_v58, %v546_v27 }
  0x4b   : > { %v731_v34 = vmul.f32 %v1980_v32, %v1910_v13  ;;  %v739_v35 = vmul.f32 %v1980_v32, %v1914_v18  ;;  %v596_v41 = vsub.f32 %v507_v2, %v546_v27  ;;  %v502_v46 = vsel %vm438_vm12, %v406_v17, %v470_v29 }
  0x4c   : > { %v510_v13 = vsel %vm446_vm13, %v414_v16, %v478_v30  ;;  %v561_v18 = vsel %vm511_vm0, %v1982_v33, -inf  ;;  %v1999_v56 = vmul.f32 %v1686_v63, %v1899_v61  ;;  %v608_v50 = vmul.f32 1.442695, %v572_v38 }
  0x4d   : > { %793 = vperm.xlu1 %1649, %v731_v34   ;;  %v624_v48 = vmul.f32 1.442695, %v580_v39  ;;  %v640_v52 = vmul.f32 1.442695, %v588_v40  ;;  %v2001_v53 = vpop.eup %1693  ;;  %v656_v55 = vmul.f32 1.442695, %v596_v41  ;;  %v747_v17 = vmul.f32 %v1980_v32, %v1920_v21 }
  0x4e   : > { %v562_v57 = vsel %vm511_vm0, %v494_v45, -inf  ;;  %v564_v58 = vsel %vm511_vm0, %v502_v46, -inf  ;;  %vm429_vm15 = vcmp.ge.f32.partialorder %v397_v44, 0.0  ;;  %v2005_v26 = vpop.eup %1695  ;;  %v699_v59 = vsel %vm511_vm0, %v2001_v53, 0.0 }
  0x4f   : > { %1703 = vpow2.f32 %v608_v50  ;;  %v563_v61 = vmax.f32 %v561_v18, %v562_v57  ;;  %v566_v60 = vsel %vm511_vm0, %v510_v13, -inf  ;;  %v2010_v62 = vpop.eup %1697  ;;  %v700_v63 = vsel %vm511_vm0, %v2005_v26, 0.0 }
  0x50   : > { %1705 = vpow2.f32 %v624_v48  ;;  %vm437_vm1 = vcmp.ge.f32.partialorder %v405_v47, 0.0  ;;  %v453_v1 = vmul.f32 0.1, %v1978_v24  ;;  %v2016_v2 = vpop.eup %1699  ;;  %v701_v3 = vadd.f32 %v700_v63, %v699_v59 }
  0x51   : > { %866 = vperm.xlu1 %1649, %v739_v35   ;;  %v702_v5 = vsel %vm511_vm0, %v2010_v62, 0.0  ;;  %1707 = vpow2.f32 %v640_v52  ;;  %v565_v6 = vmax.f32 %v563_v61, %v564_v58  ;;  %v704_v7 = vsel %vm511_vm0, %v2016_v2, 0.0 }
  0x52   : > { %1709 = vpow2.f32 %v656_v55  ;;  %v461_v8 = vmul.f32 0.1, %v397_v44  ;;  %v469_v9 = vmul.f32 0.1, %v405_v47  ;;  %v703_v12 = vadd.f32 %v702_v5, %v701_v3 }
  0x53   : > { %v567_v14 = vmax.f32 %v565_v6, %v566_v60  ;;  %vm445_vm2 = vcmp.ge.f32.partialorder %v413_v0, 0.0  ;;  %v477_v15 = vmul.f32 0.1, %v413_v0  ;;  %v485_v16 = vsel %vm421_vm14, %v1978_v24, %v453_v1 }
  0x54   : > { %v2022_v11 = vpop.eup %1701  ;;  %v705_v19 = vadd.f32 %v704_v7, %v703_v12  ;;  %v501_v28 = vsel %vm437_vm1, %v405_v47, %v469_v9  ;;  %v554_v24 = vsel %vm511_vm0, %v485_v16, -inf  ;;  %v744_v40 = vmul.f32 %v1935_v42, %v1874_v37 }
  0x55   : > { %v730_v51 = vmul.f32 %v2022_v11, %v1943_v54  ;;  %v738_v49 = vmul.f32 %v2022_v11, %v1949_v31  ;;  %929 = vperm.xlu1 %1649, %v745_v36   ;;  %v575_v20 = vsub.f32 %v1982_v33, %v567_v14  ;;  %v583_v22 = vsub.f32 %v494_v45, %v567_v14 }
  0x56   : > { %v591_v23 = vsub.f32 %v502_v46, %v567_v14  ;;  %v599_v27 = vsub.f32 %v510_v13, %v567_v14  ;;  %v493_v54 = vsel %vm429_vm15, %v397_v44, %v461_v8  ;;  %v509_v31 = vsel %vm445_vm2, %v413_v0, %v477_v15 }
  0x57   : > { %788 = vperm.xlu0 %1648, %v730_v51   ;;  %1711 = vrcp.f32 %v705_v19  ;;  %v614_v29 = vmul.f32 1.442695, %v575_v20  ;;  %v630_v30 = vmul.f32 1.442695, %v583_v22  ;;  %v555_v35 = vsel %vm511_vm0, %v493_v54, -inf }
  0x58   : > { %v646_v21 = vmul.f32 1.442695, %v591_v23  ;;  %v662_v34 = vmul.f32 1.442695, %v599_v27  ;;  %v557_v33 = vsel %vm511_vm0, %v501_v28, -inf  ;;  %v556_v38 = vmax.f32 %v554_v24, %v555_v35 }
  0x59   : > { %939 = vperm.xlu1 %1649, %v747_v17   ;;  %v2039_v36 = vpop.eup %1703  ;;  %1713 = vpow2.f32 %v614_v29  ;;  %v559_v44 = vsel %vm511_vm0, %v509_v31, -inf  ;;  %v755_v37 = vmul.f32 %v1980_v32, %v1925_v25  ;;  %v746_v55 = vmul.f32 %v2022_v11, %v1960_v4 }
  0x5a   : > { %v2041_v39 = vpop.eup %1705  ;;  %v692_v41 = vsel %vm511_vm0, %v2039_v36, 0.0  ;;  %1715 = vpow2.f32 %v630_v30  ;;  %v558_v13 = vmax.f32 %v556_v38, %v557_v33  ;;  %v752_v1 = vmul.f32 %v1935_v42, %v1881_v43 }
  0x5b   : > { %861 = vperm.xlu0 %1648, %v738_v49   ;;  %v2048_v45 = vpop.eup %1707  ;;  %v693_v46 = vsel %vm511_vm0, %v2041_v39, 0.0  ;;  %1717 = vpow2.f32 %v646_v21  ;;  %v754_v43 = vmul.f32 %v2022_v11, %v1965_v10  ;;  %vm1123_vm3 = vcmask 130048  }
  0x5c   : > { %v2052_v18 = vpop.eup %1709  ;;  %v694_v47 = vadd.f32 %v693_v46, %v692_v41  ;;  %v695_v50 = vsel %vm511_vm0, %v2048_v45, 0.0  ;;  %1719 = vpow2.f32 %v662_v34  ;;  %v560_v52 = vmax.f32 %v558_v13, %v559_v44 }
  0x5d   : > { %1002 = vperm.xlu1 %1649, %v1999_v56   ;;  %v697_v48 = vsel %vm511_vm0, %v2052_v18, 0.0  ;;  %vm1229_vm4 = vcmask 60416   ;;  %vm1288_vm5 = vcmask 1040384   ;;  %vm1290_vm6 = vcmask 58368  }
  0x5e   : > { %v696_v57 = vadd.f32 %v695_v50, %v694_v47  ;;  %v574_v58 = vsub.f32 %v485_v16, %v560_v52  ;;  %v582_v59 = vsub.f32 %v493_v54, %v560_v52  ;;  %v590_v56 = vsub.f32 %v501_v28, %v560_v52 }
  0x5f   : > { %924 = vperm.xlu0 %1648, %v744_v40   ;;  %v598_v61 = vsub.f32 %v509_v31, %v560_v52 }
  0x60   : > { %v698_v25 = vadd.f32 %v697_v48, %v696_v57  ;;  %v612_v60 = vmul.f32 1.442695, %v574_v58  ;;  %v628_v63 = vmul.f32 1.442695, %v582_v59  ;;  %v644_v0 = vmul.f32 1.442695, %v590_v56 }
  0x61   : > { %1012 = vperm.xlu1 %1649, %v755_v37   ;;  %v1712_v32 = vpop.eup %1711  ;;  %v660_v5 = vmul.f32 1.442695, %v598_v61  ;;  %v1527_v57 = vld [vmem:[%s2087_s8] sm:$0xff]  }
  0x62   : > { %v733_v3 = vmul.f32 %v1712_v32, %v2001_v53  ;;  %1721 = vrcp.f32 %v698_v25  ;;  %v741_v7 = vmul.f32 %v1712_v32, %v2005_v26  ;;  %v749_v24 = vmul.f32 %v1712_v32, %v2010_v62  ;;  %v1597_v58 = vld [vmem:[%s2087_s8 + $0x40] sm:$0xff]   ;;  %v1594_v25 = vld [vmem:[%s2087_s8 + $0x28] sm:$0xff]  }
  0x63   : > { %934 = vperm.xlu0 %1648, %v746_v55   ;;  %v1714_v4 = vpop.eup %1713  ;;  %1723 = vpow2.f32 %v612_v60  ;;  %v1593_v55 = vld [vmem:[%s2087_s8 + $0x20] sm:$0xff]   ;;  %v1529_v56 = vunpack.c.h.bf16 %v1527_v57  ;;  %v1561_v60 = vunpack.c.h.bf16 %v1597_v58 }
  0x64   : > { %v1716_v6 = vpop.eup %1715  ;;  %v713_v8 = vsel %vm511_vm0, %v1714_v4, 0.0  ;;  %1725 = vpow2.f32 %v628_v63  ;;  %v1545_v59 = vunpack.c.h.bf16 %v1593_v55  ;;  %v1544_v63 = vunpack.c.l.bf16 %v1593_v55 }
  0x65   : > { %803 = vperm.xlu1 %1649, %v733_v3   ;;  %v1718_v9 = vpop.eup %1717  ;;  %v714_v12 = vsel %vm511_vm0, %v1716_v6, 0.0  ;;  %1727 = vpow2.f32 %v644_v0  ;;  %v1528_v0 = vunpack.c.l.bf16 %v1527_v57 }
  0x66   : > { %v1720_v14 = vpop.eup %1719  ;;  %v715_v42 = vadd.f32 %v714_v12, %v713_v8  ;;  %v716_v53 = vsel %vm511_vm0, %v1718_v9, 0.0  ;;  %1729 = vpow2.f32 %v660_v5  ;;  %v1560_v12 = vunpack.c.l.bf16 %v1597_v58 }
  0x67   : > { %997 = vperm.xlu0 %1648, %v752_v1   ;;  %v718_v15 = vsel %vm511_vm0, %v1720_v14, 0.0  ;;  %v1590_v1 = vld [vmem:[%s2087_s8 + $0x8] sm:$0xff]  }
  0x68   : > { %v717_v26 = vadd.f32 %v716_v53, %v715_v42  ;;  %v1602_v53 = vld [vmem:[%s2087_s8 + $0x68] sm:$0xff]  }
  0x69   : > { %876 = vperm.xlu1 %1649, %v741_v7   ;;  %v1598_v7 = vld [vmem:[%s2087_s8 + $0x48] sm:$0xff]  }
  0x6a   : > { %v719_v51 = vadd.f32 %v718_v15, %v717_v26 }
  0x6b   : > { %1007 = vperm.xlu0 %1648, %v754_v43   ;;  %v1533_v43 = vunpack.c.h.bf16 %v1590_v1 }
  0x6c   : > { %v1722_v49 = vpop.eup %1721  ;;  %1731 = vrcp.f32 %v719_v51  ;;  %v1548_v51 = vunpack.c.l.bf16 %v1594_v25 }
  0x6d   : > { %v1724_v17 = vpop.eup %1723  ;;  %v732_v16 = vmul.f32 %v1722_v49, %v2039_v36  ;;  %v740_v10 = vmul.f32 %v1722_v49, %v2041_v39  ;;  %v757_v39 = vmul.f32 %v1712_v32, %v2016_v2  ;;  %v748_v40 = vmul.f32 %v1722_v49, %v2048_v45  ;;  %v1601_v32 = vld [vmem:[%s2087_s8 + $0x60] sm:$0xff]  }
  0x6e   : > { %v1726_v19 = vpop.eup %1725  ;;  %v706_v20 = vsel %vm511_vm0, %v1724_v17, 0.0  ;;  %v756_v62 = vmul.f32 %v1722_v49, %v2052_v18  ;;  %v1565_v49 = vunpack.c.h.bf16 %v1598_v7 }
  0x6f   : > { %v1728_v22 = vpop.eup %1727  ;;  %798 = vperm.xlu0 %1648, %v732_v16   ;;  %v707_v11 = vsel %vm511_vm0, %v1726_v19, 0.0  ;;  %v1532_v16 = vunpack.c.l.bf16 %v1590_v1 }
  0x70   : > { %v1730_v23 = vpop.eup %1729  ;;  %v708_v27 = vadd.f32 %v707_v11, %v706_v20  ;;  %v709_v54 = vsel %vm511_vm0, %v1728_v22, 0.0  ;;  %v1564_v11 = vunpack.c.l.bf16 %v1598_v7 }
  0x71   : > { %v711_v28 = vsel %vm511_vm0, %v1730_v23, 0.0  ;;  %vm1095_vm0 = vcmask 64512  }
  0x72   : > { %v710_v31 = vadd.f32 %v709_v54, %v708_v27  ;;  %v1581_v27 = vunpack.c.h.bf16 %v1602_v53 }
  0x73   : > { %871 = vperm.xlu0 %1648, %v740_v10  }
  0x74   : > { %v712_v29 = vadd.f32 %v711_v28, %v710_v31 }
  0x76   : > { %v1732_v30 = vpop.eup %1731  ;;  %1733 = vrcp.f32 %v712_v29 }
  0x77   : > { %v735_v21 = vmul.f32 %v1732_v30, %v1714_v4  ;;  %v743_v34 = vmul.f32 %v1732_v30, %v1716_v6  ;;  %v751_v36 = vmul.f32 %v1732_v30, %v1718_v9  ;;  %v759_v41 = vmul.f32 %v1732_v30, %v1720_v14  ;;  %v1650_v14 = vld [vmem:[%s2186_s3] sm:$0xff]  }
  0x78   : > { %v1549_v4 = vunpack.c.h.bf16 %v1594_v25  ;;  %v1577_v9 = vunpack.c.h.bf16 %v1601_v32  ;;  %1610 = vmatprep.subr.bf16.mxu0 %v1650_v14  ;;  %1620 = vmatprep.subr.bf16.mxu1 %v1650_v14  ;;  %v1595_v25 = vld [vmem:[%s2087_s8 + $0x30] sm:$0xff]  }
  0x79   : > { %813 = vperm.xlu1 %1649, %v735_v21   ;;  %1611 = vmatpush3.bf16.msra.mxu0 %v1650_v14  ;;  %v1552_v7 = vunpack.c.l.bf16 %v1595_v25 }
  0x7a   : > { %1621 = vmatpush3.bf16.msra.mxu1 %v1650_v14 }
  0x7d   : > { %886 = vperm.xlu1 %1649, %v743_v34  }
  0x80   : > { %v1734_v35 = vpop.eup %1733 }
  0x81   : > { %v734_v33 = vmul.f32 %v1734_v35, %v1724_v17  ;;  %949 = vperm.xlu1 %1649, %v749_v24   ;;  %v742_v38 = vmul.f32 %v1734_v35, %v1726_v19  ;;  %v750_v44 = vmul.f32 %v1734_v35, %v1728_v22  ;;  %v758_v46 = vmul.f32 %v1734_v35, %v1730_v23 }
  0x82   : > { %v1576_v23 = vunpack.c.l.bf16 %v1601_v32 }
  0x83   : > { %808 = vperm.xlu0 %1648, %v734_v33  }
  0x85   : > { %959 = vperm.xlu1 %1649, %v751_v36   ;;  %v1580_v36 = vunpack.c.l.bf16 %v1602_v53 }
  0x87   : > { %881 = vperm.xlu0 %1648, %v742_v38  }
  0x89   : > { %1022 = vperm.xlu1 %1649, %v757_v39  }
  0x8b   : > { %944 = vperm.xlu0 %1648, %v748_v40  }
  0x8d   : > { %1032 = vperm.xlu1 %1649, %v759_v41  }
  0x8f   : > { %954 = vperm.xlu0 %1648, %v750_v44  }
  0x93   : > { %1017 = vperm.xlu0 %1648, %v756_v62  }
  0x97   : > { %1027 = vperm.xlu0 %1648, %v758_v46  }
  0xc0   : > { %v852_v13 = vpop.permute.xlu1 %851  ;;  %v779_v47 = vpop.permute.xlu0 %778 }
  0xc1   : > { %v889_v15 = vmul.f32 %v1544_v63, %v852_v13  ;;  %v816_v26 = vmul.f32 %v1528_v0, %v779_v47  ;;  %v1599_v63 = vld [vmem:[%s2087_s8 + $0x50] sm:$0xff]   ;;  %v1553_v0 = vunpack.c.h.bf16 %v1595_v25 }
  0xc3   : > { %v897_v29 = vadd.f32 %v889_v15, %v816_v26  ;;  %v1568_v26 = vunpack.c.l.bf16 %v1599_v63 }
  0xc5   : > { %v857_v37 = vpop.permute.xlu1 %856  ;;  %v784_v2 = vpop.permute.xlu0 %783 }
  0xc6   : > { %v890_v3 = vmul.f32 %v1545_v59, %v857_v37  ;;  %v817_v5 = vmul.f32 %v1529_v56, %v784_v2 }
  0xc8   : > { %v898_v17 = vadd.f32 %v890_v3, %v817_v5  ;;  %v1596_v3 = vld [vmem:[%s2087_s8 + $0x38] sm:$0xff]   ;;  %v1603_v5 = vld [vmem:[%s2087_s8 + $0x70] sm:$0xff]  }
  0xc9   : > { %v1585_v53 = vunpack.c.h.bf16 %v1603_v5 }
  0xcc   : > { %v794_v50 = vpop.permute.xlu1 %793 }
  0xcd   : > { %v819_v54 = vmul.f32 %v1533_v43, %v794_v50  ;;  %v1600_v43 = vld [vmem:[%s2087_s8 + $0x58] sm:$0xff]  }
  0xd0   : > { %v867_v48 = vpop.permute.xlu1 %866 }
  0xd1   : > { %v892_v19 = vmul.f32 %v1549_v4, %v867_v48 }
  0xd3   : > { %v900_v24 = vadd.f32 %v892_v19, %v819_v54  ;;  %v1572_v54 = vunpack.c.l.bf16 %v1600_v43 }
  0xd4   : > { %v930_v45 = vpop.permute.xlu1 %929 }
  0xd5   : > { %v963_v42 = vmul.f32 %v1561_v60, %v930_v45  ;;  %v1591_v60 = vld [vmem:[%s2087_s8 + $0x10] sm:$0xff]  }
  0xd6   : > { %v789_v18 = vpop.permute.xlu0 %788  ;;  %v1537_v4 = vunpack.c.h.bf16 %v1591_v60  ;;  %v1536_v15 = vunpack.c.l.bf16 %v1591_v60 }
  0xd7   : > { %v971_v28 = vadd.f32 %v963_v42, %v898_v17  ;;  %v818_v34 = vmul.f32 %v1532_v16, %v789_v18  ;;  %v1604_v16 = vld [vmem:[%s2087_s8 + $0x78] sm:$0xff]  }
  0xd8   : > { %v940_v52 = vpop.permute.xlu1 %939 }
  0xd9   : > { %v965_v21 = vmul.f32 %v1565_v49, %v940_v52 }
  0xda   : > { %v862_v61 = vpop.permute.xlu0 %861 }
  0xdb   : > { %v891_v30 = vmul.f32 %v1548_v51, %v862_v61  ;;  %v973_v62 = vadd.f32 %v965_v21, %v900_v24  ;;  %v1589_v21 = vunpack.c.h.bf16 %v1604_v16 }
  0xdc   : > { %v1003_v8 = vpop.permute.xlu1 %1002 }
  0xdd   : > { %v1036_v22 = vmul.f32 %v1577_v9, %v1003_v8  ;;  %v899_v44 = vadd.f32 %v891_v30, %v818_v34  ;;  %v1592_v8 = vld [vmem:[%s2087_s8 + $0x18] sm:$0xff]   ;;  %v1584_v30 = vunpack.c.l.bf16 %v1603_v5 }
  0xde   : > { %v925_v6 = vpop.permute.xlu0 %924  ;;  %v1541_v49 = vunpack.c.h.bf16 %v1592_v8  ;;  %v1654_v5 = vld [vmem:[%s2106_s14 + $0x18] sm:$0xff]  }
  0xdf   : > { %v962_v10 = vmul.f32 %v1560_v12, %v925_v6  ;;  %v1044_v35 = vadd.f32 %v1036_v22, %v971_v28  ;;  %v1569_v6 = vunpack.c.h.bf16 %v1599_v63  ;;  %v1557_v12 = vunpack.c.h.bf16 %v1596_v3 }
  0xe0   : > { %v1013_v31 = vpop.permute.xlu1 %1012  ;;  %v1556_v22 = vunpack.c.l.bf16 %v1596_v3 }
  0xe1   : > { %v970_v38 = vadd.f32 %v962_v10, %v897_v29  ;;  %v1038_v41 = vmul.f32 %v1581_v27, %v1013_v31  ;;  %v1573_v10 = vunpack.c.h.bf16 %v1600_v43 }
  0xe2   : > { %v935_v20 = vpop.permute.xlu0 %934 }
  0xe3   : > { %v964_v39 = vmul.f32 %v1564_v11, %v935_v20  ;;  %v1046_v47 = vadd.f32 %v1038_v41, %v973_v62  ;;  %v1540_v20 = vunpack.c.l.bf16 %v1592_v8  ;;  %v1588_v62 = vunpack.c.l.bf16 %v1604_v16 }
  0xe4   : > { %v804_v45 = vpop.permute.xlu1 %803 }
  0xe5   : > { %v972_v37 = vadd.f32 %v964_v39, %v899_v44  ;;  %v821_v51 = vmul.f32 %v1537_v4, %v804_v45 }
  0xe6   : > { %v998_v33 = vpop.permute.xlu0 %997 }
  0xe7   : > { %v1035_v40 = vmul.f32 %v1576_v23, %v998_v33 }
  0xe8   : > { %v877_v52 = vpop.permute.xlu1 %876 }
  0xe9   : > { %v1043_v46 = vadd.f32 %v1035_v40, %v970_v38  ;;  %v894_v9 = vmul.f32 %v1553_v0, %v877_v52  ;;  %v1653_v0 = vld [vmem:[%s2106_s14 + $0x10] sm:$0xff]  }
  0xea   : > { %v1008_v13 = vpop.permute.xlu0 %1007 }
  0xeb   : > { %v1037_v50 = vmul.f32 %v1580_v36, %v1008_v13  ;;  %v1059_v2 = vpack.c.bf16 %v1044_v35, %v1043_v46  ;;  %v902_v11 = vadd.f32 %v894_v9, %v821_v51 }
  0xed   : > { %v1045_v48 = vadd.f32 %v1037_v50, %v972_v37  ;;  %1087 = vrot.lane.b32.xlu0 %v1059_v2, %s1760_s15 }
  0xee   : > { %v799_v55 = vpop.permute.xlu0 %798 }
  0xef   : > { %v1060_v18 = vpack.c.bf16 %v1046_v47, %v1045_v48  ;;  %v820_v31 = vmul.f32 %v1536_v15, %v799_v55 }
  0xf1   : > { %1089 = vrot.lane.b32.xlu1 %v1060_v18, %s1760_s15 }
  0xf2   : > { %v872_v58 = vpop.permute.xlu0 %871 }
  0xf3   : > { %v893_v19 = vmul.f32 %v1552_v7, %v872_v58  ;;  %v1498_v7 = vld [vmem:[%s2187_s4] ss:$0 sm:$0xff] }
  0xf5   : > { %v901_v33 = vadd.f32 %v893_v19, %v820_v31 }
  0xf8   : > { %v814_v57 = vpop.permute.xlu1 %813 }
  0xf9   : > { %v823_v34 = vmul.f32 %v1541_v49, %v814_v57 }
  0xfc   : > { %v887_v59 = vpop.permute.xlu1 %886 }
  0xfd   : > { %v896_v23 = vmul.f32 %v1557_v12, %v887_v59 }
  0xff   : > { %v904_v40 = vadd.f32 %v896_v23, %v823_v34 }
 0x100   : > { %v950_v56 = vpop.permute.xlu1 %949 }
 0x101   : > { %v967_v17 = vmul.f32 %v1569_v6, %v950_v56  ;;  %v1651_v56 = vld [vmem:[%s2106_s14] sm:$0xff]  }
 0x102   : > { %v809_v61 = vpop.permute.xlu0 %808 }
 0x103   : > { %v975_v24 = vadd.f32 %v967_v17, %v902_v11  ;;  %v822_v39 = vmul.f32 %v1540_v20, %v809_v61 }
 0x104   : > { %v960_v32 = vpop.permute.xlu1 %959 }
 0x105   : > { %v969_v38 = vmul.f32 %v1573_v10, %v960_v32  ;;  %v1652_v32 = vld [vmem:[%s2106_s14 + $0x8] sm:$0xff]  }
 0x106   : > { %v882_v1 = vpop.permute.xlu0 %881 }
 0x107   : > { %v895_v36 = vmul.f32 %v1556_v22, %v882_v1  ;;  %v977_v2 = vadd.f32 %v969_v38, %v904_v40 }
 0x108   : > { %v1023_v42 = vpop.permute.xlu1 %1022 }
 0x109   : > { %v1040_v28 = vmul.f32 %v1585_v53, %v1023_v42  ;;  %v903_v50 = vadd.f32 %v895_v36, %v822_v39 }
 0x10a   : > { %v945_v14 = vpop.permute.xlu0 %944 }
 0x10b   : > { %v966_v29 = vmul.f32 %v1568_v26, %v945_v14  ;;  %v1048_v41 = vadd.f32 %v1040_v28, %v975_v24 }
 0x10c   : > { %v1033_v35 = vpop.permute.xlu1 %1032 }
 0x10d   : > { %v974_v46 = vadd.f32 %v966_v29, %v901_v33  ;;  %v1042_v47 = vmul.f32 %v1589_v21, %v1033_v35 }
 0x10e   : > { %v955_v27 = vpop.permute.xlu0 %954 }
 0x10f   : > { %v968_v13 = vmul.f32 %v1572_v54, %v955_v27  ;;  %v1050_v52 = vadd.f32 %v1042_v47, %v977_v2 }
 0x111   : > { %v976_v18 = vadd.f32 %v968_v13, %v903_v50 }
 0x112   : > { %v1018_v44 = vpop.permute.xlu0 %1017 }
 0x113   : > { %v1039_v37 = vmul.f32 %v1584_v30, %v1018_v44 }
 0x115   : > { %v1047_v48 = vadd.f32 %v1039_v37, %v974_v46 }
 0x116   : > { %v1028_v45 = vpop.permute.xlu0 %1027 }
 0x117   : > { %v1041_v55 = vmul.f32 %v1588_v62, %v1028_v45  ;;  %v1061_v57 = vpack.c.bf16 %v1048_v41, %v1047_v48 }
 0x119   : > { %v1049_v58 = vadd.f32 %v1041_v55, %v976_v18  ;;  %1091 = vrot.lane.b32.xlu0 %v1061_v57, %s1760_s15 }
 0x11b   : > { %v1062_v59 = vpack.c.bf16 %v1050_v52, %v1049_v58 }
 0x11d   : > { %1093 = vrot.lane.b32.xlu1 %v1062_v59, %s1760_s15 }
 0x15f   : > { %v1088_v61 = vpop.permute.xlu0 %1087 }
 0x160   : > { %v1098_v25 = vsel %vm1095_vm0, %v1651_v56, %v1088_v61 }
 0x161   : > { %1612 = vmatprep.mubr.msk.bf16.mxu0 %vm1123_vm3, %v1098_v25 }
 0x163   : > { %v1090_v60 = vpop.permute.xlu1 %1089 }
 0x164   : > { %v1101_v63 = vsel %vm1095_vm0, %v1652_v32, %v1090_v60 }
 0x165   : > { %1613 = vmatmul.mubr.msk.bf16.vlgmr.msra.gmra.mrb[0].mxu0 %vm1123_vm3, %v1101_v63 }
 0x18b   : > { %v1092_v1 = vpop.permute.xlu0 %1091 }
 0x18c   : > { %v1104_v3 = vsel %vm1095_vm0, %v1653_v0, %v1092_v1 }
 0x18d   : > { %1616 = vmatprep.mubr.msk.bf16.mxu1 %vm1123_vm3, %v1104_v3 }
 0x18f   : > { %v1094_v4 = vpop.permute.xlu1 %1093 }
 0x190   : > { %v1107_v6 = vsel %vm1095_vm0, %v1654_v5, %v1094_v4 }
 0x191   : > { %1617 = vmatmul.mubr.msk.bf16.vlgmr.msra.gmra.mrb[0].mxu1 %vm1123_vm3, %v1107_v6 }
 0x238   : > { %v1614_v8 = vpop.f32.mrb[0].mxu0 }
 0x239   : > { %v1175_v9 = vadd.f32 %v1614_v8, %v1498_v7  ;;  %v1166_v12 = vpop.f32.mrb[1].mxu0 }
 0x23a   : > { %v1167_v14 = vadd.f32 %v1498_v7, %v1166_v12  ;;  %v1615_v43 = vpop.f32.mrb[2].mxu0 }
 0x23b   : > { %v1520_v42 = vpack.c.bf16 %v1175_v9, %v1175_v9  ;;  %v1178_v53 = vadd.f32 %v1615_v43, %v1498_v7  ;;  %v1169_v15 = vpop.f32.mrb[3].mxu0  ;;  %v1261_v17 = vmul.f32 %v1175_v9, %v1175_v9  ;;  %v1241_v23 = vsel %vm1095_vm0, %v1175_v9, 0.0 }
 0x23c   : > { %v1518_v26 = vpack.c.bf16 %v1167_v14, %v1167_v14  ;;  %v1259_v51 = vmul.f32 %v1167_v14, %v1167_v14  ;;  %v1170_v49 = vadd.f32 %v1498_v7, %v1169_v15  ;;  %v1238_v19 = vsel %vm1095_vm0, %v1167_v14, 0.0 }
 0x23d   : > { %1232 = vst.msk [vmem:[%s2136_s20 + $0x8] sm:$0xf] %vm1229_vm4, %v1520_v42  ;;  %v1521_v16 = vpack.c.bf16 %v1178_v53, %v1178_v53  ;;  %v1262_v54 = vmul.f32 %v1178_v53, %v1178_v53  ;;  %v1270_v30 = vsel %vm1095_vm0, %v1261_v17, 0.0  ;;  %v1243_v21 = vsel %vm1095_vm0, %v1178_v53, 0.0 }
 0x23e   : > { %1230 = vst.msk [vmem:[%s2136_s20] sm:$0xf] %vm1229_vm4, %v1518_v26  ;;  %v1519_v20 = vpack.c.bf16 %v1170_v49, %v1170_v49  ;;  %v1239_v22 = vsel %vm1095_vm0, %v1170_v49, 0.0  ;;  %v1260_v10 = vmul.f32 %v1170_v49, %v1170_v49  ;;  %v1267_v27 = vsel %vm1095_vm0, %v1259_v51, 0.0 }
 0x23f   : > { %1233 = vst.msk [vmem:[%s2136_s20 + $0xc] sm:$0xf] %vm1229_vm4, %v1521_v16  ;;  %v1240_v11 = vadd.f32 %v1239_v22, %v1238_v19  ;;  %v1272_v35 = vsel %vm1095_vm0, %v1262_v54, 0.0 }
 0x240   : > { %1231 = vst.msk [vmem:[%s2136_s20 + $0x4] sm:$0xf] %vm1229_vm4, %v1519_v20  ;;  %v1268_v28 = vsel %vm1095_vm0, %v1260_v10, 0.0 }
 0x241   : > { %v1242_v31 = vadd.f32 %v1241_v23, %v1240_v11  ;;  %v1269_v29 = vadd.f32 %v1268_v28, %v1267_v27 }
 0x243   : > { %v1271_v34 = vadd.f32 %v1270_v30, %v1269_v29  ;;  %v1244_v24 = vadd.f32 %v1243_v21, %v1242_v31 }
 0x245   : > { %v1273_v33 = vadd.f32 %v1272_v35, %v1271_v34 }
 0x264   : > { %v1618_v36 = vpop.f32.mrb[0].mxu1 }
 0x265   : > { %v1191_v38 = vadd.f32 %v1618_v36, %v1498_v7  ;;  %v1182_v39 = vpop.f32.mrb[1].mxu1 }
 0x266   : > { %v1183_v40 = vadd.f32 %v1498_v7, %v1182_v39  ;;  %v1619_v41 = vpop.f32.mrb[2].mxu1 }
 0x267   : > { %v1524_v44 = vpack.c.bf16 %v1191_v38, %v1191_v38  ;;  %v1194_v62 = vadd.f32 %v1619_v41, %v1498_v7  ;;  %v1185_v46 = vpop.f32.mrb[3].mxu1  ;;  %v1265_v55 = vmul.f32 %v1191_v38, %v1191_v38  ;;  %v1249_v56 = vsel %vm1095_vm0, %v1191_v38, 0.0 }
 0x268   : > { %v1522_v13 = vpack.c.bf16 %v1183_v40, %v1183_v40  ;;  %v1245_v37 = vsel %vm1095_vm0, %v1183_v40, 0.0  ;;  %v1263_v47 = vmul.f32 %v1183_v40, %v1183_v40  ;;  %v1186_v50 = vadd.f32 %v1498_v7, %v1185_v46 }
 0x269   : > { %1236 = vst.msk [vmem:[%s2136_s20 + $0x18] sm:$0xf] %vm1229_vm4, %v1524_v44  ;;  %v1246_v2 = vadd.f32 %v1245_v37, %v1244_v24  ;;  %v1525_v48 = vpack.c.bf16 %v1194_v62, %v1194_v62  ;;  %v1266_v61 = vmul.f32 %v1194_v62, %v1194_v62  ;;  %v1251_v60 = vsel %vm1095_vm0, %v1194_v62, 0.0 }
 0x26a   : > { %1234 = vst.msk [vmem:[%s2136_s20 + $0x10] sm:$0xf] %vm1229_vm4, %v1522_v13  ;;  %v1274_v45 = vsel %vm1095_vm0, %v1263_v47, 0.0  ;;  %v1523_v18 = vpack.c.bf16 %v1186_v50, %v1186_v50  ;;  %v1247_v52 = vsel %vm1095_vm0, %v1186_v50, 0.0  ;;  %v1264_v59 = vmul.f32 %v1186_v50, %v1186_v50 }
 0x26b   : > { %v1275_v57 = vadd.f32 %v1274_v45, %v1273_v33  ;;  %1237 = vst.msk [vmem:[%s2136_s20 + $0x1c] sm:$0xf] %vm1229_vm4, %v1525_v48  ;;  %v1248_v58 = vadd.f32 %v1247_v52, %v1246_v2  ;;  %v1278_v0 = vsel %vm1095_vm0, %v1265_v55, 0.0  ;;  %v1280_v5 = vsel %vm1095_vm0, %v1266_v61, 0.0 }
 0x26c   : > { %1235 = vst.msk [vmem:[%s2136_s20 + $0x14] sm:$0xf] %vm1229_vm4, %v1523_v18  ;;  %v1276_v32 = vsel %vm1095_vm0, %v1264_v59, 0.0 }
 0x26d   : > { %v1250_v25 = vadd.f32 %v1249_v56, %v1248_v58  ;;  %v1277_v63 = vadd.f32 %v1276_v32, %v1275_v57 }
 0x26f   : > { %v1252_v1 = vadd.f32 %v1251_v60, %v1250_v25  ;;  %v1279_v3 = vadd.f32 %v1278_v0, %v1277_v63 }
 0x271   : > { %v1253_v4 = vrot.slane %v1252_v1, 4  ;;  %v1281_v6 = vadd.f32 %v1280_v5, %v1279_v3 }
 0x273   : > { %v1254_v7 = vadd.f32 %v1253_v4, %v1252_v1  ;;  %v1282_v8 = vrot.slane %v1281_v6, 4 }
 0x275   : > { %v1255_v9 = vrot.slane %v1254_v7, 2  ;;  %v1283_v12 = vadd.f32 %v1282_v8, %v1281_v6 }
 0x277   : > { %v1256_v14 = vadd.f32 %v1255_v9, %v1254_v7  ;;  %v1284_v43 = vrot.slane %v1283_v12, 2 }
 0x279   : > { %v1257_v42 = vrot.slane %v1256_v14, 1  ;;  %v1285_v53 = vadd.f32 %v1284_v43, %v1283_v12 }
 0x27b   : > { %v1286_v15 = vrot.slane %v1285_v53, 1  ;;  %v1258_v26 = vadd.f32 %v1257_v42, %v1256_v14 }
 0x27d   : > { %v1287_v51 = vadd.f32 %v1286_v15, %v1285_v53 }
 0x27f   : > { %v1289_v49 = vsel %vm1288_vm5, %v1258_v26, %v1287_v51 }
 0x280   : > { %1291 = vst.msk [vmem:[%s381_s28] sm:$0x3] %vm1290_vm6, %v1289_v49 }
 0x281 PF: > { %s17_s23 = sadd.s32 1, %s1757_s23   ;;  %s2190_s21 = smov %s1753_s22 }
 0x282   : > { %p14_p5 = scmp.ge.s32.totalorder %s17_s23, 4   ;;  %s2191_s22 = smov %s2193_s24 }
 0x284   :  { %16 = sbr.rel (!%p14_p5) target bundleno = 2 (0x2), region = 91 }

// kernel: down_block_forward.7
= control target key start
LH: loop header
LB: loop body
LE: loop exit
PB: predicated region body
PF: predicated region fallthrough
CT: control target
= control target key end

     0   :  { %s615_s15 = smov 0   ;;  %s617_s16 = smov 0   ;;  %s683_s0 = inlined_call_operand.vmem [shape: bf16[2,64,8], index: 0, kind: input, shape index: {}]   ;;  %s684_s1 = inlined_call_operand.vmem [shape: f32[2,64,8], index: 1, kind: input, shape index: {}]   ;;  %s685_s2 = inlined_call_operand.vmem [shape: f32[1,8], index: 2, kind: input, shape index: {}]   ;;  %s686_s3 = inlined_call_operand.vmem [shape: f32[1,8], index: 3, kind: input, shape index: {}]   ;;  %s687_s4 = inlined_call_operand.vmem [shape: bf16[2,64,8], index: 4, kind: output, shape index: {}]  }
   0x1   :  { %s619_s17 = smov 0  }
   0x2 LB: > { %s26_s18 = sadd.s32 1, %s584_s16  ;;  %p493_p0 = scmp.ge.s32.totalorder %s588_s17, 1  ;;  %s588_s17 = sphi %s619_s17, %s14_s17   ;;  %s584_s16 = sphi %s617_s16, %s689_s16   ;;  %s580_s15 = sphi %s615_s15, %s688_s15  }
   0x3   : > { %p28_p1 = scmp.ge.s32.totalorder %s26_s18, 2  ;;  %p200_p2 = scmp.lt.s32.totalorder %s588_s17, 3 }
   0x5   : > { %s691_s18 = smov (%p28_p1, %s26_s18), 0  ;;  %p201_p3 = pnand %p493_p0, %p200_p2 }
   0x6   : > { %p244_p4 = scmp.lt.s32.totalorder (!%p201_p3), %s580_s15, 1  ;;  %v500_v1 = vld [vmem:[%s685_s2] ss:$0 sm:$0xff] (!%p201_p3)  ;;  %vm375_vm0 = vcmask (!%p201_p3), 60416  }
   0x7   : > { %204 = sbr.rel (%p201_p3) target bundleno = 34 (0x22), region = 36  ;;  %v501_v5 = vld [vmem:[%s686_s3] ss:$0 sm:$0xff] (!%p201_p3) }
   0xe   : > { %s693_s15 = smov (!%p244_p4, %s580_s15), 1 }
   0xf   : > { %s512_s19 = sshll.u32 %s693_s15, 5  ;;  %s513_s23 = sshll.u32 %s693_s15, 6 }
  0x10   : > { %s251_s22 = scalar_lea.vmem %s683_s0, %s512_s19  ;;  %s651_s30 = scalar_lea.vmem %s684_s1, %s513_s23 }
  0x11   : > { %v524_v0 = vld [vmem:[%s251_s22] sm:$0xff]   ;;  %v539_v4 = vld [vmem:[%s251_s22 + $0x8] sm:$0xff]   ;;  %v540_v8 = vld [vmem:[%s251_s22 + $0x10] sm:$0xff]   ;;  %s271_s7 = scalar_lea.vmem %s687_s4, %s512_s19 }
  0x12   : > { %v525_v2 = vunpack.c.l.bf16 %v524_v0  ;;  %v526_v3 = vunpack.c.h.bf16 %v524_v0  ;;  %v529_v6 = vunpack.c.l.bf16 %v539_v4  ;;  %v530_v7 = vunpack.c.h.bf16 %v539_v4  ;;  %v541_v13 = vld [vmem:[%s251_s22 + $0x18] sm:$0xff]   ;;  %v327_v22 = vld [vmem:[%s651_s30] sm:$0xff]  ;;  %v328_v23 = vld [vmem:[%s651_s30 + $0x8] sm:$0xff] }
  0x13   : > { %v533_v11 = vunpack.c.l.bf16 %v540_v8  ;;  %v534_v12 = vunpack.c.h.bf16 %v540_v8  ;;  %v537_v16 = vunpack.c.l.bf16 %v541_v13  ;;  %v538_v17 = vunpack.c.h.bf16 %v541_v13  ;;  %v329_v30 = vld [vmem:[%s651_s30 + $0x10] sm:$0xff]  ;;  %v330_v31 = vld [vmem:[%s651_s30 + $0x18] sm:$0xff]  ;;  %v331_v36 = vld [vmem:[%s651_s30 + $0x20] sm:$0xff] }
  0x14   : > { %v296_v9 = vmul.f32 %v525_v2, %v500_v1  ;;  %v297_v10 = vmul.f32 %v526_v3, %v500_v1  ;;  %v298_v14 = vmul.f32 %v529_v6, %v500_v1  ;;  %v299_v15 = vmul.f32 %v530_v7, %v500_v1  ;;  %v332_v37 = vld [vmem:[%s651_s30 + $0x28] sm:$0xff]  ;;  %v333_v44 = vld [vmem:[%s651_s30 + $0x30] sm:$0xff]  ;;  %v334_v45 = vld [vmem:[%s651_s30 + $0x38] sm:$0xff] }
  0x15   : > { %v300_v20 = vmul.f32 %v533_v11, %v500_v1  ;;  %v301_v21 = vmul.f32 %v534_v12, %v500_v1  ;;  %v302_v26 = vmul.f32 %v537_v16, %v500_v1  ;;  %v303_v27 = vmul.f32 %v538_v17, %v500_v1 }
  0x16   : > { %v311_v18 = vadd.f32 %v501_v5, %v296_v9  ;;  %v312_v19 = vadd.f32 %v501_v5, %v297_v10  ;;  %v313_v24 = vadd.f32 %v501_v5, %v298_v14  ;;  %v314_v25 = vadd.f32 %v501_v5, %v299_v15 }
  0x17   : > { %v315_v32 = vadd.f32 %v501_v5, %v300_v20  ;;  %v316_v33 = vadd.f32 %v501_v5, %v301_v21  ;;  %v317_v38 = vadd.f32 %v501_v5, %v302_v26  ;;  %v318_v39 = vadd.f32 %v501_v5, %v303_v27 }
  0x18   : > { %v319_v28 = vmax.f32 %v311_v18, 0.0  ;;  %v320_v29 = vmax.f32 %v312_v19, 0.0  ;;  %v321_v34 = vmax.f32 %v313_v24, 0.0  ;;  %v322_v35 = vmax.f32 %v314_v25, 0.0 }
  0x19   : > { %v323_v42 = vmax.f32 %v315_v32, 0.0  ;;  %v324_v43 = vmax.f32 %v316_v33, 0.0  ;;  %v325_v48 = vmax.f32 %v317_v38, 0.0  ;;  %v326_v49 = vmax.f32 %v318_v39, 0.0 }
  0x1a   : > { %v335_v40 = vadd.f32 %v327_v22, %v319_v28  ;;  %v336_v41 = vadd.f32 %v328_v23, %v320_v29  ;;  %v337_v46 = vadd.f32 %v329_v30, %v321_v34  ;;  %v338_v47 = vadd.f32 %v330_v31, %v322_v35 }
  0x1b   : > { %v339_v52 = vadd.f32 %v331_v36, %v323_v42  ;;  %v340_v53 = vadd.f32 %v332_v37, %v324_v43  ;;  %v341_v56 = vadd.f32 %v333_v44, %v325_v48  ;;  %v342_v57 = vadd.f32 %v334_v45, %v326_v49 }
  0x1c   : > { %v515_v50 = vpack.c.bf16 %v335_v40, %v335_v40  ;;  %v516_v51 = vpack.c.bf16 %v336_v41, %v336_v41  ;;  %v517_v54 = vpack.c.bf16 %v337_v46, %v337_v46  ;;  %v518_v55 = vpack.c.bf16 %v338_v47, %v338_v47 }
  0x1d   : > { %v519_v58 = vpack.c.bf16 %v339_v52, %v339_v52  ;;  %v520_v59 = vpack.c.bf16 %v340_v53, %v340_v53  ;;  %v521_v60 = vpack.c.bf16 %v341_v56, %v341_v56  ;;  %v522_v61 = vpack.c.bf16 %v342_v57, %v342_v57 }
  0x1e   : > { %376 = vst.msk [vmem:[%s271_s7] sm:$0xf] %vm375_vm0, %v515_v50  ;;  %377 = vst.msk [vmem:[%s271_s7 + $0x4] sm:$0xf] %vm375_vm0, %v516_v51 }
  0x1f   : > { %378 = vst.msk [vmem:[%s271_s7 + $0x8] sm:$0xf] %vm375_vm0, %v517_v54  ;;  %379 = vst.msk [vmem:[%s271_s7 + $0xc] sm:$0xf] %vm375_vm0, %v518_v55 }
  0x20   : > { %380 = vst.msk [vmem:[%s271_s7 + $0x10] sm:$0xf] %vm375_vm0, %v519_v58  ;;  %381 = vst.msk [vmem:[%s271_s7 + $0x14] sm:$0xf] %vm375_vm0, %v520_v59 }
  0x21   : > { %382 = vst.msk [vmem:[%s271_s7 + $0x18] sm:$0xf] %vm375_vm0, %v521_v60  ;;  %383 = vst.msk [vmem:[%s271_s7 + $0x1c] sm:$0xf] %vm375_vm0, %v522_v61 }
  0x22 PF: > { %s14_s17 = sadd.s32 1, %s588_s17   ;;  %s688_s15 = smov %s584_s16 }
  0x23   : > { %p11_p5 = scmp.ge.s32.totalorder %s14_s17, 4   ;;  %s689_s16 = smov %s691_s18 }
  0x25   :  { %13 = sbr.rel (!%p11_p5) target bundleno = 2 (0x2), region = 69 }

// kernel: down_block_forward.9
= control target key start
LH: loop header
LB: loop body
LE: loop exit
PB: predicated region body
PF: predicated region fallthrough
CT: control target
= control target key end

     0   :  { %s148_s0 = inlined_call_operand.vmem [shape: f32[32,8], index: 0, kind: input, shape index: {}]   ;;  %s149_s1 = inlined_call_operand.vmem [shape: f32[1,8], index: 1, kind: input, shape index: {}]   ;;  %s150_s2 = inlined_call_operand.vmem [shape: f32[1,8], index: 2, kind: input, shape index: {}]   ;;  %s151_s3 = inlined_call_operand.hbm [shape: f32[32,8], index: 3, kind: output, shape index: {}]  }
   0x1   :  { %v15_v0 = vld [vmem:[%s148_s0] sm:$0xff]  ;;  %v16_v4 = vld [vmem:[%s148_s0 + $0x8] sm:$0xff]  ;;  %v17_v5 = vld [vmem:[%s148_s0 + $0x10] sm:$0xff] }
   0x2   :  { %v66_v1 = vld [vmem:[%s149_s1] ss:$0 sm:$0xff]  ;;  %v18_v6 = vld [vmem:[%s148_s0 + $0x18] sm:$0xff] }
   0x3   :  { %v67_v2 = vld [vmem:[%s150_s2] ss:$0 sm:$0xff]  ;;  %v26_v3 = vmul.f32 %v66_v1, %v15_v0  ;;  %v27_v7 = vmul.f32 %v66_v1, %v16_v4  ;;  %v28_v8 = vmul.f32 %v66_v1, %v17_v5  ;;  %v29_v9 = vmul.f32 %v66_v1, %v18_v6 }
   0x4   :  { %8 = vsyncpa [#allocation3], 0  ;;  %s95_s1 = smov [#allocation2]   ;;  %vm45_vm0 = vcmask 64512  }
   0x5   :  { %v37_v10 = vadd.f32 %v67_v2, %v26_v3  ;;  %s55_s2 = sshll.u32 %s95_s1, 4  ;;  %v38_v11 = vadd.f32 %v67_v2, %v27_v7  ;;  %v39_v12 = vadd.f32 %v67_v2, %v28_v8  ;;  %v40_v13 = vadd.f32 %v67_v2, %v29_v9  ;;  %s56_s2 = int_to_ptr.vmem [resolvable:$true] %s55_s2 }
   0x6   :  { %s71_s0 = scalar_lea.vmem %s56_s2, 512  ;;  %p76_p1 = scmp.lt.s32.totalorder %s56_s2, %s56_s2 }
   0x7   :  { %v41_v14 = vmax.f32 %v37_v10, 0.0  ;;  %v42_v15 = vmax.f32 %v38_v11, 0.0  ;;  %v43_v16 = vmax.f32 %v39_v12, 0.0  ;;  %v44_v17 = vmax.f32 %v40_v13, 0.0  ;;  %p72_p0 = scmp.ne.s32.totalorder %s56_s2, %s71_s0  ;;  %p77_p2 = scmp.lt.s32.totalorder %s71_s0, %s71_s0 }
   0x9   :  { %46 = vst.msk [vmem:[#allocation2] sm:$0xff] %vm45_vm0, %v41_v14  ;;  %47 = vst.msk [vmem:[#allocation2 + $0x8] sm:$0xff] %vm45_vm0, %v42_v15  ;;  %p78_p3 = por %p77_p2, %p76_p1 }
   0xa   :  { %48 = vst.msk [vmem:[#allocation2 + $0x10] sm:$0xff] %vm45_vm0, %v43_v16  ;;  %49 = vst.msk [vmem:[#allocation2 + $0x18] sm:$0xff] %vm45_vm0, %v44_v17 }
   0xb   :  { %p79_p4 = pnand %p78_p3, %p72_p0 }
   0xd   :  { %82 = shalt.err (!%p79_p4)
}
   0xe   :  { %s83_s26 = scalar_lea.hbm %s151_s3, 512 }
   0xf   :  { %p84_p5 = scmp.ne.s32.totalorder %s151_s3, %s83_s26  ;;  %p87_p6 = scmp.lt.u32.totalorder %s83_s26, %s151_s3 }
  0x11   :  { %p89_p7 = pnand %p87_p6, %p84_p5 }
  0x13   :  { %92 = shalt.err (!%p89_p7)
}
  0x14   :  { %s96_s4 = smov 128   ;;  %s97_s5 = smov 8  }
  0x15   :  { %61 = dma.vmem_to_hbm [thread:$0]  %s56_s2, 512, %s151_s3, [#allocation3], %s96_s4, %s96_s4, %s97_s5  }
  0x16   :  { %93 = dma.done.wait [#allocation3], 512  }
  0x17   :  { %94 = vsyncadd [#allocation3], 4294966784 }
  0x18   :  { %65 = vsyncpa [#allocation3], 1 }

// kernel: down_block_forward.8
= control target key start
LH: loop header
LB: loop body
LE: loop exit
PB: predicated region body
PF: predicated region fallthrough
CT: control target
= control target key end

     0   :  { %s1329_s15 = smov 0   ;;  %s1563_s0 = inlined_call_operand.vmem [shape: bf16[2,4,5,5,8], index: 0, kind: input, shape index: {}]   ;;  %s1564_s1 = inlined_call_operand.vmem [shape: bf16[72,8], index: 1, kind: input, shape index: {}]   ;;  %s1565_s2 = inlined_call_operand.vmem [shape: f32[1,8], index: 2, kind: input, shape index: {}]   ;;  %s1566_s3 = inlined_call_operand.vmem [shape: f32[2,16,8], index: 3, kind: output, shape index: {0}]   ;;  %s1567_s4 = inlined_call_operand.vmem [shape: f32[2,2,8], index: 4, kind: output, shape index: {1}]  }
   0x1 LB: > { %s1173_s16 = sadd.s32 4294967295, %s1299_s15   ;;  %p1177_p0 = scmp.ge.s32.totalorder %s1299_s15, 1  ;;  %s1299_s15 = sphi %s1329_s15, %s15_s15  }
   0x2   : > { %p165_p1 = scmp.lt.s32.totalorder %s1299_s15, 3 }
   0x4   : > { %p166_p2 = pnand %p1177_p0, %p165_p1 }
   0x5   : > { %v229_v0 = vld [vmem:[%s1564_s1 + $0x4] sm:$0xf] (!%p166_p2)  ;;  %vm255_vm0 = vcmask (!%p166_p2), 1043456   ;;  %v228_v1 = vld [vmem:[%s1564_s1] sm:$0xf] (!%p166_p2)  ;;  %v239_v2 = vlaneseq (!%p166_p2)  ;;  %v1301_v3 = vmov (!%p166_p2), 0.0  }
   0x6   : > { %169 = sbr.rel (%p166_p2) target bundleno = 303 (0x12f), region = 32  ;;  %1213 = vmatprep.subr.bf16.mxu0 (!%p166_p2), %v1301_v3  ;;  %v257_v4 = vsel (!%p166_p2), %vm255_vm0, %v229_v0, 0  ;;  %1219 = vmatprep.subr.bf16.mxu1 (!%p166_p2), %v1301_v3  ;;  %v325_v5 = vsel (!%p166_p2), %vm255_vm0, %v228_v1, 0  ;;  %p195_p3 = scmp.lt.s32.totalorder (!%p166_p2), %s1173_s16, 1  ;;  %v1302_v6 = vmov (!%p166_p2), 1983009808  }
   0x7   : > { %1214 = vmatpush3.bf16.msra.mxu0 (!%p166_p2), %v257_v4  ;;  %1220 = vmatpush3.bf16.msra.mxu1 (!%p166_p2), %v325_v5  ;;  %v237_v7 = vunpack.c.l.s4 (!%p166_p2), %v1302_v6  ;;  %v240_v8 = vshrl.u32 (!%p166_p2), %v239_v2, 7  ;;  %vm1303_vm1 = vmmov (!%p166_p2), 0   ;;  %v463_v9 = vld [vmem:[%s1564_s1 + $0x8] sm:$0xf] (!%p166_p2)  ;;  %v530_v10 = vld [vmem:[%s1564_s1 + $0xc] sm:$0xf] (!%p166_p2) }
   0x8   : > { %1215 = vmatprep.mubr.msk.bf16.mxu0 (!%p166_p2), %vm1303_vm1, %v1301_v3  ;;  %1221 = vmatprep.mubr.msk.bf16.mxu1 (!%p166_p2), %vm1303_vm1, %v1301_v3  ;;  %vm251_vm2 = vcmask (!%p166_p2), 64512   ;;  %v485_v13 = vsel (!%p166_p2), %vm255_vm0, %v463_v9, 0  ;;  %v556_v14 = vsel (!%p166_p2), %vm255_vm0, %v530_v10, 0  ;;  %v601_v15 = vld [vmem:[%s1564_s1 + $0x10] sm:$0xf] (!%p166_p2)  ;;  %vm1083_vm10 = vcmask (!%p166_p2), 1040384  }
   0x9   : > { %v238_v11 = vunpack.c.0.s8 (!%p166_p2), %v237_v7  ;;  %1225 = vmatprep.subr.bf16.mxu0 (!%p166_p2), %v1301_v3  ;;  %1231 = vmatprep.subr.bf16.mxu1 (!%p166_p2), %v1301_v3  ;;  %v760_v16 = vld [vmem:[%s1564_s1 + $0x14] sm:$0xf] (!%p166_p2)  ;;  %vm400_vm3 = vsmask.f32 (!%p166_p2), 1280  ;;  %vm401_vm4 = vsmask.f32 (!%p166_p2), 3336 }
   0xa   : > { %vm403_vm5 = vsmask.f32 (!%p166_p2), 5392  ;;  %vm405_vm6 = vsmask.f32 (!%p166_p2), 7448  ;;  %v1390_v23 = vsel (!%p166_p2), %vm255_vm0, %v601_v15, 0  ;;  %v1393_v24 = vsel (!%p166_p2), %vm255_vm0, %v760_v16, 0  ;;  %vm402_vm7 = vmor (!%p166_p2), %vm400_vm3, %vm401_vm4 }
   0xb   : > { %v1362_v12 = vsub.s32 (!%p166_p2), %v238_v11, %v240_v8  ;;  %vm1424_vm8 = vmor (!%p166_p2), %vm402_vm7, %vm403_vm5  ;;  %vm1085_vm11 = vcmask (!%p166_p2), 58368  }
   0xc   : > { %vm1435_vm9 = vmor (!%p166_p2), %vm1424_vm8, %vm405_vm6 }
   0xd   : > { %s1573_s16 = smov (!%p195_p3, %s1173_s16), 1 }
   0xe   : > { %s1267_s25 = smul.u32 80, %s1573_s16  ;;  %s1194_s13 = sshll.u32 %s1573_s16, 4 }
   0xf   : > { %s204_s20 = scalar_lea.vmem %s1566_s3, %s1194_s13  ;;  %s1181_s21 = sshll.u32 %s1573_s16, 1 }
  0x10   : > { %s1375_s6 = scalar_lea.vmem %s1563_s0, %s1267_s25  ;;  %s208_s24 = scalar_lea.vmem %s1567_s4, %s1181_s21 }
  0x11   : > { %v215_v17 = vld [vmem:[%s1375_s6 + $0x14] sm:$0x7]  ;;  %v1379_v18 = vld [vmem:[%s1375_s6 + $0x18] sm:$0x7]  ;;  %v1382_v19 = vld [vmem:[%s1375_s6 + $0x1c] sm:$0x7] }
  0x12   : > { %v1385_v20 = vld [vmem:[%s1375_s6 + $0x20] sm:$0x7]  ;;  %v234_v21 = vcombine.low %v215_v17, %v1379_v18  ;;  %v1398_v26 = vld [vmem:[%s1375_s6 + $0x4] sm:$0x7]  ;;  %v1401_v27 = vld [vmem:[%s1375_s6 + $0x8] sm:$0x7] }
  0x13   : > { %v210_v22 = vld [vmem:[%s1375_s6] sm:$0x7]  ;;  %v235_v25 = vcombine.low %v1382_v19, %v1385_v20  ;;  %v1404_v28 = vld [vmem:[%s1375_s6 + $0xc] sm:$0x7]  ;;  %v382_v33 = vrot.slane %v1398_v26, %v1362_v12  ;;  %v390_v36 = vrot.slane %v1401_v27, %v1362_v12  ;;  %v220_v5 = vld [vmem:[%s1375_s6 + $0x28] sm:$0x7] }
  0x14   : > { %v374_v29 = vrot.slane %v210_v22, %v1362_v12  ;;  %v242_v30 = vrot.slane %v234_v21, %v1362_v12  ;;  %v304_v31 = vcombine.low %v210_v22, %v1398_v26  ;;  %v305_v32 = vcombine.low %v1401_v27, %v1404_v28  ;;  %v221_v10 = vld [vmem:[%s1375_s6 + $0x2c] sm:$0x7]  ;;  %v222_v15 = vld [vmem:[%s1375_s6 + $0x30] sm:$0x7]  ;;  %v223_v16 = vld [vmem:[%s1375_s6 + $0x34] sm:$0x7] }
  0x15   : > { %v249_v34 = vrot.slane %v235_v25, %v1362_v12  ;;  %v398_v37 = vrot.slane %v1404_v28, %v1362_v12  ;;  %v383_v40 = vcombine.high %v382_v33, %v382_v33  ;;  %v391_v43 = vcombine.high %v390_v36, %v390_v36 }
  0x16   : > { %v375_v35 = vcombine.high %v374_v29, %v374_v29  ;;  %v312_v38 = vrot.slane %v304_v31, %v1362_v12  ;;  %v319_v39 = vrot.slane %v305_v32, %v1362_v12  ;;  %v408_v41 = vshrl.u32 %v374_v29, 16 }
  0x17   : > { %v250_v42 = vcombine.low %v242_v30, %v249_v34  ;;  %v399_v44 = vcombine.high %v398_v37, %v398_v37  ;;  %v411_v45 = vshll.u32 %v374_v29, 16  ;;  %v422_v49 = vshrl.u32 %v382_v33, 16 }
  0x18   : > { %v320_v46 = vcombine.low %v312_v38, %v319_v39  ;;  %v410_v47 = vrot.slane %v408_v41, 6  ;;  %v417_v48 = vshll.u32 %v375_v35, 16  ;;  %v425_v51 = vshll.u32 %v382_v33, 16 }
  0x19   : > { %1216 = vmatmul.mubr.msk.bf16.vlgmr.msra.gmra.mrb[0].mxu0 %vm251_vm2, %v250_v42  ;;  %v413_v50 = vrot.slane %v411_v45, 7  ;;  %v431_v52 = vshll.u32 %v383_v40, 16  ;;  %v436_v53 = vshrl.u32 %v390_v36, 16  ;;  %v424_v56 = vrot.slane %v422_v49, 6 }
  0x1a   : > { %1222 = vmatmul.mubr.msk.bf16.vlgmr.msra.gmra.mrb[0].mxu1 %vm251_vm2, %v320_v46  ;;  %v419_v55 = vrot.slane %v417_v48, 7  ;;  %v439_v57 = vshll.u32 %v390_v36, 16  ;;  %v445_v58 = vshll.u32 %v391_v43, 16  ;;  %1226 = vmatpush3.bf16.msra.mxu0 %v485_v13  ;;  %v427_v60 = vrot.slane %v425_v51, 7 }
  0x1b   : > { %v414_v59 = vor.u32 %v413_v50, %v410_v47  ;;  %v438_v61 = vrot.slane %v436_v53, 6  ;;  %v450_v62 = vshrl.u32 %v398_v37, 16  ;;  %1232 = vmatpush3.bf16.msra.mxu1 %v556_v14  ;;  %1227 = vmatprep.mubr.msk.bf16.mxu0 %vm1303_vm1, %v1301_v3  ;;  %v453_v0 = vshll.u32 %v398_v37, 16 }
  0x1c   : > { %v441_v63 = vrot.slane %v439_v57, 7  ;;  %v459_v1 = vshll.u32 %v399_v44, 16  ;;  %1237 = vmatprep.subr.bf16.mxu0 %v1301_v3  ;;  %v433_v4 = vrot.slane %v431_v52, 7  ;;  %1233 = vmatprep.mubr.msk.bf16.mxu1 %vm1303_vm1, %v1301_v3  ;;  %v428_v8 = vor.u32 %v427_v60, %v424_v56 }
  0x1d   : > { %v415_v6 = vrot.slane %v414_v59, 2  ;;  %v452_v7 = vrot.slane %v450_v62, 6  ;;  %v447_v9 = vrot.slane %v445_v58, 7  ;;  %1243 = vmatprep.subr.bf16.mxu1 %v1301_v3  ;;  %v455_v11 = vrot.slane %v453_v0, 7 }
  0x1e   : > { %v442_v13 = vor.u32 %v441_v63, %v438_v61  ;;  %v461_v14 = vrot.slane %v459_v1, 7  ;;  %v535_v17 = vcombine.low %v220_v5, %v221_v10  ;;  %v429_v22 = vrot.slane %v428_v8, 2  ;;  %v1464_v42 = vld.sshfl [vmem:[%s1375_s6 + $0x3c] sm:$0x5f pattern:$0x76325410] }
  0x1f   : > { %v420_v21 = vsel %vm1435_vm9, %v415_v6, %v419_v55  ;;  %v536_v25 = vcombine.low %v222_v15, %v223_v16  ;;  %v678_v29 = vrot.slane %v220_v5, %v1362_v12  ;;  %v456_v31 = vor.u32 %v455_v11, %v452_v7  ;;  %v1467_v47 = vld.sshfl [vmem:[%s1375_s6 + $0x44] sm:$0x5f pattern:$0x76325410] }
  0x20   : > { %v443_v30 = vrot.slane %v442_v13, 2  ;;  %v543_v32 = vrot.slane %v535_v17, %v1362_v12  ;;  %v686_v33 = vrot.slane %v221_v10, %v1362_v12  ;;  %v1453_v34 = vsel %vm1435_vm9, %v429_v22, %v433_v4 }
  0x21   : > { %v550_v35 = vrot.slane %v536_v25, %v1362_v12  ;;  %v694_v36 = vrot.slane %v222_v15, %v1362_v12  ;;  %v702_v37 = vrot.slane %v223_v16, %v1362_v12  ;;  %v457_v39 = vrot.slane %v456_v31, 2  ;;  %v214_v25 = vld [vmem:[%s1375_s6 + $0x10] sm:$0x7] }
  0x22   : > { %v1460_v38 = vsel %vm1435_vm9, %v443_v30, %v447_v9  ;;  %v464_v40 = vcombine.low %v420_v21, %v1453_v34  ;;  %v705_v41 = vshrl.u32 %v678_v29, 16  ;;  %v708_v44 = vshll.u32 %v678_v29, 16 }
  0x23   : > { %v551_v43 = vcombine.low %v543_v32, %v550_v35  ;;  %v719_v45 = vshrl.u32 %v686_v33, 16  ;;  %v722_v46 = vshll.u32 %v686_v33, 16  ;;  %v1471_v48 = vsel %vm1435_vm9, %v457_v39, %v461_v14  ;;  %v219_v39 = vld [vmem:[%s1375_s6 + $0x24] sm:$0x7] }
  0x24   : > { %v472_v49 = vrot.slane %v464_v40, %v1362_v12  ;;  %v707_v50 = vrot.slane %v705_v41, 6  ;;  %v733_v51 = vshrl.u32 %v694_v36, 16  ;;  %v465_v52 = vcombine.low %v1460_v38, %v1471_v48 }
  0x25   : > { %1234 = vmatmul.mubr.msk.bf16.vlgmr.msra.gmra.mrb[4].mxu1 %vm251_vm2, %v551_v43  ;;  %v710_v53 = vrot.slane %v708_v44, 7  ;;  %v721_v54 = vrot.slane %v719_v45, 6  ;;  %v724_v55 = vrot.slane %v722_v46, 7  ;;  %v736_v57 = vshll.u32 %v694_v36, 16 }
  0x26   : > { %v735_v56 = vrot.slane %v733_v51, 6  ;;  %v747_v58 = vshrl.u32 %v702_v37, 16  ;;  %v750_v59 = vshll.u32 %v702_v37, 16  ;;  %1244 = vmatpush3.bf16.msra.mxu1 %v1393_v24  ;;  %1245 = vmatprep.mubr.msk.bf16.mxu1 %vm1303_vm1, %v1301_v3  ;;  %v479_v60 = vrot.slane %v465_v52, %v1362_v12 }
  0x27   : > { %v679_v61 = vcombine.high %v678_v29, %v678_v29  ;;  %1255 = vmatprep.subr.bf16.mxu1 %v1301_v3  ;;  %v738_v62 = vrot.slane %v736_v57, 7  ;;  %v687_v1 = vcombine.high %v686_v33, %v686_v33  ;;  %v622_v5 = vcombine.low %v1464_v42, %v1467_v47  ;;  %v827_v33 = vld [vmem:[%s1564_s1 + $0x18] sm:$0xf] }
  0x28   : > { %v749_v63 = vrot.slane %v747_v58, 6  ;;  %v752_v0 = vrot.slane %v750_v59, 7  ;;  %v480_v4 = vcombine.low %v472_v49, %v479_v60  ;;  %v695_v6 = vcombine.high %v694_v36, %v694_v36 }
  0x29   : > { %v703_v7 = vcombine.high %v702_v37, %v702_v37  ;;  %v711_v24 = vor.u32 %v710_v53, %v707_v50  ;;  %v714_v8 = vshll.u32 %v679_v61, 16  ;;  %v725_v9 = vor.u32 %v724_v55, %v721_v54 }
  0x2a   : > { %v728_v10 = vshll.u32 %v687_v1, 16  ;;  %1228 = vmatmul.mubr.msk.bf16.vlgmr.msra.gmra.mrb[4].mxu0 %vm251_vm2, %v480_v4  ;;  %v739_v11 = vor.u32 %v738_v62, %v735_v56  ;;  %v742_v13 = vshll.u32 %v695_v6, 16  ;;  %v753_v14 = vor.u32 %v752_v0, %v749_v63 }
  0x2b   : > { %v756_v15 = vshll.u32 %v703_v7, 16  ;;  %1238 = vmatpush3.bf16.msra.mxu0 %v1390_v23  ;;  %1239 = vmatprep.mubr.msk.bf16.mxu0 %vm1303_vm1, %v1301_v3  ;;  %v712_v16 = vrot.slane %v711_v24, 2  ;;  %v716_v17 = vrot.slane %v714_v8, 7  ;;  %v726_v21 = vrot.slane %v725_v9, 2 }
  0x2c   : > { %v730_v22 = vrot.slane %v728_v10, 7  ;;  %1249 = vmatprep.subr.bf16.mxu0 %v1301_v3  ;;  %v740_v29 = vrot.slane %v739_v11, 2  ;;  %v744_v30 = vrot.slane %v742_v13, 7  ;;  %v754_v31 = vrot.slane %v753_v14, 2 }
  0x2d   : > { %v758_v32 = vrot.slane %v756_v15, 7  ;;  %v717_v23 = vsel %vm1435_vm9, %v712_v16, %v716_v17  ;;  %v829_v36 = vcombine.low %v1398_v26, %v1401_v27  ;;  %v830_v37 = vcombine.low %v1404_v28, %v214_v25  ;;  %v895_v26 = vld [vmem:[%s1564_s1 + $0x1c] sm:$0xf] }
  0x2e   : > { %v731_v35 = vsel %vm1435_vm9, %v726_v21, %v730_v22  ;;  %v745_v40 = vsel %vm1435_vm9, %v740_v29, %v744_v30  ;;  %v969_v43 = vrot.slane %v214_v25, %v1362_v12  ;;  %v850_v45 = vsel %vm255_vm0, %v827_v33, 0 }
  0x2f   : > { %v759_v41 = vsel %vm1435_vm9, %v754_v31, %v758_v32  ;;  %v761_v42 = vcombine.low %v717_v23, %v731_v35  ;;  %v897_v47 = vcombine.low %v1379_v18, %v1382_v19  ;;  %v898_v49 = vcombine.low %v1385_v20, %v219_v39  ;;  %v985_v20 = vld [vmem:[%s1564_s1 + $0x20] sm:$0xf] }
  0x30   : > { %v762_v44 = vcombine.low %v745_v40, %v759_v41  ;;  %v972_v27 = vshrl.u32 %v969_v43, 16  ;;  %v975_v28 = vshll.u32 %v969_v43, 16  ;;  %v970_v51 = vcombine.high %v969_v43, %v969_v43 }
  0x31   : > { %v769_v46 = vrot.slane %v761_v42, %v1362_v12  ;;  %v837_v52 = vrot.slane %v829_v36, %v1362_v12  ;;  %v844_v53 = vrot.slane %v830_v37, %v1362_v12  ;;  %v918_v57 = vsel %vm255_vm0, %v895_v26, 0 }
  0x32   : > { %v776_v50 = vrot.slane %v762_v44, %v1362_v12  ;;  %1240 = vmatmul.mubr.msk.bf16.vlgmr.msra.gmra.mrb[8].mxu0 %vm251_vm2, %v622_v5  ;;  %v974_v54 = vrot.slane %v972_v27, 6  ;;  %v977_v55 = vrot.slane %v975_v28, 7  ;;  %v981_v18 = vshll.u32 %v970_v51, 16 }
  0x33   : > { %1250 = vmatpush3.bf16.msra.mxu0 %v850_v45  ;;  %1251 = vmatprep.mubr.msk.bf16.mxu0 %vm1303_vm1, %v1301_v3  ;;  %v905_v58 = vrot.slane %v897_v47, %v1362_v12  ;;  %v912_v59 = vrot.slane %v898_v49, %v1362_v12  ;;  %v845_v61 = vcombine.low %v837_v52, %v844_v53  ;;  %v1007_v0 = vsel %vm255_vm0, %v985_v20, 0 }
  0x34   : > { %v777_v56 = vcombine.low %v769_v46, %v776_v50  ;;  %1261 = vmatprep.subr.bf16.mxu0 %v1301_v3  ;;  %v978_v19 = vor.u32 %v977_v55, %v974_v54  ;;  %v983_v60 = vrot.slane %v981_v18, 7  ;;  %v986_v63 = vcombine.low %v1453_v34, %v1460_v38 }
  0x35   : > { %v913_v4 = vcombine.low %v905_v58, %v912_v59 }
  0x36   : > { %1246 = vmatmul.mubr.msk.bf16.vlgmr.msra.gmra.mrb[8].mxu1 %vm251_vm2, %v777_v56  ;;  %v979_v62 = vrot.slane %v978_v19, 2  ;;  %v994_v6 = vrot.slane %v986_v63, %v1362_v12 }
  0x37   : > { %1256 = vmatpush3.bf16.msra.mxu1 %v918_v57  ;;  %1257 = vmatprep.mubr.msk.bf16.mxu1 %vm1303_vm1, %v1301_v3  ;;  %v1191_v57 = vld [vmem:[%s1565_s2] ss:$0 sm:$0xff] }
  0x38   : > { %v984_v1 = vsel %vm1435_vm9, %v979_v62, %v983_v60 }
  0x39   : > { %v987_v5 = vcombine.low %v1471_v48, %v984_v1 }
  0x3a   : > { %1252 = vmatmul.mubr.msk.bf16.vlgmr.msra.gmra.mrb[12].mxu0 %vm251_vm2, %v845_v61 }
  0x3b   : > { %1262 = vmatpush3.bf16.msra.mxu0 %v1007_v0  ;;  %1263 = vmatprep.mubr.msk.bf16.mxu0 %vm1303_vm1, %v1301_v3  ;;  %v1001_v7 = vrot.slane %v987_v5, %v1362_v12 }
  0x3d   : > { %v1002_v34 = vcombine.low %v994_v6, %v1001_v7 }
  0x3e   : > { %1258 = vmatmul.mubr.msk.bf16.vlgmr.msra.gmra.mrb[12].mxu1 %vm251_vm2, %v913_v4 }
  0x42   : > { %1264 = vmatmul.mubr.msk.bf16.vlgmr.msra.gmra.mrb[16].mxu0 %vm251_vm2, %v1002_v34 }
  0xec   : > { %v293_v2 = vpop.f32.mrb[0].mxu0 }
  0xed   : > { %v1217_v38 = vpop.f32.mrb[1].mxu0  ;;  %v361_v24 = vpop.f32.mrb[0].mxu1 }
  0xee   : > { %v362_v8 = vadd.f32 %v361_v24, %v293_v2  ;;  %v296_v48 = vpop.f32.mrb[2].mxu0  ;;  %v1223_v9 = vpop.f32.mrb[1].mxu1 }
  0xef   : > { %v1218_v10 = vpop.f32.mrb[3].mxu0  ;;  %v364_v11 = vpop.f32.mrb[2].mxu1 }
  0xf0   : > { %v365_v13 = vadd.f32 %v364_v11, %v296_v48  ;;  %v1224_v14 = vpop.f32.mrb[3].mxu1 }
  0xf8   : > { %v592_v15 = vpop.f32.mrb[4].mxu1 }
  0xf9   : > { %v1235_v16 = vpop.f32.mrb[5].mxu1 }
  0xfa   : > { %v595_v3 = vpop.f32.mrb[6].mxu1 }
  0xfb   : > { %v1236_v17 = vpop.f32.mrb[7].mxu1 }
  0xfd   : > { %v521_v12 = vpop.f32.mrb[4].mxu0 }
  0xfe   : > { %v528_v21 = vadd.f32 %v521_v12, %v362_v8  ;;  %v1229_v22 = vpop.f32.mrb[5].mxu0 }
  0xff   : > { %v524_v25 = vpop.f32.mrb[6].mxu0 }
 0x100   : > { %v529_v29 = vadd.f32 %v524_v25, %v365_v13  ;;  %v599_v30 = vadd.f32 %v592_v15, %v528_v21  ;;  %v1230_v31 = vpop.f32.mrb[7].mxu0 }
 0x102   : > { %v600_v32 = vadd.f32 %v595_v3, %v529_v29 }
 0x105   : > { %v663_v33 = vpop.f32.mrb[8].mxu0 }
 0x106   : > { %v670_v23 = vadd.f32 %v663_v33, %v599_v30  ;;  %v1241_v35 = vpop.f32.mrb[9].mxu0 }
 0x107   : > { %v666_v36 = vpop.f32.mrb[10].mxu0 }
 0x108   : > { %v671_v37 = vadd.f32 %v666_v36, %v600_v32  ;;  %v1242_v40 = vpop.f32.mrb[11].mxu0 }
 0x109   : > { %v818_v39 = vpop.f32.mrb[8].mxu1 }
 0x10a   : > { %v825_v41 = vadd.f32 %v818_v39, %v670_v23  ;;  %v1247_v42 = vpop.f32.mrb[9].mxu1 }
 0x10b   : > { %v821_v43 = vpop.f32.mrb[10].mxu1 }
 0x10c   : > { %v826_v44 = vadd.f32 %v821_v43, %v671_v37  ;;  %v1248_v45 = vpop.f32.mrb[11].mxu1 }
 0x10d   : > { %v886_v46 = vpop.f32.mrb[12].mxu0 }
 0x10e   : > { %v893_v26 = vadd.f32 %v886_v46, %v825_v41  ;;  %v1253_v27 = vpop.f32.mrb[13].mxu0 }
 0x10f   : > { %v889_v28 = vpop.f32.mrb[14].mxu0 }
 0x110   : > { %v894_v47 = vadd.f32 %v889_v28, %v826_v44  ;;  %v1254_v50 = vpop.f32.mrb[15].mxu0 }
 0x111   : > { %v954_v49 = vpop.f32.mrb[12].mxu1 }
 0x112   : > { %v961_v51 = vadd.f32 %v954_v49, %v893_v26  ;;  %v1259_v52 = vpop.f32.mrb[13].mxu1 }
 0x113   : > { %v957_v53 = vpop.f32.mrb[14].mxu1 }
 0x114   : > { %v962_v54 = vadd.f32 %v957_v53, %v894_v47  ;;  %v1260_v55 = vpop.f32.mrb[15].mxu1 }
 0x115   : > { %v1043_v56 = vpop.f32.mrb[16].mxu0 }
 0x116   : > { %v1050_v18 = vadd.f32 %v1043_v56, %v961_v51  ;;  %v1265_v19 = vpop.f32.mrb[17].mxu0 }
 0x117   : > { %v1046_v20 = vpop.f32.mrb[18].mxu0 }
 0x118   : > { %v1059_v58 = vadd.f32 %v1191_v57, %v1050_v18  ;;  %v1051_v59 = vadd.f32 %v1046_v20, %v962_v54  ;;  %v1266_v60 = vpop.f32.mrb[19].mxu0 }
 0x11a   : > { %1061 = vst.msk [vmem:[%s204_s20] sm:$0xff] %vm251_vm2, %v1059_v58  ;;  %v1072_v61 = vmul.f32 %v1059_v58, %v1059_v58  ;;  %v1060_v62 = vadd.f32 %v1191_v57, %v1051_v59  ;;  %v1063_v63 = vsel %vm251_vm2, %v1059_v58, 0.0 }
 0x11c   : > { %1062 = vst.msk [vmem:[%s204_s20 + $0x8] sm:$0xff] %vm251_vm2, %v1060_v62  ;;  %v1064_v0 = vsel %vm251_vm2, %v1060_v62, 0.0  ;;  %v1073_v1 = vmul.f32 %v1060_v62, %v1060_v62  ;;  %v1074_v5 = vsel %vm251_vm2, %v1072_v61, 0.0 }
 0x11d   : > { %v1065_v4 = vadd.f32 %v1064_v0, %v1063_v63 }
 0x11e   : > { %v1075_v6 = vsel %vm251_vm2, %v1073_v1, 0.0 }
 0x11f   : > { %v1066_v7 = vrot.slane %v1065_v4, 4  ;;  %v1076_v34 = vadd.f32 %v1075_v6, %v1074_v5 }
 0x121   : > { %v1067_v2 = vadd.f32 %v1066_v7, %v1065_v4  ;;  %v1077_v38 = vrot.slane %v1076_v34, 4 }
 0x123   : > { %v1068_v24 = vrot.slane %v1067_v2, 2  ;;  %v1078_v8 = vadd.f32 %v1077_v38, %v1076_v34 }
 0x125   : > { %v1069_v48 = vadd.f32 %v1068_v24, %v1067_v2  ;;  %v1079_v9 = vrot.slane %v1078_v8, 2 }
 0x127   : > { %v1070_v10 = vrot.slane %v1069_v48, 1  ;;  %v1080_v11 = vadd.f32 %v1079_v9, %v1078_v8 }
 0x129   : > { %v1081_v13 = vrot.slane %v1080_v11, 1  ;;  %v1071_v14 = vadd.f32 %v1070_v10, %v1069_v48 }
 0x12b   : > { %v1082_v15 = vadd.f32 %v1081_v13, %v1080_v11 }
 0x12d   : > { %v1084_v16 = vsel %vm1083_vm10, %v1071_v14, %v1082_v15 }
 0x12e   : > { %1086 = vst.msk [vmem:[%s208_s24] sm:$0x3] %vm1085_vm11, %v1084_v16 }
 0x12f PF: > { %s15_s15 = sadd.s32 1, %s1299_s15  }
 0x130   : > { %p12_p4 = scmp.ge.s32.totalorder %s15_s15, 4  }
 0x132   :  { %14 = sbr.rel (!%p12_p4) target bundleno = 1 (0x1), region = 74 }

</bundles_post_ra>
